<compile_context>
chip_gen: v7x
topology: tpu7x:2x2x1
jax: 0.10.0
libtpu: 0.0.40
codegen_flags: <defaults>
</compile_context>

<pallas_src>
import functools

import jax
import jax.numpy as jnp
import numpy as np
from jax import lax
from jax.experimental import pallas as pl
from jax.experimental.pallas import tpu as pltpu


def _linear_transformer_kernel(
    x_ref, gmask_ref, gamma_ref, beta_ref,
    wq_ref, bq_ref, wk_ref, bk_ref, wv_ref, bv_ref, wo_ref, bo_ref,
    o_ref,
    out_scr,
    *, num_heads: int, head_dim: int, inv_group_count: float, eps: float,
    scale: float, residual: bool):
  """One batch element of the LinearTransformer forward (all heads fused)."""
  x = x_ref[0].astype(jnp.float32)                                  # (C, N)

  # ---- GroupNorm (affine), one-pass stats --------------------------------
  # Per-channel sums over the lane (spatial) axis, then mix within groups via
  # the tiny within-group indicator matrix (groups are contiguous channels).
  ch_sum = jnp.sum(x, axis=-1, keepdims=True)                       # (C, 1)
  ch_sq = jnp.sum(x * x, axis=-1, keepdims=True)                    # (C, 1)
  gm = gmask_ref[...]                                               # (C, C)
  mean = jnp.dot(gm, ch_sum, preferred_element_type=jnp.float32) * inv_group_count
  ex2 = jnp.dot(gm, ch_sq, preferred_element_type=jnp.float32) * inv_group_count
  var = jnp.maximum(ex2 - mean * mean, 0.0)
  xn = (x - mean) * lax.rsqrt(var + eps)
  xn = xn * gamma_ref[...] + beta_ref[...]                          # (C, N)

  # ---- 1x1 Conv1d projections, all heads at once (bigger MXU matmuls) ----
  q = jnp.dot(wq_ref[...], xn, preferred_element_type=jnp.float32) + bq_ref[...]
  k = jnp.dot(wk_ref[...], xn, preferred_element_type=jnp.float32) + bk_ref[...]
  v = jnp.dot(wv_ref[...], xn, preferred_element_type=jnp.float32) + bv_ref[...]
  qs = q * scale
  ks = k * scale

  # ---- Per-head softmax attention (static unrolled loop over heads) ------
  for h in range(num_heads):
    lo = h * head_dim
    qh = qs[lo:lo + head_dim, :]                                    # (d, N)
    kh = ks[lo:lo + head_dim, :]                                    # (d, N)
    vh = v[lo:lo + head_dim, :]                                     # (d, N)
    # scores[i, j] = sum_d qh[d, i] * kh[d, j]
    scores = lax.dot_general(qh, kh, (((0,), (0,)), ((), ())),
                             preferred_element_type=jnp.float32)    # (Nq, Nk)
    m = jnp.max(scores, axis=-1, keepdims=True)
    p = jnp.exp(scores - m)
    denom = jnp.sum(p, axis=-1, keepdims=True)
    attn = p * pl.reciprocal(denom, approx=False)
    # out_h[d, i] = sum_j attn[i, j] * vh[d, j]
    out_h = lax.dot_general(vh, attn, (((1,), (1,)), ((), ())),
                            preferred_element_type=jnp.float32)     # (d, N)
    out_scr[lo:lo + head_dim, :] = out_h

  # ---- Output projection (single matmul over all heads) + residual -------
  out = jnp.dot(wo_ref[...], out_scr[...],
                preferred_element_type=jnp.float32) + bo_ref[...]   # (C_out, N)
  if residual:
    out = out + x
  o_ref[0] = out.astype(o_ref.dtype)


def medfusion_linear_attention(
    x, gamma, beta, wq, bq, wk, bk, wv, bv, wo, bo,
    *, num_heads, num_groups, eps=1e-5):
  """Pallas implementation of LinearTransformer.forward (self-attention path)."""
  orig_dtype = x.dtype
  b, c, *spatial = x.shape
  n = int(np.prod(spatial))
  hid = wq.shape[0]
  d = hid // num_heads
  c_out = wo.shape[0]
  scale = float(d) ** (-0.25)
  residual = (c_out == c)   # `if x.shape == out.shape: out = x + out`

  # Natural contiguous layout: (B, C, N) with N on the lane axis (no transposes).
  x3 = x.reshape(b, c, n)

  f32 = jnp.float32
  # Within-group indicator matrix for the GroupNorm group-mixing of channel stats.
  gid = np.arange(c) // (c // num_groups)
  gmask = jnp.asarray((gid[:, None] == gid[None, :]).astype(np.float32))

  gamma2 = gamma.reshape(c, 1).astype(f32)
  beta2 = beta.reshape(c, 1).astype(f32)
  wq2 = wq.reshape(hid, c).astype(f32)
  wk2 = wk.reshape(hid, c).astype(f32)
  wv2 = wv.reshape(hid, c).astype(f32)
  bq2 = bq.reshape(hid, 1).astype(f32)
  bk2 = bk.reshape(hid, 1).astype(f32)
  bv2 = bv.reshape(hid, 1).astype(f32)
  wo2 = wo.reshape(c_out, hid).astype(f32)
  bo2 = bo.reshape(c_out, 1).astype(f32)

  kernel = functools.partial(
      _linear_transformer_kernel,
      num_heads=int(num_heads), head_dim=int(d),
      inv_group_count=1.0 / float((c // num_groups) * n),
      eps=float(eps), scale=scale, residual=residual)

  const = lambda bi: (0, 0)
  per_batch = lambda bi: (bi, 0, 0)

  out3 = pl.pallas_call(
      kernel,
      out_shape=jax.ShapeDtypeStruct((b, c_out, n), orig_dtype),
      grid_spec=pltpu.PrefetchScalarGridSpec(
          num_scalar_prefetch=0,
          grid=(b,),
          in_specs=[
              pl.BlockSpec((1, c, n), per_batch),       # x
              pl.BlockSpec((c, c), const),              # group mask
              pl.BlockSpec((c, 1), const),              # gamma
              pl.BlockSpec((c, 1), const),              # beta
              pl.BlockSpec((hid, c), const),            # Wq (all heads)
              pl.BlockSpec((hid, 1), const),            # bq
              pl.BlockSpec((hid, c), const),            # Wk
              pl.BlockSpec((hid, 1), const),            # bk
              pl.BlockSpec((hid, c), const),            # Wv
              pl.BlockSpec((hid, 1), const),            # bv
              pl.BlockSpec((c_out, hid), const),        # Wout
              pl.BlockSpec((c_out, 1), const),          # bout
          ],
          out_specs=pl.BlockSpec((1, c_out, n), per_batch),
          scratch_shapes=[
              pltpu.VMEM((hid, n), jnp.float32),        # per-head attention outputs
          ]),
      compiler_params=pltpu.CompilerParams(
          # Batch axis is fully parallel (megacore / v7x 2-TC sharding).
          dimension_semantics=("parallel",),
          vmem_limit_bytes=64 * 1024 * 1024),
  )(x3, gmask, gamma2, beta2, wq2, bq2, wk2, bk2, wv2, bv2, wo2, bo2)

  return out3.reshape(b, c_out, *spatial)


def _reference_forward(x, gamma, beta, wq, bq, wk, bk, wv, bv, wo, bo,
                       *, num_heads, num_groups, eps=1e-5):
  """Pure-JAX replica of LinearTransformer.forward (embedding=None path)."""
  hp = lax.Precision.HIGHEST
  b, c, *spatial = x.shape
  n = int(np.prod(spatial))
  x3 = x.reshape(b, c, n).astype(jnp.float32)

  # GroupNorm (affine)
  cg = c // num_groups
  xg = x3.reshape(b, num_groups, cg * n)
  mean = jnp.mean(xg, axis=-1, keepdims=True)
  var = jnp.mean((xg - mean) ** 2, axis=-1, keepdims=True)
  xn = ((xg - mean) * lax.rsqrt(var + eps)).reshape(b, c, n)
  xn = xn * gamma[None, :, None] + beta[None, :, None]

  # 1x1 Conv1d projections
  q = jnp.einsum('oc,bcn->bon', wq, xn, precision=hp) + bq[None, :, None]
  k = jnp.einsum('oc,bcn->bon', wk, xn, precision=hp) + bk[None, :, None]
  v = jnp.einsum('oc,bcn->bon', wv, xn, precision=hp) + bv[None, :, None]

  hid = wq.shape[0]
  d = hid // num_heads
  scale = float(d) ** (-0.25)

  def split_heads(t):  # 'b (h d) n -> (b h) d n'
    return t.reshape(b, num_heads, d, n).reshape(b * num_heads, d, n)

  q, k, v = split_heads(q), split_heads(k), split_heads(v)
  attn = jnp.einsum('bdi,bdj->bij', q * scale, k * scale, precision=hp)
  attn = jax.nn.softmax(attn, axis=-1)
  out = jnp.einsum('bij,bdj->bdi', attn, v, precision=hp)
  out = out.reshape(b, num_heads * d, n)                  # '(b h) d n -> b (h d) n'
  out = jnp.einsum('oc,bcn->bon', wo, out, precision=hp) + bo[None, :, None]
  out = out.reshape(b, wo.shape[0], *spatial)
  if out.shape == x.shape:
    out = x.astype(jnp.float32) + out
  return out


if __name__ == "__main__":
  key = jax.random.PRNGKey(0)

  # Small shapes consistent with the module defaults:
  #   norm_groups=32  => in_channels must be a multiple of 32.
  #   spatial 16x16   => flattened sequence N = 256 (lane-dense multiple of 128).
  B = 2
  C = 32
  H_sp, W_sp = 16, 16
  num_groups = 32
  num_heads = 2
  ch_per_head = 32
  hid = num_heads * ch_per_head          # 64
  C_out = C                              # residual path active

  ks = jax.random.split(key, 12)
  x = jax.random.normal(ks[0], (B, C, H_sp, W_sp), dtype=jnp.float32)
  gamma = 1.0 + 0.05 * jax.random.normal(ks[1], (C,), dtype=jnp.float32)
  beta = 0.05 * jax.random.normal(ks[2], (C,), dtype=jnp.float32)

  def winit(k, shape, fan_in):
    return jax.random.normal(k, shape, dtype=jnp.float32) / np.sqrt(fan_in)

  wq = winit(ks[3], (hid, C), C)
  bq = 0.02 * jax.random.normal(ks[4], (hid,), dtype=jnp.float32)
  wk = winit(ks[5], (hid, C), C)
  bk = 0.02 * jax.random.normal(ks[6], (hid,), dtype=jnp.float32)
  wv = winit(ks[7], (hid, C), C)
  bv = 0.02 * jax.random.normal(ks[8], (hid,), dtype=jnp.float32)
  # NOTE: the PyTorch module zero-initializes to_out (zero_module); random
  # weights are used here so the kernel's output-projection path is exercised.
  wo = winit(ks[9], (C_out, hid), hid)
  bo = 0.02 * jax.random.normal(ks[10], (C_out,), dtype=jnp.float32)

  out = medfusion_linear_attention(
      x, gamma, beta, wq, bq, wk, bk, wv, bv, wo, bo,
      num_heads=num_heads, num_groups=num_groups)
  out = jax.block_until_ready(out)

  ref = _reference_forward(
      x, gamma, beta, wq, bq, wk, bk, wv, bv, wo, bo,
      num_heads=num_heads, num_groups=num_groups)

  # Tolerance accommodates MXU f32-pass differences across TPU generations.
  np.testing.assert_allclose(np.asarray(out), np.asarray(ref),
                             atol=5e-3, rtol=5e-3)
  print("KERNEL_OK")
</pallas_src>

<mosaic_0001>
module attributes {stable_mosaic.version = 11 : i64} {
  func.func @_linear_transformer_kernel(%arg0: i32, %arg1: memref<1x32x256xf32, #tpu.memory_space<vmem>>, %arg2: memref<32x32xf32, #tpu.memory_space<vmem>>, %arg3: memref<32x1xf32, #tpu.memory_space<vmem>>, %arg4: memref<32x1xf32, #tpu.memory_space<vmem>>, %arg5: memref<64x32xf32, #tpu.memory_space<vmem>>, %arg6: memref<64x1xf32, #tpu.memory_space<vmem>>, %arg7: memref<64x32xf32, #tpu.memory_space<vmem>>, %arg8: memref<64x1xf32, #tpu.memory_space<vmem>>, %arg9: memref<64x32xf32, #tpu.memory_space<vmem>>, %arg10: memref<64x1xf32, #tpu.memory_space<vmem>>, %arg11: memref<32x64xf32, #tpu.memory_space<vmem>>, %arg12: memref<32x1xf32, #tpu.memory_space<vmem>>, %arg13: memref<1x32x256xf32, #tpu.memory_space<vmem>>, %arg14: memref<64x256xf32, #tpu.memory_space<vmem>>) attributes {dimension_semantics = [#tpu.dimension_semantics<parallel>], iteration_bounds = array<i64: 2>, scalar_prefetch = 0 : i64, scratch_operands = 1 : i64, tpu.core_type = #tpu.core_type<tc>, window_params = [{transform_indices = @transform_0, window_bounds = array<i64: 1, 32, 256>}, {pipeline_mode = #tpu.pipeline_mode<synchronous>, transform_indices = @transform_1, window_bounds = array<i64: 32, 32>}, {pipeline_mode = #tpu.pipeline_mode<synchronous>, transform_indices = @transform_2, window_bounds = array<i64: 32, 1>}, {pipeline_mode = #tpu.pipeline_mode<synchronous>, transform_indices = @transform_3, window_bounds = array<i64: 32, 1>}, {pipeline_mode = #tpu.pipeline_mode<synchronous>, transform_indices = @transform_4, window_bounds = array<i64: 64, 32>}, {pipeline_mode = #tpu.pipeline_mode<synchronous>, transform_indices = @transform_5, window_bounds = array<i64: 64, 1>}, {pipeline_mode = #tpu.pipeline_mode<synchronous>, transform_indices = @transform_6, window_bounds = array<i64: 64, 32>}, {pipeline_mode = #tpu.pipeline_mode<synchronous>, transform_indices = @transform_7, window_bounds = array<i64: 64, 1>}, {pipeline_mode = #tpu.pipeline_mode<synchronous>, transform_indices = @transform_8, window_bounds = array<i64: 64, 32>}, {pipeline_mode = #tpu.pipeline_mode<synchronous>, transform_indices = @transform_9, window_bounds = array<i64: 64, 1>}, {pipeline_mode = #tpu.pipeline_mode<synchronous>, transform_indices = @transform_10, window_bounds = array<i64: 32, 64>}, {pipeline_mode = #tpu.pipeline_mode<synchronous>, transform_indices = @transform_11, window_bounds = array<i64: 32, 1>}, {transform_indices = @transform_12, window_bounds = array<i64: 1, 32, 256>}]} {
    %c0 = arith.constant 0 : index
    %c0_0 = arith.constant 0 : index
    %c0_1 = arith.constant 0 : index
    %0 = vector.load %arg1[%c0, %c0_0, %c0_1] : memref<1x32x256xf32, #tpu.memory_space<vmem>>, vector<1x32x256xf32>
    %1 = vector.shape_cast %0 : vector<1x32x256xf32> to vector<32x256xf32>
    %cst = arith.constant dense<0.000000e+00> : vector<32xf32>
    %2 = vector.multi_reduction <add>, %1, %cst [1] : vector<32x256xf32> to vector<32xf32>
    %3 = vector.shape_cast %2 : vector<32xf32> to vector<32x1xf32>
    %4 = arith.mulf %1, %1 : vector<32x256xf32>
    %cst_2 = arith.constant dense<0.000000e+00> : vector<32xf32>
    %5 = vector.multi_reduction <add>, %4, %cst_2 [1] : vector<32x256xf32> to vector<32xf32>
    %6 = vector.shape_cast %5 : vector<32xf32> to vector<32x1xf32>
    %c0_3 = arith.constant 0 : index
    %c0_4 = arith.constant 0 : index
    %7 = vector.load %arg2[%c0_3, %c0_4] : memref<32x32xf32, #tpu.memory_space<vmem>>, vector<32x32xf32>
    %cst_5 = arith.constant dense<0.000000e+00> : vector<32x1xf32>
    %8 = tpu.matmul %7, %3, %cst_5 {dimension_numbers = #tpu.dot_dimension_numbers<[1], [0], [0], [1], [0, 0, 1, 1], [], []>} : vector<32x32xf32>, vector<32x1xf32>, vector<32x1xf32> -> vector<32x1xf32>
    %cst_6 = arith.constant 3.906250e-03 : f32
    %9 = vector.broadcast %cst_6 : f32 to vector<32x1xf32>
    %10 = arith.mulf %8, %9 : vector<32x1xf32>
    %cst_7 = arith.constant dense<0.000000e+00> : vector<32x1xf32>
    %11 = tpu.matmul %7, %6, %cst_7 {dimension_numbers = #tpu.dot_dimension_numbers<[1], [0], [0], [1], [0, 0, 1, 1], [], []>} : vector<32x32xf32>, vector<32x1xf32>, vector<32x1xf32> -> vector<32x1xf32>
    %cst_8 = arith.constant 3.906250e-03 : f32
    %12 = vector.broadcast %cst_8 : f32 to vector<32x1xf32>
    %13 = arith.mulf %11, %12 : vector<32x1xf32>
    %14 = arith.mulf %10, %10 : vector<32x1xf32>
    %15 = arith.subf %13, %14 : vector<32x1xf32>
    %cst_9 = arith.constant 0.000000e+00 : f32
    %16 = vector.broadcast %cst_9 : f32 to vector<32x1xf32>
    %17 = arith.maximumf %15, %16 : vector<32x1xf32>
    %18 = vector.broadcast %10 : vector<32x1xf32> to vector<32x256xf32>
    %19 = arith.subf %1, %18 : vector<32x256xf32>
    %cst_10 = arith.constant 9.99999974E-6 : f32
    %20 = vector.broadcast %cst_10 : f32 to vector<32x1xf32>
    %21 = arith.addf %17, %20 : vector<32x1xf32>
    %22 = math.rsqrt %21 : vector<32x1xf32>
    %23 = vector.broadcast %22 : vector<32x1xf32> to vector<32x256xf32>
    %24 = arith.mulf %19, %23 : vector<32x256xf32>
    %c0_11 = arith.constant 0 : index
    %c0_12 = arith.constant 0 : index
    %25 = vector.load %arg3[%c0_11, %c0_12] : memref<32x1xf32, #tpu.memory_space<vmem>>, vector<32x1xf32>
    %26 = vector.broadcast %25 : vector<32x1xf32> to vector<32x256xf32>
    %27 = arith.mulf %24, %26 : vector<32x256xf32>
    %c0_13 = arith.constant 0 : index
    %c0_14 = arith.constant 0 : index
    %28 = vector.load %arg4[%c0_13, %c0_14] : memref<32x1xf32, #tpu.memory_space<vmem>>, vector<32x1xf32>
    %29 = vector.broadcast %28 : vector<32x1xf32> to vector<32x256xf32>
    %30 = arith.addf %27, %29 : vector<32x256xf32>
    %c0_15 = arith.constant 0 : index
    %c0_16 = arith.constant 0 : index
    %31 = vector.load %arg5[%c0_15, %c0_16] : memref<64x32xf32, #tpu.memory_space<vmem>>, vector<64x32xf32>
    %cst_17 = arith.constant dense<0.000000e+00> : vector<64x256xf32>
    %32 = tpu.matmul %31, %30, %cst_17 {dimension_numbers = #tpu.dot_dimension_numbers<[1], [0], [0], [1], [0, 0, 1, 1], [], []>} : vector<64x32xf32>, vector<32x256xf32>, vector<64x256xf32> -> vector<64x256xf32>
    %c0_18 = arith.constant 0 : index
    %c0_19 = arith.constant 0 : index
    %33 = vector.load %arg6[%c0_18, %c0_19] : memref<64x1xf32, #tpu.memory_space<vmem>>, vector<64x1xf32>
    %34 = vector.broadcast %33 : vector<64x1xf32> to vector<64x256xf32>
    %35 = arith.addf %32, %34 : vector<64x256xf32>
    %c0_20 = arith.constant 0 : index
    %c0_21 = arith.constant 0 : index
    %36 = vector.load %arg7[%c0_20, %c0_21] : memref<64x32xf32, #tpu.memory_space<vmem>>, vector<64x32xf32>
    %cst_22 = arith.constant dense<0.000000e+00> : vector<64x256xf32>
    %37 = tpu.matmul %36, %30, %cst_22 {dimension_numbers = #tpu.dot_dimension_numbers<[1], [0], [0], [1], [0, 0, 1, 1], [], []>} : vector<64x32xf32>, vector<32x256xf32>, vector<64x256xf32> -> vector<64x256xf32>
    %c0_23 = arith.constant 0 : index
    %c0_24 = arith.constant 0 : index
    %38 = vector.load %arg8[%c0_23, %c0_24] : memref<64x1xf32, #tpu.memory_space<vmem>>, vector<64x1xf32>
    %39 = vector.broadcast %38 : vector<64x1xf32> to vector<64x256xf32>
    %40 = arith.addf %37, %39 : vector<64x256xf32>
    %c0_25 = arith.constant 0 : index
    %c0_26 = arith.constant 0 : index
    %41 = vector.load %arg9[%c0_25, %c0_26] : memref<64x32xf32, #tpu.memory_space<vmem>>, vector<64x32xf32>
    %cst_27 = arith.constant dense<0.000000e+00> : vector<64x256xf32>
    %42 = tpu.matmul %41, %30, %cst_27 {dimension_numbers = #tpu.dot_dimension_numbers<[1], [0], [0], [1], [0, 0, 1, 1], [], []>} : vector<64x32xf32>, vector<32x256xf32>, vector<64x256xf32> -> vector<64x256xf32>
    %c0_28 = arith.constant 0 : index
    %c0_29 = arith.constant 0 : index
    %43 = vector.load %arg10[%c0_28, %c0_29] : memref<64x1xf32, #tpu.memory_space<vmem>>, vector<64x1xf32>
    %44 = vector.broadcast %43 : vector<64x1xf32> to vector<64x256xf32>
    %45 = arith.addf %42, %44 : vector<64x256xf32>
    %cst_30 = arith.constant 0.420448214 : f32
    %46 = vector.broadcast %cst_30 : f32 to vector<64x256xf32>
    %47 = arith.mulf %35, %46 : vector<64x256xf32>
    %cst_31 = arith.constant 0.420448214 : f32
    %48 = vector.broadcast %cst_31 : f32 to vector<64x256xf32>
    %49 = arith.mulf %40, %48 : vector<64x256xf32>
    %50 = vector.extract_strided_slice %47 {offsets = [0, 0], sizes = [32, 256], strides = [1, 1]} : vector<64x256xf32> to vector<32x256xf32>
    %51 = vector.extract_strided_slice %49 {offsets = [0, 0], sizes = [32, 256], strides = [1, 1]} : vector<64x256xf32> to vector<32x256xf32>
    %52 = vector.extract_strided_slice %45 {offsets = [0, 0], sizes = [32, 256], strides = [1, 1]} : vector<64x256xf32> to vector<32x256xf32>
    %cst_32 = arith.constant dense<0.000000e+00> : vector<256x256xf32>
    %53 = tpu.matmul %50, %51, %cst_32 {dimension_numbers = #tpu.dot_dimension_numbers<[0], [0], [1], [1], [0, 1, 1, 1], [], []>} : vector<32x256xf32>, vector<32x256xf32>, vector<256x256xf32> -> vector<256x256xf32>
    %cst_33 = arith.constant dense<0xFF800000> : vector<256xf32>
    %54 = vector.multi_reduction <maximumf>, %53, %cst_33 [1] : vector<256x256xf32> to vector<256xf32>
    %55 = vector.shape_cast %54 : vector<256xf32> to vector<256x1xf32>
    %56 = vector.broadcast %55 : vector<256x1xf32> to vector<256x256xf32>
    %57 = arith.subf %53, %56 : vector<256x256xf32>
    %58 = math.exp %57 : vector<256x256xf32>
    %cst_34 = arith.constant dense<0.000000e+00> : vector<256xf32>
    %59 = vector.multi_reduction <add>, %58, %cst_34 [1] : vector<256x256xf32> to vector<256xf32>
    %60 = vector.shape_cast %59 : vector<256xf32> to vector<256x1xf32>
    %61 = tpu.reciprocal %60 : vector<256x1xf32> -> vector<256x1xf32>
    %62 = vector.broadcast %61 : vector<256x1xf32> to vector<256x256xf32>
    %63 = arith.mulf %58, %62 : vector<256x256xf32>
    %cst_35 = arith.constant dense<0.000000e+00> : vector<32x256xf32>
    %64 = tpu.matmul %52, %63, %cst_35 {dimension_numbers = #tpu.dot_dimension_numbers<[1], [1], [0], [0], [0, 0, 1, 0], [], []>} : vector<32x256xf32>, vector<256x256xf32>, vector<32x256xf32> -> vector<32x256xf32>
    %c0_36 = arith.constant 0 : index
    %c0_37 = arith.constant 0 : index
    %65 = vector.load %arg14[%c0_36, %c0_37] : memref<64x256xf32, #tpu.memory_space<vmem>>, vector<32x256xf32>
    tpu.vector_store %arg14[%c0_36, %c0_37], %64 {strides = array<i32>} : memref<64x256xf32, #tpu.memory_space<vmem>>, vector<32x256xf32>,
    %66 = vector.extract_strided_slice %47 {offsets = [32, 0], sizes = [32, 256], strides = [1, 1]} : vector<64x256xf32> to vector<32x256xf32>
    %67 = vector.extract_strided_slice %49 {offsets = [32, 0], sizes = [32, 256], strides = [1, 1]} : vector<64x256xf32> to vector<32x256xf32>
    %68 = vector.extract_strided_slice %45 {offsets = [32, 0], sizes = [32, 256], strides = [1, 1]} : vector<64x256xf32> to vector<32x256xf32>
    %cst_38 = arith.constant dense<0.000000e+00> : vector<256x256xf32>
    %69 = tpu.matmul %66, %67, %cst_38 {dimension_numbers = #tpu.dot_dimension_numbers<[0], [0], [1], [1], [0, 1, 1, 1], [], []>} : vector<32x256xf32>, vector<32x256xf32>, vector<256x256xf32> -> vector<256x256xf32>
    %cst_39 = arith.constant dense<0xFF800000> : vector<256xf32>
    %70 = vector.multi_reduction <maximumf>, %69, %cst_39 [1] : vector<256x256xf32> to vector<256xf32>
    %71 = vector.shape_cast %70 : vector<256xf32> to vector<256x1xf32>
    %72 = vector.broadcast %71 : vector<256x1xf32> to vector<256x256xf32>
    %73 = arith.subf %69, %72 : vector<256x256xf32>
    %74 = math.exp %73 : vector<256x256xf32>
    %cst_40 = arith.constant dense<0.000000e+00> : vector<256xf32>
    %75 = vector.multi_reduction <add>, %74, %cst_40 [1] : vector<256x256xf32> to vector<256xf32>
    %76 = vector.shape_cast %75 : vector<256xf32> to vector<256x1xf32>
    %77 = tpu.reciprocal %76 : vector<256x1xf32> -> vector<256x1xf32>
    %78 = vector.broadcast %77 : vector<256x1xf32> to vector<256x256xf32>
    %79 = arith.mulf %74, %78 : vector<256x256xf32>
    %cst_41 = arith.constant dense<0.000000e+00> : vector<32x256xf32>
    %80 = tpu.matmul %68, %79, %cst_41 {dimension_numbers = #tpu.dot_dimension_numbers<[1], [1], [0], [0], [0, 0, 1, 0], [], []>} : vector<32x256xf32>, vector<256x256xf32>, vector<32x256xf32> -> vector<32x256xf32>
    %c32 = arith.constant 32 : index
    %c0_42 = arith.constant 0 : index
    %81 = vector.load %arg14[%c32, %c0_42] : memref<64x256xf32, #tpu.memory_space<vmem>>, vector<32x256xf32>
    tpu.vector_store %arg14[%c32, %c0_42], %80 {strides = array<i32>} : memref<64x256xf32, #tpu.memory_space<vmem>>, vector<32x256xf32>,
    %c0_43 = arith.constant 0 : index
    %c0_44 = arith.constant 0 : index
    %82 = vector.load %arg11[%c0_43, %c0_44] : memref<32x64xf32, #tpu.memory_space<vmem>>, vector<32x64xf32>
    %c0_45 = arith.constant 0 : index
    %c0_46 = arith.constant 0 : index
    %83 = vector.load %arg14[%c0_45, %c0_46] : memref<64x256xf32, #tpu.memory_space<vmem>>, vector<64x256xf32>
    %cst_47 = arith.constant dense<0.000000e+00> : vector<32x256xf32>
    %84 = tpu.matmul %82, %83, %cst_47 {dimension_numbers = #tpu.dot_dimension_numbers<[1], [0], [0], [1], [0, 0, 1, 1], [], []>} : vector<32x64xf32>, vector<64x256xf32>, vector<32x256xf32> -> vector<32x256xf32>
    %c0_48 = arith.constant 0 : index
    %c0_49 = arith.constant 0 : index
    %85 = vector.load %arg12[%c0_48, %c0_49] : memref<32x1xf32, #tpu.memory_space<vmem>>, vector<32x1xf32>
    %86 = vector.broadcast %85 : vector<32x1xf32> to vector<32x256xf32>
    %87 = arith.addf %84, %86 : vector<32x256xf32>
    %88 = arith.addf %87, %1 : vector<32x256xf32>
    %c0_50 = arith.constant 0 : index
    %c0_51 = arith.constant 0 : index
    %c0_52 = arith.constant 0 : index
    %89 = vector.load %arg13[%c0_50, %c0_51, %c0_52] : memref<1x32x256xf32, #tpu.memory_space<vmem>>, vector<1x32x256xf32>
    %90 = vector.shape_cast %89 : vector<1x32x256xf32> to vector<32x256xf32>
    %91 = vector.shape_cast %88 : vector<32x256xf32> to vector<1x32x256xf32>
    tpu.vector_store %arg13[%c0_50, %c0_51, %c0_52], %91 {strides = array<i32>} : memref<1x32x256xf32, #tpu.memory_space<vmem>>, vector<1x32x256xf32>,
    return
  }
  func.func @transform_0(%arg0: i32) -> (i32, i32, i32) {
    %c0_i32 = arith.constant 0 : i32
    %c0_i32_0 = arith.constant 0 : i32
    %c0_i32_1 = arith.constant 0 : i32
    return %arg0, %c0_i32, %c0_i32_0 : i32, i32, i32
  }
  func.func @transform_1(%arg0: i32) -> (i32, i32) {
    %c0_i32 = arith.constant 0 : i32
    %c0_i32_0 = arith.constant 0 : i32
    %c0_i32_1 = arith.constant 0 : i32
    return %c0_i32, %c0_i32_0 : i32, i32
  }
  func.func @transform_2(%arg0: i32) -> (i32, i32) {
    %c0_i32 = arith.constant 0 : i32
    %c0_i32_0 = arith.constant 0 : i32
    %c0_i32_1 = arith.constant 0 : i32
    return %c0_i32, %c0_i32_0 : i32, i32
  }
  func.func @transform_3(%arg0: i32) -> (i32, i32) {
    %c0_i32 = arith.constant 0 : i32
    %c0_i32_0 = arith.constant 0 : i32
    %c0_i32_1 = arith.constant 0 : i32
    return %c0_i32, %c0_i32_0 : i32, i32
  }
  func.func @transform_4(%arg0: i32) -> (i32, i32) {
    %c0_i32 = arith.constant 0 : i32
    %c0_i32_0 = arith.constant 0 : i32
    %c0_i32_1 = arith.constant 0 : i32
    return %c0_i32, %c0_i32_0 : i32, i32
  }
  func.func @transform_5(%arg0: i32) -> (i32, i32) {
    %c0_i32 = arith.constant 0 : i32
    %c0_i32_0 = arith.constant 0 : i32
    %c0_i32_1 = arith.constant 0 : i32
    return %c0_i32, %c0_i32_0 : i32, i32
  }
  func.func @transform_6(%arg0: i32) -> (i32, i32) {
    %c0_i32 = arith.constant 0 : i32
    %c0_i32_0 = arith.constant 0 : i32
    %c0_i32_1 = arith.constant 0 : i32
    return %c0_i32, %c0_i32_0 : i32, i32
  }
  func.func @transform_7(%arg0: i32) -> (i32, i32) {
    %c0_i32 = arith.constant 0 : i32
    %c0_i32_0 = arith.constant 0 : i32
    %c0_i32_1 = arith.constant 0 : i32
    return %c0_i32, %c0_i32_0 : i32, i32
  }
  func.func @transform_8(%arg0: i32) -> (i32, i32) {
    %c0_i32 = arith.constant 0 : i32
    %c0_i32_0 = arith.constant 0 : i32
    %c0_i32_1 = arith.constant 0 : i32
    return %c0_i32, %c0_i32_0 : i32, i32
  }
  func.func @transform_9(%arg0: i32) -> (i32, i32) {
    %c0_i32 = arith.constant 0 : i32
    %c0_i32_0 = arith.constant 0 : i32
    %c0_i32_1 = arith.constant 0 : i32
    return %c0_i32, %c0_i32_0 : i32, i32
  }
  func.func @transform_10(%arg0: i32) -> (i32, i32) {
    %c0_i32 = arith.constant 0 : i32
    %c0_i32_0 = arith.constant 0 : i32
    %c0_i32_1 = arith.constant 0 : i32
    return %c0_i32, %c0_i32_0 : i32, i32
  }
  func.func @transform_11(%arg0: i32) -> (i32, i32) {
    %c0_i32 = arith.constant 0 : i32
    %c0_i32_0 = arith.constant 0 : i32
    %c0_i32_1 = arith.constant 0 : i32
    return %c0_i32, %c0_i32_0 : i32, i32
  }
  func.func @transform_12(%arg0: i32) -> (i32, i32, i32) {
    %c0_i32 = arith.constant 0 : i32
    %c0_i32_0 = arith.constant 0 : i32
    %c0_i32_1 = arith.constant 0 : i32
    return %arg0, %c0_i32, %c0_i32_0 : i32, i32, i32
  }
}

</mosaic_0001>

<bundles_post_ra>
// kernel: tpu_custom_call.1
= control target key start
LH: loop header
LB: loop body
LE: loop exit
PB: predicated region body
PF: predicated region fallthrough
CT: control target
= control target key end

     0   :  { %s7231_s0 = inlined_call_operand.hbm [shape: f32[2,32,256], index: 0, kind: input, shape index: {}]   ;;  %s7232_s1 = inlined_call_operand.hbm [shape: f32[32,32], index: 1, kind: input, shape index: {}]   ;;  %s7233_s2 = inlined_call_operand.hbm [shape: f32[32,1], index: 2, kind: input, shape index: {}]   ;;  %s7234_s3 = inlined_call_operand.hbm [shape: f32[32,1], index: 3, kind: input, shape index: {}]   ;;  %s7235_s4 = inlined_call_operand.hbm [shape: f32[64,32], index: 4, kind: input, shape index: {}]   ;;  %s7236_s5 = inlined_call_operand.hbm [shape: f32[64,1], index: 5, kind: input, shape index: {}]   ;;  %s7237_s6 = inlined_call_operand.hbm [shape: f32[64,32], index: 6, kind: input, shape index: {}]   ;;  %s7238_s7 = inlined_call_operand.hbm [shape: f32[64,1], index: 7, kind: input, shape index: {}]   ;;  %s7239_s8 = inlined_call_operand.hbm [shape: f32[64,32], index: 8, kind: input, shape index: {}]   ;;  %s7240_s9 = inlined_call_operand.hbm [shape: f32[64,1], index: 9, kind: input, shape index: {}]   ;;  %s7241_s10 = inlined_call_operand.hbm [shape: f32[32,64], index: 10, kind: input, shape index: {}]   ;;  %s7242_s11 = inlined_call_operand.hbm [shape: f32[32,1], index: 11, kind: input, shape index: {}]   ;;  %s7243_s12 = inlined_call_operand.hbm [shape: f32[2,32,256], index: 12, kind: output, shape index: {}]  }
   0x1   :  { %7377 = sst [smem:[#allocation114_spill]] %s7231_s0 }
   0x2   :  { %7378 = sst [smem:[#allocation115_spill]] %s7232_s1 }
   0x3   :  { %7379 = sst [smem:[#allocation116_spill]] %s7233_s2 }
   0x4   :  { %7380 = sst [smem:[#allocation117_spill]] %s7243_s12 }
   0x5   :  { %17 = vsyncpa [#allocation4], 0 }
   0x6   :  { %19 = vsyncpa [#allocation4 + $0x1], 0 }
   0x7   :  { %20 = vsyncpa [#allocation7], 0 }
   0x8   :  { %21 = vsyncpa [#allocation10], 0 }
   0x9   :  { %22 = vsyncpa [#allocation13], 0 }
   0xa   :  { %23 = vsyncpa [#allocation16], 0 }
   0xb   :  { %24 = vsyncpa [#allocation19], 0 }
   0xc   :  { %25 = vsyncpa [#allocation22], 0 }
   0xd   :  { %26 = vsyncpa [#allocation5], 0 }
   0xe   :  { %28 = vsyncpa [#allocation5 + $0x1], 0  ;;  %s5385_s21 = smov 0   ;;  %s5387_s22 = smov 0  }
   0xf   :  { %s5389_s23 = smov 0   ;;  %s5391_s24 = smov 0  }
  0x10 LB: > { %s5299_s25 = smov [#allocation6]   ;;  %s5406_s27 = sadd.s32 4294967295, %s5297_s24   ;;  %s5297_s24 = sphi %s5391_s24, %s7667_s24   ;;  %s5293_s23 = sphi %s5389_s23, %s7666_s23   ;;  %s5289_s22 = sphi %s5387_s22, %s7665_s22   ;;  %s5285_s21 = sphi %s5385_s21, %s7664_s21  }
  0x11   : > { %s334_s26 = sshll.u32 %s5299_s25, 4  ;;  %7381 = sst [smem:[#allocation32_spill]] %s5406_s27  ;;  %s5411_s26 = int_to_ptr.vmem [resolvable:$true] %s334_s26 }
  0x12   : > { %p3921_p0 = scmp.ge.s32.totalorder %s5297_s24, 1  ;;  %p7250_p1 = scmp.eq.s32.totalorder %s5406_s27, 0 }
  0x13   : > { %p322_p2 = scmp.lt.s32.totalorder %s5297_s24, 3  ;;  %s5300_s29 = smov [#allocation9]  }
  0x14   : > { %s360_s30 = sshll.u32 %s5300_s29, 4  ;;  %s5301_s14 = smov [#allocation12]   ;;  %s5426_s30 = int_to_ptr.vmem [resolvable:$true] %s360_s30 }
  0x15   : > { %p5413_p3 = pnand %p3921_p0, %p322_p2  ;;  %s386_s15 = sshll.u32 %s5301_s14, 4  ;;  %s5428_s15 = int_to_ptr.vmem [resolvable:$true] %s386_s15 }
  0x16   : > { %s7385_s1 = sld [smem:[#allocation115_spill]] }
  0x17   : > { %s7382_s28 = scalar_select %p5413_p3, 1, 0 }
  0x18   : > { %p4350_p5 = pneg %p5413_p3 }
  0x19   : > { %7383 = sst [smem:[#allocation33_spill]] %s7382_s28 }
  0x1a   : > { %p5422_p6 = pnand %p4350_p5, %p7250_p1 }
  0x1c   : > { %s4869_s18 = scalar_lea.hbm %s7385_s1, 512  ;;  %p5438_p8 = pneg %p5422_p6 }
  0x1d   : > { %p4870_p7 = scmp.ne.s32.totalorder %s7385_s1, %s4869_s18  ;;  %p4876_p11 = scmp.lt.u32.totalorder %s4869_s18, %s7385_s1 }
  0x1f   : > { %p4872_p9 = pnand %p5438_p8, %p4870_p7 }
  0x21   : > { %p4873_p10 = pneg %p4872_p9 }
  0x23   : > { %p4878_p12 = pnand %p4876_p11, %p4873_p10 }
  0x25   : > { %4881 = shalt.err (!%p4878_p12)
}
  0x26   : > { %s4882_s16 = scalar_lea.vmem %s5411_s26, 512  ;;  %p4890_p5 = scmp.lt.s32.totalorder %s5411_s26, %s5411_s26 }
  0x27   : > { %p4883_p13 = scmp.ne.s32.totalorder %s5411_s26, %s4882_s16  ;;  %p4891_p4 = scmp.lt.s32.totalorder %s4882_s16, %s4882_s16 }
  0x29   : > { %p4885_p0 = pnand %p4883_p13, %p5438_p8  ;;  %p4892_p7 = por %p4891_p4, %p4890_p5 }
  0x2b   : > { %p4886_p2 = pneg %p4885_p0 }
  0x2d   : > { %p4893_p9 = pnand %p4892_p7, %p4886_p2 }
  0x2f   : > { %4896 = shalt.err (!%p4893_p9)
}
  0x30   : > { %s5302_s17 = smov 128   ;;  %s5303_s18 = smov 8  }
  0x31   : > { %4353 = dma.hbm_to_vmem [thread:$0]  (!%p5422_p6), %s7385_s1, 512, %s5411_s26, [#allocation7], %s5302_s17, %s5302_s17, %s5303_s18  }
  0x32   : > { %s4897_s16 = scalar_lea.hbm %s7234_s3, 512 }
  0x33   : > { %p4898_p4 = scmp.ne.s32.totalorder %s7234_s3, %s4897_s16  ;;  %p4904_p12 = scmp.lt.u32.totalorder %s4897_s16, %s7234_s3 }
  0x35   : > { %p4900_p10 = pnand %p4898_p4, %p5438_p8 }
  0x37   : > { %p4901_p11 = pneg %p4900_p10 }
  0x39   : > { %p4906_p13 = pnand %p4904_p12, %p4901_p11 }
  0x3b   : > { %4909 = shalt.err (!%p4906_p13)
}
  0x3c   : > { %s4910_s26 = scalar_lea.vmem %s5426_s30, 512  ;;  %p4918_p7 = scmp.lt.s32.totalorder %s5426_s30, %s5426_s30 }
  0x3d   : > { %p4911_p0 = scmp.ne.s32.totalorder %s5426_s30, %s4910_s26  ;;  %p4919_p9 = scmp.lt.s32.totalorder %s4910_s26, %s4910_s26 }
  0x3f   : > { %p4913_p2 = pnand %p4911_p0, %p5438_p8  ;;  %p4920_p4 = por %p4919_p9, %p4918_p7 }
  0x41   : > { %p4914_p5 = pneg %p4913_p2 }
  0x43   : > { %p4921_p10 = pnand %p4920_p4, %p4914_p5 }
  0x45   : > { %4924 = shalt.err (!%p4921_p10)
}
  0x46   : > { %4359 = dma.hbm_to_vmem [thread:$0]  (!%p5422_p6), %s7234_s3, 512, %s5426_s30, [#allocation10], %s5302_s17, %s5302_s17, %s5303_s18  }
  0x47   : > { %s4925_s19 = scalar_lea.hbm %s7236_s5, 1024 }
  0x48   : > { %p4926_p11 = scmp.ne.s32.totalorder %s7236_s5, %s4925_s19  ;;  %p4932_p0 = scmp.lt.u32.totalorder %s4925_s19, %s7236_s5 }
  0x4a   : > { %p4928_p12 = pnand %p4926_p11, %p5438_p8 }
  0x4c   : > { %p4929_p13 = pneg %p4928_p12 }
  0x4e   : > { %p4934_p2 = pnand %p4932_p0, %p4929_p13 }
  0x50   : > { %4937 = shalt.err (!%p4934_p2)
}
  0x51   : > { %s4938_s30 = scalar_lea.vmem %s5428_s15, 1024  ;;  %p4946_p4 = scmp.lt.s32.totalorder %s5428_s15, %s5428_s15 }
  0x52   : > { %p4939_p5 = scmp.ne.s32.totalorder %s5428_s15, %s4938_s30  ;;  %p4947_p10 = scmp.lt.s32.totalorder %s4938_s30, %s4938_s30 }
  0x54   : > { %p4941_p7 = pnand %p4939_p5, %p5438_p8  ;;  %p4948_p11 = por %p4947_p10, %p4946_p4 }
  0x56   : > { %p4942_p9 = pneg %p4941_p7 }
  0x58   : > { %p4949_p12 = pnand %p4948_p11, %p4942_p9 }
  0x5a   : > { %4952 = shalt.err (!%p4949_p12)
}
  0x5b   : > { %4365 = dma.hbm_to_vmem [thread:$0]  (!%p5422_p6), %s7236_s5, 1024, %s5428_s15, [#allocation13], %s5302_s17, %s5302_s17, %s5303_s18  }
  0x5c   : > { %s5304_s12 = smov [#allocation15]   ;;  %s5305_s28 = smov [#allocation18]  }
  0x5d   : > { %s412_s27 = sshll.u32 %s5304_s12, 4  ;;  %s438_s19 = sshll.u32 %s5305_s28, 4  ;;  %s413_s27 = int_to_ptr.vmem [resolvable:$true] %s412_s27  ;;  %s439_s19 = int_to_ptr.vmem [resolvable:$true] %s438_s19 }
  0x5e   : > { %s4953_s14 = scalar_lea.hbm %s7238_s7, 1024 }
  0x5f   : > { %p4954_p13 = scmp.ne.s32.totalorder %s7238_s7, %s4953_s14  ;;  %p4960_p5 = scmp.lt.u32.totalorder %s4953_s14, %s7238_s7 }
  0x61   : > { %p4956_p0 = pnand %p4954_p13, %p5438_p8 }
  0x63   : > { %p4957_p2 = pneg %p4956_p0 }
  0x65   : > { %p4962_p7 = pnand %p4960_p5, %p4957_p2 }
  0x67   : > { %4965 = shalt.err (!%p4962_p7)
}
  0x68   : > { %s4966_s15 = scalar_lea.vmem %s413_s27, 1024  ;;  %p4974_p11 = scmp.lt.s32.totalorder %s413_s27, %s413_s27 }
  0x69   : > { %p4967_p9 = scmp.ne.s32.totalorder %s413_s27, %s4966_s15  ;;  %p4975_p12 = scmp.lt.s32.totalorder %s4966_s15, %s4966_s15 }
  0x6b   : > { %p4969_p4 = pnand %p4967_p9, %p5438_p8  ;;  %p4976_p1 = por %p4975_p12, %p4974_p11 }
  0x6d   : > { %p4970_p10 = pneg %p4969_p4 }
  0x6f   : > { %p4977_p3 = pnand %p4976_p1, %p4970_p10 }
  0x71   : > { %4980 = shalt.err (!%p4977_p3)
}
  0x72   : > { %4371 = dma.hbm_to_vmem [thread:$0]  (!%p5422_p6), %s7238_s7, 1024, %s413_s27, [#allocation16], %s5302_s17, %s5302_s17, %s5303_s18  }
  0x73   : > { %s4981_s20 = scalar_lea.hbm %s7240_s9, 1024 }
  0x74   : > { %p4982_p1 = scmp.ne.s32.totalorder %s7240_s9, %s4981_s20  ;;  %p4988_p0 = scmp.lt.u32.totalorder %s4981_s20, %s7240_s9 }
  0x76   : > { %p4984_p3 = pnand %p4982_p1, %p5438_p8 }
  0x78   : > { %p4985_p13 = pneg %p4984_p3 }
  0x7a   : > { %p4990_p2 = pnand %p4988_p0, %p4985_p13 }
  0x7c   : > { %4993 = shalt.err (!%p4990_p2)
}
  0x7d   : > { %s4994_s26 = scalar_lea.vmem %s439_s19, 1024  ;;  %p5002_p4 = scmp.lt.s32.totalorder %s439_s19, %s439_s19 }
  0x7e   : > { %p4995_p5 = scmp.ne.s32.totalorder %s439_s19, %s4994_s26  ;;  %p5003_p10 = scmp.lt.s32.totalorder %s4994_s26, %s4994_s26 }
  0x80   : > { %p4997_p7 = pnand %p4995_p5, %p5438_p8  ;;  %p5004_p11 = por %p5003_p10, %p5002_p4 }
  0x82   : > { %p4998_p9 = pneg %p4997_p7 }
  0x84   : > { %p5005_p12 = pnand %p5004_p11, %p4998_p9 }
  0x86   : > { %5008 = shalt.err (!%p5005_p12)
}
  0x87   : > { %4377 = dma.hbm_to_vmem [thread:$0]  (!%p5422_p6), %s7240_s9, 1024, %s439_s19, [#allocation19], %s5302_s17, %s5302_s17, %s5303_s18  }
  0x88   : > { %s5306_s1 = smov [#allocation8]   ;;  %s5307_s12 = smov [#allocation11]  }
  0x89   : > { %s347_s0 = sshll.u32 %s5306_s1, 4  ;;  %s373_s28 = sshll.u32 %s5307_s12, 4  ;;  %s348_s0 = int_to_ptr.vmem [resolvable:$true] %s347_s0  ;;  %s374_s28 = int_to_ptr.vmem [resolvable:$true] %s373_s28 }
  0x8a   : > { %s7387_s2 = sld [smem:[#allocation116_spill]] }
  0x90   : > { %s5009_s14 = scalar_lea.hbm %s7387_s2, 512 }
  0x91   : > { %p5010_p1 = scmp.ne.s32.totalorder %s7387_s2, %s5009_s14  ;;  %p5016_p0 = scmp.lt.u32.totalorder %s5009_s14, %s7387_s2 }
  0x93   : > { %p5012_p3 = pnand %p5010_p1, %p5438_p8 }
  0x95   : > { %p5013_p13 = pneg %p5012_p3 }
  0x97   : > { %p5018_p2 = pnand %p5016_p0, %p5013_p13 }
  0x99   : > { %5021 = shalt.err (!%p5018_p2)
}
  0x9a   : > { %s5022_s19 = scalar_lea.vmem %s348_s0, 512  ;;  %p5030_p4 = scmp.lt.s32.totalorder %s348_s0, %s348_s0 }
  0x9b   : > { %p5023_p5 = scmp.ne.s32.totalorder %s348_s0, %s5022_s19  ;;  %p5031_p10 = scmp.lt.s32.totalorder %s5022_s19, %s5022_s19 }
  0x9d   : > { %p5025_p7 = pnand %p5023_p5, %p5438_p8  ;;  %p5032_p11 = por %p5031_p10, %p5030_p4 }
  0x9f   : > { %p5026_p9 = pneg %p5025_p7 }
  0xa1   : > { %p5033_p12 = pnand %p5032_p11, %p5026_p9 }
  0xa3   : > { %5036 = shalt.err (!%p5033_p12)
}
  0xa4   : > { %4356 = dma.hbm_to_vmem [thread:$0]  (!%p5422_p6), %s7387_s2, 512, %s348_s0, [#allocation7], %s5302_s17, %s5302_s17, %s5303_s18  }
  0xa5   : > { %s5037_s29 = scalar_lea.hbm %s7235_s4, 1024 }
  0xa6   : > { %p5038_p1 = scmp.ne.s32.totalorder %s7235_s4, %s5037_s29  ;;  %p5044_p0 = scmp.lt.u32.totalorder %s5037_s29, %s7235_s4 }
  0xa8   : > { %p5040_p3 = pnand %p5038_p1, %p5438_p8 }
  0xaa   : > { %p5041_p13 = pneg %p5040_p3 }
  0xac   : > { %p5046_p2 = pnand %p5044_p0, %p5041_p13 }
  0xae   : > { %5049 = shalt.err (!%p5046_p2)
}
  0xaf   : > { %s5050_s27 = scalar_lea.vmem %s374_s28, 1024  ;;  %p5058_p4 = scmp.lt.s32.totalorder %s374_s28, %s374_s28 }
  0xb0   : > { %p5051_p5 = scmp.ne.s32.totalorder %s374_s28, %s5050_s27  ;;  %p5059_p10 = scmp.lt.s32.totalorder %s5050_s27, %s5050_s27 }
  0xb2   : > { %p5053_p7 = pnand %p5051_p5, %p5438_p8  ;;  %p5060_p11 = por %p5059_p10, %p5058_p4 }
  0xb4   : > { %p5054_p9 = pneg %p5053_p7 }
  0xb6   : > { %p5061_p12 = pnand %p5060_p11, %p5054_p9 }
  0xb8   : > { %5064 = shalt.err (!%p5061_p12)
}
  0xb9   : > { %4362 = dma.hbm_to_vmem [thread:$0]  (!%p5422_p6), %s7235_s4, 1024, %s374_s28, [#allocation10], %s5302_s17, %s5302_s17, %s5303_s18  }
  0xba   : > { %s5308_s15 = smov [#allocation14]   ;;  %s5309_s12 = smov [#allocation17]  }
  0xbb   : > { %s399_s1 = sshll.u32 %s5308_s15, 4  ;;  %s425_s20 = sshll.u32 %s5309_s12, 4  ;;  %s400_s1 = int_to_ptr.vmem [resolvable:$true] %s399_s1  ;;  %s426_s20 = int_to_ptr.vmem [resolvable:$true] %s425_s20 }
  0xbc   : > { %s5065_s16 = scalar_lea.hbm %s7237_s6, 1024 }
  0xbd   : > { %p5066_p1 = scmp.ne.s32.totalorder %s7237_s6, %s5065_s16  ;;  %p5072_p0 = scmp.lt.u32.totalorder %s5065_s16, %s7237_s6 }
  0xbf   : > { %p5068_p3 = pnand %p5066_p1, %p5438_p8 }
  0xc1   : > { %p5069_p13 = pneg %p5068_p3 }
  0xc3   : > { %p5074_p2 = pnand %p5072_p0, %p5069_p13 }
  0xc5   : > { %5077 = shalt.err (!%p5074_p2)
}
  0xc6   : > { %s5078_s28 = scalar_lea.vmem %s400_s1, 1024  ;;  %p5086_p4 = scmp.lt.s32.totalorder %s400_s1, %s400_s1 }
  0xc7   : > { %p5079_p5 = scmp.ne.s32.totalorder %s400_s1, %s5078_s28  ;;  %p5087_p10 = scmp.lt.s32.totalorder %s5078_s28, %s5078_s28 }
  0xc9   : > { %p5081_p7 = pnand %p5079_p5, %p5438_p8  ;;  %p5088_p11 = por %p5087_p10, %p5086_p4 }
  0xcb   : > { %p5082_p9 = pneg %p5081_p7 }
  0xcd   : > { %p5089_p12 = pnand %p5088_p11, %p5082_p9 }
  0xcf   : > { %5092 = shalt.err (!%p5089_p12)
}
  0xd0   : > { %4368 = dma.hbm_to_vmem [thread:$0]  (!%p5422_p6), %s7237_s6, 1024, %s400_s1, [#allocation13], %s5302_s17, %s5302_s17, %s5303_s18  }
  0xd1   : > { %s5093_s14 = scalar_lea.hbm %s7239_s8, 1024 }
  0xd2   : > { %p5094_p1 = scmp.ne.s32.totalorder %s7239_s8, %s5093_s14  ;;  %p5100_p0 = scmp.lt.u32.totalorder %s5093_s14, %s7239_s8 }
  0xd4   : > { %p5096_p3 = pnand %p5094_p1, %p5438_p8 }
  0xd6   : > { %p5097_p13 = pneg %p5096_p3 }
  0xd8   : > { %p5102_p2 = pnand %p5100_p0, %p5097_p13 }
  0xda   : > { %5105 = shalt.err (!%p5102_p2)
}
  0xdb   : > { %s5106_s0 = scalar_lea.vmem %s426_s20, 1024  ;;  %p5114_p4 = scmp.lt.s32.totalorder %s426_s20, %s426_s20 }
  0xdc   : > { %p5107_p5 = scmp.ne.s32.totalorder %s426_s20, %s5106_s0  ;;  %p5115_p10 = scmp.lt.s32.totalorder %s5106_s0, %s5106_s0 }
  0xde   : > { %p5109_p7 = pnand %p5107_p5, %p5438_p8  ;;  %p5116_p11 = por %p5115_p10, %p5114_p4 }
  0xe0   : > { %p5110_p9 = pneg %p5109_p7 }
  0xe2   : > { %p5117_p12 = pnand %p5116_p11, %p5110_p9 }
  0xe4   : > { %5120 = shalt.err (!%p5117_p12)
}
  0xe5   : > { %4374 = dma.hbm_to_vmem [thread:$0]  (!%p5422_p6), %s7239_s8, 1024, %s426_s20, [#allocation16], %s5302_s17, %s5302_s17, %s5303_s18  }
  0xe6   : > { %s5310_s19 = smov [#allocation20]   ;;  %s5311_s12 = smov [#allocation21]  }
  0xe7   : > { %s451_s15 = sshll.u32 %s5310_s19, 4  ;;  %s464_s29 = sshll.u32 %s5311_s12, 4  ;;  %s452_s15 = int_to_ptr.vmem [resolvable:$true] %s451_s15  ;;  %s465_s29 = int_to_ptr.vmem [resolvable:$true] %s464_s29 }
  0xe8   : > { %s5121_s30 = scalar_lea.hbm %s7241_s10, 512 }
  0xe9   : > { %p5122_p1 = scmp.ne.s32.totalorder %s7241_s10, %s5121_s30  ;;  %p5128_p0 = scmp.lt.u32.totalorder %s5121_s30, %s7241_s10 }
  0xeb   : > { %p5124_p3 = pnand %p5122_p1, %p5438_p8 }
  0xed   : > { %p5125_p13 = pneg %p5124_p3 }
  0xef   : > { %p5130_p2 = pnand %p5128_p0, %p5125_p13 }
  0xf1   : > { %5133 = shalt.err (!%p5130_p2)
}
  0xf2   : > { %s5134_s20 = scalar_lea.vmem %s452_s15, 512  ;;  %p5142_p4 = scmp.lt.s32.totalorder %s452_s15, %s452_s15 }
  0xf3   : > { %p5135_p5 = scmp.ne.s32.totalorder %s452_s15, %s5134_s20  ;;  %p5143_p10 = scmp.lt.s32.totalorder %s5134_s20, %s5134_s20 }
  0xf5   : > { %p5137_p7 = pnand %p5135_p5, %p5438_p8  ;;  %p5144_p11 = por %p5143_p10, %p5142_p4 }
  0xf7   : > { %p5138_p9 = pneg %p5137_p7 }
  0xf9   : > { %p5145_p12 = pnand %p5144_p11, %p5138_p9 }
  0xfb   : > { %5148 = shalt.err (!%p5145_p12)
}
  0xfc   : > { %4380 = dma.hbm_to_vmem [thread:$0]  (!%p5422_p6), %s7241_s10, 512, %s452_s15, [#allocation19], %s5302_s17, %s5302_s17, %s5303_s18  }
  0xfd   : > { %s5149_s16 = scalar_lea.hbm %s7242_s11, 512 }
  0xfe   : > { %p5150_p1 = scmp.ne.s32.totalorder %s7242_s11, %s5149_s16  ;;  %p5156_p0 = scmp.lt.u32.totalorder %s5149_s16, %s7242_s11 }
 0x100   : > { %p5152_p3 = pnand %p5150_p1, %p5438_p8 }
 0x102   : > { %p5153_p13 = pneg %p5152_p3 }
 0x104   : > { %p5158_p2 = pnand %p5156_p0, %p5153_p13 }
 0x106   : > { %5161 = shalt.err (!%p5158_p2)
}
 0x107   : > { %s5162_s1 = scalar_lea.vmem %s465_s29, 512  ;;  %p5170_p4 = scmp.lt.s32.totalorder %s465_s29, %s465_s29 }
 0x108   : > { %p5163_p5 = scmp.ne.s32.totalorder %s465_s29, %s5162_s1  ;;  %p5171_p10 = scmp.lt.s32.totalorder %s5162_s1, %s5162_s1 }
 0x10a   : > { %p5165_p7 = pnand %p5163_p5, %p5438_p8  ;;  %p5172_p11 = por %p5171_p10, %p5170_p4 }
 0x10c   : > { %p5166_p9 = pneg %p5165_p7 }
 0x10e   : > { %p5173_p12 = pnand %p5172_p11, %p5166_p9 }
 0x110   : > { %5176 = shalt.err (!%p5173_p12)
}
 0x111   : > { %s7388_s25 = sld [smem:[#allocation32_spill]]  ;;  %s3920_s13 = sadd.s32 4294967294, %s5297_s24  }
 0x112   : > { %4383 = dma.hbm_to_vmem [thread:$0]  (!%p5422_p6), %s7242_s11, 512, %s465_s29, [#allocation22], %s5302_s17, %s5302_s17, %s5303_s18  }
 0x113   : > { %s5684_s28 = sadd.s32 1, %s5297_s24   ;;  %s41_s19 = sadd.s32 1, %s5293_s23 }
 0x114   : > { %s38_s12 = ssub.s32 %s5297_s24, %s5684_s28  ;;  %p48_p8 = scmp.ne.s32.totalorder %s5293_s23, %s5289_s22 }
 0x115   : > { %p39_p1 = scmp.eq.s32.totalorder %s38_s12, 0  ;;  %p49_p3 = scmp.eq.s32.totalorder %s5297_s24, 0 }
 0x116   : > { %p54_p13 = scmp.ne.s32.totalorder %s5289_s22, %s5285_s21  ;;  %p315_p9 = scmp.eq.s32.totalorder %s3920_s13, 1 }
 0x117   : > { %p309_p0 = scmp.eq.s32.totalorder %s7388_s25, 1  ;;  %p50_p2 = por %p49_p3, %p48_p8 }
 0x118   : > { %s5696_s14 = scalar_select %p39_p1, %s5293_s23, %s41_s19  }
 0x119   : > { %p7389_p5 = scmp.eq.s32.totalorder %s7388_s25, 0  ;;  %p5704_p6 = por %p309_p0, %p48_p8 }
 0x11a   : > { %p4403_p4 = scmp.lt.s32.totalorder %s5297_s24, 2  ;;  %s478_s18 = sand.u32 1, %s5293_s23  }
 0x11b   : > { %p5700_p7 = por %p7389_p5, %p54_p13  ;;  %p5710_p10 = por %p315_p9, %p54_p13 }
 0x11c   : > { %s7391_s17 = scalar_select %p5704_p6, 1, 0 }
 0x11d   : > { %s7392_s29 = scalar_select %p5710_p10, 1, 0 }
 0x11e   : > { %s3934_s30 = sshll.u32 %s478_s18, 6  ;;  %s4056_s26 = sshll.u32 %s5297_s24, 10 }
 0x11f   : > { %s7393_s1 = sld [smem:[#allocation114_spill]]  ;;  %s482_s20 = scalar_lea.vmem [#allocation3], %s3934_s30 }
 0x120   : > { %s489_s25 = sshll.u32 %s482_s20, 4  ;;  %p5720_p11 = pnand %p4403_p4, %p50_p2  ;;  %s5724_s25 = int_to_ptr.vmem [resolvable:$true] %s489_s25 }
 0x121   : > { %s5726_s19 = scalar_lea.sflag [#allocation4], %s478_s18 }
 0x122   : > { %p5179_p8 = pneg %p5720_p11 }
 0x125   : > { %s5718_s15 = scalar_lea.hbm %s7393_s1, %s4056_s26  ;;  %s5182_s27 = scalar_lea.hbm %s7393_s1, 2048 }
 0x126   : > { %s5177_s12 = scalar_lea.hbm %s5718_s15, 1024  ;;  %p5183_p13 = scmp.lt.u32.totalorder %s5718_s15, %s7393_s1 }
 0x127   : > { %p5178_p12 = scmp.ne.s32.totalorder %s5718_s15, %s5177_s12  ;;  %p5184_p0 = scmp.lt.u32.totalorder %s5182_s27, %s5177_s12 }
 0x128   : > { %p5186_p5 = scmp.lt.u32.totalorder %s5177_s12, %s5718_s15 }
 0x129   : > { %p5180_p1 = pnand %p5179_p8, %p5178_p12  ;;  %p5185_p2 = por %p5184_p0, %p5183_p13 }
 0x12b   : > { %p5181_p3 = pneg %p5180_p1  ;;  %p5187_p9 = por %p5186_p5, %p5185_p2 }
 0x12d   : > { %p5188_p4 = pnand %p5187_p9, %p5181_p3 }
 0x12f   : > { %5191 = shalt.err (!%p5188_p4)
}
 0x130   : > { %s5192_s18 = scalar_lea.vmem %s5724_s25, 1024  ;;  %s5312_s30 = smov [#allocation3]  }
 0x131   : > { %p5193_p12 = scmp.ne.s32.totalorder %s5724_s25, %s5192_s18  ;;  %s5197_s26 = sshll.u32 %s5312_s30, 4  ;;  %s5198_s26 = int_to_ptr.vmem [resolvable:$false] %s5197_s26 }
 0x132   : > { %s5199_s0 = scalar_lea.vmem %s5198_s26, 2048  ;;  %p5200_p6 = scmp.lt.s32.totalorder %s5724_s25, %s5198_s26 }
 0x133   : > { %p5195_p1 = pnand %p5193_p12, %p5179_p8  ;;  %p5201_p13 = scmp.lt.s32.totalorder %s5199_s0, %s5192_s18 }
 0x135   : > { %p5196_p10 = pneg %p5195_p1  ;;  %p5202_p0 = por %p5201_p13, %p5200_p6 }
 0x137   : > { %p5203_p2 = pnand %p5202_p0, %p5196_p10 }
 0x139   : > { %5206 = shalt.err (!%p5203_p2)
}
 0x13a   : > { %s5313_s12 = smov 256   ;;  %s5314_s27 = smov 16  }
 0x13b   : > { %4387 = dma.hbm_to_vmem [thread:$0]  (!%p5720_p11), %s5718_s15, 1024, %s5724_s25, %s5726_s19, %s5313_s12, %s5313_s12, %s5314_s27  }
 0x13c   : > { %s7395_s20 = sld [smem:[#allocation33_spill]] }
 0x142   : > { %p7396_p8 = scmp.ne.s32.totalorder %s7395_s20, 0 }
 0x144   : > { %501 = sbr.rel (%p7396_p8) target bundleno = 2627 (0xa43), region = 68 }
 0x14b   : > { %s5757_s30 = sand.u32 1, %s5289_s22  }
 0x14c   : > { %s3938_s18 = sshll.u32 %s5757_s30, 6  ;;  %s504_s26 = scalar_lea.sflag [#allocation4], %s5757_s30 }
 0x14d   : > { %s5763_s0 = scalar_lea.vmem [#allocation3], %s3938_s18 }
 0x14e   : > { %5252 = dma.done.wait (%p5700_p7), %s504_s26, 1024  }
 0x14f   : > { %5254 = vsyncadd (%p5700_p7), %s504_s26, 4294966272  ;;  %s7397_s15 = sld [smem:[#allocation32_spill]] }
 0x155   : > { %p7398_p6 = scmp.eq.s32.totalorder %s7397_s15, 0 }
 0x157   : > { %5256 = dma.done.wait (%p7398_p6), [#allocation7], 1024   ;;  %p7399_p10 = pmov %p7398_p6 }
 0x158   : > { %p7400_p11 = pmov %p7398_p6 }
 0x159   : > { %5258 = vsyncadd (%p7399_p10), [#allocation7], 4294966272 }
 0x15a   : > { %5260 = dma.done.wait (%p7400_p11), [#allocation10], 1536   ;;  %p7401_p3 = pmov %p7398_p6 }
 0x15c   : > { %5262 = vsyncadd (%p7401_p3), [#allocation10], 4294965760  ;;  %p7402_p5 = pmov %p7401_p3 }
 0x15d   : > { %p7403_p9 = pmov %p7401_p3 }
 0x15e   : > { %5264 = dma.done.wait (%p7402_p5), [#allocation13], 2048  }
 0x15f   : > { %5266 = vsyncadd (%p7403_p9), [#allocation13], 4294965248  ;;  %p7404_p7 = pmov %p7401_p3 }
 0x160   : > { %p7405_p4 = pmov %p7401_p3 }
 0x161   : > { %5268 = dma.done.wait (%p7404_p7), [#allocation16], 2048  }
 0x162   : > { %5270 = vsyncadd (%p7405_p4), [#allocation16], 4294965248  ;;  %p7406_p12 = pmov %p7401_p3 }
 0x163   : > { %p7407_p1 = pmov %p7401_p3 }
 0x164   : > { %5272 = dma.done.wait (%p7406_p12), [#allocation19], 1536  }
 0x165   : > { %5274 = vsyncadd (%p7407_p1), [#allocation19], 4294965760  ;;  %p7408_p13 = pmov %p7407_p1 }
 0x166   : > { %p7409_p0 = pmov %p7407_p1 }
 0x167   : > { %5276 = dma.done.wait (%p7408_p13), [#allocation22], 512  }
 0x168   : > { %5278 = vsyncadd (%p7409_p0), [#allocation22], 4294966784  ;;  %v5794_v0 = vld [vmem:[%s5763_s0 + $0x30] sm:$0xff]  ;;  %v5797_v1 = vld [vmem:[%s5763_s0 + $0x38] sm:$0xff]  ;;  %vm636_vm0 = vcmask 261120   ;;  %v5315_v26 = vmov 0  }
 0x169   : > { %v5800_v2 = vld [vmem:[%s5763_s0] sm:$0xff]  ;;  %v609_v3 = vadd.f32 %v5797_v1, %v5794_v0  ;;  %v5805_v4 = vld [vmem:[%s5763_s0 + $0x8] sm:$0xff]  ;;  %v5810_v6 = vld [vmem:[%s5763_s0 + $0x10] sm:$0xff]  ;;  %v618_v17 = vmul.f32 %v5794_v0, %v5794_v0  ;;  %v619_v18 = vmul.f32 %v5797_v1, %v5797_v1  ;;  %4467 = vset.pattern.permute.xlu1 %v5315_v26  ;;  %4468 = vset.pattern.permute.xlu0 %v5315_v26  ;;  %vm3610_vm1 = vcmask 523264   ;;  %s7164_s16 = scalar_lea.vmem [#allocation23], %s3938_s18  ;;  %s4057_s13 = sshll.u32 %s7397_s15, 10 }
 0x16a   : > { %v612_v5 = vmul.f32 %v5800_v2, %v5800_v2  ;;  %v5813_v7 = vld [vmem:[%s5763_s0 + $0x18] sm:$0xff]  ;;  %v600_v8 = vadd.f32 %v5805_v4, %v5800_v2  ;;  %v613_v9 = vmul.f32 %v5805_v4, %v5805_v4  ;;  %v614_v10 = vmul.f32 %v5810_v6, %v5810_v6  ;;  %v5826_v14 = vld [vmem:[%s5763_s0 + $0x20] sm:$0xff]  ;;  %v5829_v15 = vld [vmem:[%s5763_s0 + $0x28] sm:$0xff]  ;;  %s3742_s25 = sshll.u32 %s7164_s16, 4  ;;  %s7660_s27 = sld [smem:[#allocation117_spill]]  ;;  %s7177_s25 = int_to_ptr.vmem [resolvable:$true] %s3742_s25 }
 0x16b   : > { %610 = vadd.xlane.f32.xlu1 %v609_v3  ;;  %v615_v11 = vmul.f32 %v5813_v7, %v5813_v7  ;;  %v603_v13 = vadd.f32 %v5813_v7, %v5810_v6  ;;  %v606_v19 = vadd.f32 %v5829_v15, %v5826_v14  ;;  %v616_v20 = vmul.f32 %v5826_v14, %v5826_v14  ;;  %v632_v24 = vld [vmem:[#allocation6] sm:$0xff]  ;;  %v904_v27 = vld [vmem:[#allocation8 + $0x8] sm:$0xff]  ;;  %v905_v29 = vld [vmem:[#allocation8 + $0x10] sm:$0xff]  ;;  %s3729_s18 = scalar_lea.sflag [#allocation5], %s5757_s30  ;;  %s5207_s26 = scalar_lea.vmem %s7177_s25, 1024 }
 0x16c   : > { %601 = vadd.xlane.f32.xlu0 %v600_v8  ;;  %v620_v12 = vadd.f32 %v613_v9, %v612_v5  ;;  %v617_v21 = vmul.f32 %v5829_v15, %v5829_v15  ;;  %v629_v22 = vadd.f32 %v619_v18, %v618_v17  ;;  %4082 = vmatprep.mubr.msk.f32.mxu0 %vm636_vm0, %v632_v24  ;;  %v903_v25 = vld [vmem:[#allocation8] sm:$0xff]  ;;  %v633_v41 = vld [vmem:[#allocation6 + $0x8] sm:$0xff]  ;;  %v634_v43 = vld [vmem:[#allocation6 + $0x10] sm:$0xff]  ;;  %p5208_p2 = scmp.ne.s32.totalorder %s7177_s25, %s5207_s26  ;;  %p7661_p8 = scmp.ne.s32.totalorder %s7391_s17, 0 }
 0x16d   : > { %v623_v16 = vadd.f32 %v615_v11, %v614_v10  ;;  %4096 = vmatprep.mubr.msk.f32.mxu1 %vm636_vm0, %v632_v24  ;;  %v935_v28 = vld [vmem:[#allocation9] sm:$0xff]  ;;  %v635_v44 = vld [vmem:[#allocation6 + $0x18] sm:$0xff]  ;;  %v936_v45 = vld [vmem:[#allocation9 + $0x8] sm:$0xff]  ;;  %s5317_s15 = smov [#allocation23]  }
 0x16e   : > { %v626_v23 = vadd.f32 %v617_v21, %v616_v20  ;;  %v906_v58 = vld [vmem:[#allocation8 + $0x18] sm:$0xff]  ;;  %p5209_p6 = pnand %p5208_p2, %p7661_p8  ;;  %s5211_s1 = sshll.u32 %s5317_s15, 4  ;;  %s5212_s1 = int_to_ptr.vmem [resolvable:$false] %s5211_s1 }
 0x16f   : > { %621 = vadd.xlane.f32.xlu1 %v620_v12  ;;  %s5213_s2 = scalar_lea.vmem %s5212_s1, 2048  ;;  %p5214_p11 = scmp.lt.s32.totalorder %s7177_s25, %s5212_s1 }
 0x170   : > { %604 = vadd.xlane.f32.xlu0 %v603_v13  ;;  %s7184_s20 = scalar_lea.hbm %s7660_s27, %s4057_s13  ;;  %p5210_p10 = pneg %p5209_p6 }
 0x171   : > { %p5215_p3 = scmp.lt.s32.totalorder %s5213_s2, %s5207_s26 }
 0x173   : > { %624 = vadd.xlane.f32.xlu1 %v623_v16  ;;  %p5216_p5 = por %p5215_p3, %p5214_p11 }
 0x174   : > { %607 = vadd.xlane.f32.xlu0 %v606_v19 }
 0x175   : > { %p5217_p9 = pnand %p5216_p5, %p5210_p10 }
 0x177   : > { %630 = vadd.xlane.f32.xlu1 %v629_v22 }
 0x178   : > { %627 = vadd.xlane.f32.xlu0 %v626_v23 }
 0x188   : > { %909 = vperm.xlu1 %4467, %v903_v25  }
 0x18c   : > { %914 = vperm.xlu1 %4467, %v904_v27   ;;  %v938_v27 = vld [vmem:[#allocation9 + $0x18] sm:$0xff] }
 0x18e   : > { %946 = vperm.xlu0 %4468, %v936_v45  }
 0x190   : > { %941 = vperm.xlu1 %4467, %v935_v28   ;;  %v976_v28 = vld [vmem:[#allocation12 + $0x8] sm:$0xff] }
 0x194   : > { %919 = vperm.xlu1 %4467, %v905_v29   ;;  %v937_v29 = vld [vmem:[#allocation9 + $0x10] sm:$0xff] }
 0x1f8   : > { %v611_v30 = vpop.xlane.xlu1 %610 }
 0x1f9   : > { %v602_v31 = vpop.xlane.xlu0 %601 }
 0x1fc   : > { %v622_v32 = vpop.xlane.xlu1 %621 }
 0x1fd   : > { %v605_v33 = vpop.xlane.xlu0 %604 }
 0x1fe   : > { %v4102_v34 = vpack.c.bf16 %v605_v33, %v602_v31  ;;  %v975_v31 = vld [vmem:[#allocation12] sm:$0xff]  ;;  %v977_v33 = vld [vmem:[#allocation12 + $0x10] sm:$0xff] }
 0x200   : > { %4103 = vmatprep.subr.bf16.mxu0 %v4102_v34  ;;  %v625_v35 = vpop.xlane.xlu1 %624 }
 0x201   : > { %v4110_v36 = vpack.c.bf16 %v625_v35, %v622_v32  ;;  %4105 = vmatpush3.bf16.msra.mxu0 %v4102_v34  ;;  %v608_v37 = vpop.xlane.xlu0 %607  ;;  %v1169_v32 = vld [vmem:[#allocation15 + $0x8] sm:$0xff]  ;;  %v1171_v34 = vld [vmem:[#allocation15 + $0x18] sm:$0xff]  ;;  %v1168_v35 = vld [vmem:[#allocation15] sm:$0xff] }
 0x202   : > { %v4106_v38 = vpack.c.bf16 %v611_v30, %v608_v37  ;;  %v978_v30 = vld [vmem:[#allocation12 + $0x18] sm:$0xff]  ;;  %v979_v37 = vld [vmem:[#allocation12 + $0x20] sm:$0xff] }
 0x203   : > { %4111 = vmatprep.subr.bf16.mxu1 %v4110_v36 }
 0x204   : > { %4107 = vmatprep.subr.bf16.mxu0 %v4106_v38  ;;  %4113 = vmatpush3.bf16.msra.mxu1 %v4110_v36  ;;  %v631_v39 = vpop.xlane.xlu1 %630  ;;  %v7253_v36 = vmov 0.0  }
 0x205   : > { %4109 = vmatpush3.bf16.msra.mxu0 %v4106_v38  ;;  %v628_v40 = vpop.xlane.xlu0 %627  ;;  %v1170_v38 = vld [vmem:[#allocation15 + $0x10] sm:$0xff] }
 0x206   : > { %v4114_v42 = vpack.c.bf16 %v631_v39, %v628_v40  ;;  %v980_v39 = vld [vmem:[#allocation12 + $0x28] sm:$0xff]  ;;  %v1172_v40 = vld [vmem:[#allocation15 + $0x20] sm:$0xff] }
 0x208   : > { %4083 = vmatmul.mubr.msk.f32.vlgmr.msra.gmra.mrb[0].mxu0 %vm636_vm0, %v633_v41  ;;  %4115 = vmatprep.subr.bf16.mxu1 %v4114_v42 }
 0x209   : > { %4117 = vmatpush3.bf16.msra.mxu1 %v4114_v42  ;;  %4085 = vmatprep.mubr.msk.f32.mxu0 %vm636_vm0, %v634_v43  ;;  %v982_v42 = vld [vmem:[#allocation12 + $0x38] sm:$0xff] }
 0x20c   : > { %4086 = vmatmul.mubr.msk.f32.gmra.mrb[2].mxu0 %vm636_vm0, %v635_v44  ;;  %4097 = vmatmul.mubr.msk.f32.vlgmr.msra.gmra.mrb[0].mxu1 %vm636_vm0, %v633_v41  ;;  %v981_v41 = vld [vmem:[#allocation12 + $0x30] sm:$0xff] }
 0x20d   : > { %4099 = vmatprep.mubr.msk.f32.mxu1 %vm636_vm0, %v634_v43  ;;  %1111 = vmatprep.mubr.f32.mxu0 %v7253_v36  ;;  %v910_v43 = vpop.permute.xlu1 %909 }
 0x210   : > { %4100 = vmatmul.mubr.msk.f32.gmra.mrb[2].mxu1 %vm636_vm0, %v635_v44 }
 0x211   : > { %1304 = vmatprep.mubr.f32.mxu1 %v7253_v36  ;;  %v915_v44 = vpop.permute.xlu1 %914 }
 0x215   : > { %v942_v45 = vpop.permute.xlu1 %941 }
 0x2db   : > { %v4084_v46 = vpop.f32.mrb[0].mxu0 }
 0x2dc   : > { %v735_v47 = vmul.f32 0.00390625, %v4084_v46  ;;  %v715_v48 = vpop.f32.mrb[1].mxu0  ;;  %v920_v46 = vpop.permute.xlu1 %919 }
 0x2dd   : > { %v734_v49 = vmul.f32 0.00390625, %v715_v48  ;;  %v947_v48 = vpop.permute.xlu0 %946 }
 0x2de   : > { %v828_v50 = vmul.f32 %v735_v47, %v735_v47  ;;  %846 = vperm.xlu1 %4467, %v735_v47  }
 0x2df   : > { %v827_v51 = vmul.f32 %v734_v49, %v734_v49  ;;  %v4087_v52 = vpop.f32.mrb[2].mxu0  ;;  %v4098_v53 = vpop.f32.mrb[0].mxu1  ;;  %841 = vperm.xlu0 %4468, %v734_v49  }
 0x2e0   : > { %v737_v54 = vmul.f32 0.00390625, %v4087_v52  ;;  %v824_v55 = vmul.f32 0.00390625, %v4098_v53  ;;  %v804_v56 = vpop.f32.mrb[1].mxu1  ;;  %v725_v57 = vpop.f32.mrb[3].mxu0 }
 0x2e1   : > { %v823_v59 = vmul.f32 0.00390625, %v804_v56  ;;  %v736_v60 = vmul.f32 0.00390625, %v725_v57 }
 0x2e2   : > { %v830_v61 = vmul.f32 %v737_v54, %v737_v54  ;;  %v832_v62 = vsub.f32 %v824_v55, %v828_v50  ;;  %856 = vperm.xlu1 %4467, %v737_v54  }
 0x2e3   : > { %v831_v63 = vsub.f32 %v823_v59, %v827_v51  ;;  %v829_v3 = vmul.f32 %v736_v60, %v736_v60  ;;  %v4101_v5 = vpop.f32.mrb[2].mxu1  ;;  %924 = vperm.xlu0 %4468, %v906_v58  }
 0x2e4   : > { %v836_v8 = vmax.f32 %v832_v62, 0.0  ;;  %v826_v9 = vmul.f32 0.00390625, %v4101_v5  ;;  %v814_v10 = vpop.f32.mrb[3].mxu1 }
 0x2e5   : > { %v835_v11 = vmax.f32 %v831_v63, 0.0  ;;  %v825_v12 = vmul.f32 0.00390625, %v814_v10 }
 0x2e6   : > { %v868_v13 = vadd.f32 1e-05, %v836_v8  ;;  %v834_v16 = vsub.f32 %v826_v9, %v830_v61  ;;  %851 = vperm.xlu1 %4467, %v736_v60  }
 0x2e7   : > { %v867_v17 = vadd.f32 1e-05, %v835_v11  ;;  %v833_v18 = vsub.f32 %v825_v12, %v829_v3 }
 0x2e8   : > { %4469 = vrsqrt.f32 %v868_v13  ;;  %v838_v19 = vmax.f32 %v834_v16, 0.0 }
 0x2e9   : > { %v837_v20 = vmax.f32 %v833_v18, 0.0  ;;  %4471 = vrsqrt.f32 %v867_v17 }
 0x2ea   : > { %v870_v21 = vadd.f32 1e-05, %v838_v19 }
 0x2eb   : > { %v869_v22 = vadd.f32 1e-05, %v837_v20 }
 0x2ec   : > { %4473 = vrsqrt.f32 %v870_v21 }
 0x2ed   : > { %4475 = vrsqrt.f32 %v869_v22 }
 0x2f2   : > { %v4470_v23 = vpop.eup %4469 }
 0x2f3   : > { %882 = vperm.xlu1 %4467, %v4470_v23   ;;  %v4472_v24 = vpop.eup %4471 }
 0x2f6   : > { %v4474_v25 = vpop.eup %4473 }
 0x2f7   : > { %877 = vperm.xlu1 %4467, %v4472_v24   ;;  %892 = vperm.xlu0 %4468, %v4474_v25   ;;  %v4476_v26 = vpop.eup %4475 }
 0x2fb   : > { %956 = vperm.xlu0 %4468, %v938_v27   ;;  %887 = vperm.xlu1 %4467, %v4476_v26  }
 0x2ff   : > { %990 = vperm.xlu0 %4468, %v976_v28   ;;  %951 = vperm.xlu1 %4467, %v937_v29  }
 0x303   : > { %1000 = vperm.xlu0 %4468, %v978_v30   ;;  %985 = vperm.xlu1 %4467, %v975_v31   ;;  %v967_v31 = vld [vmem:[#allocation11] sm:$0xff] }
 0x307   : > { %1183 = vperm.xlu0 %4468, %v1169_v32   ;;  %995 = vperm.xlu1 %4467, %v977_v33   ;;  %v1160_v32 = vld [vmem:[#allocation14] sm:$0xff]  ;;  %v968_v33 = vld [vmem:[#allocation11 + $0x8] sm:$0xff] }
 0x30b   : > { %1193 = vperm.xlu0 %4468, %v1171_v34   ;;  %1178 = vperm.xlu1 %4467, %v1168_v35   ;;  %v1161_v34 = vld [vmem:[#allocation14 + $0x8] sm:$0xff]  ;;  %v969_v35 = vld [vmem:[#allocation11 + $0x10] sm:$0xff] }
 0x30f   : > { %1005 = vperm.xlu0 %4468, %v979_v37   ;;  %1188 = vperm.xlu1 %4467, %v1170_v38   ;;  %v1162_v37 = vld [vmem:[#allocation14 + $0x10] sm:$0xff]  ;;  %v970_v38 = vld [vmem:[#allocation11 + $0x18] sm:$0xff] }
 0x313   : > { %1010 = vperm.xlu0 %4468, %v980_v39   ;;  %1198 = vperm.xlu1 %4467, %v1172_v40   ;;  %v1163_v39 = vld [vmem:[#allocation14 + $0x18] sm:$0xff]  ;;  %v971_v40 = vld [vmem:[#allocation11 + $0x20] sm:$0xff] }
 0x317   : > { %1015 = vperm.xlu0 %4468, %v981_v41   ;;  %v1164_v41 = vld [vmem:[#allocation14 + $0x20] sm:$0xff] }
 0x31b   : > { %1020 = vperm.xlu0 %4468, %v982_v42   ;;  %v972_v42 = vld [vmem:[#allocation11 + $0x28] sm:$0xff] }
 0x35d   : > { %v847_v47 = vpop.permute.xlu1 %846 }
 0x35e   : > { %v842_v50 = vpop.permute.xlu0 %841  ;;  %v861_v52 = vsub.f32 %v5810_v6, %v847_v47  ;;  %v862_v53 = vsub.f32 %v5813_v7, %v847_v47  ;;  %v1167_v47 = vld [vmem:[#allocation14 + $0x38] sm:$0xff] }
 0x35f   : > { %v859_v58 = vsub.f32 %v5800_v2, %v842_v50  ;;  %v860_v59 = vsub.f32 %v5805_v4, %v842_v50 }
 0x361   : > { %v857_v49 = vpop.permute.xlu1 %856 }
 0x362   : > { %v925_v54 = vpop.permute.xlu0 %924  ;;  %v865_v60 = vsub.f32 %v5794_v0, %v857_v49  ;;  %v866_v61 = vsub.f32 %v5797_v1, %v857_v49 }
 0x365   : > { %v852_v51 = vpop.permute.xlu1 %851 }
 0x366   : > { %v863_v10 = vsub.f32 %v5826_v14, %v852_v51  ;;  %v864_v11 = vsub.f32 %v5829_v15, %v852_v51 }
 0x372   : > { %v883_v55 = vpop.permute.xlu1 %882 }
 0x373   : > { %v897_v56 = vmul.f32 %v883_v55, %v861_v52  ;;  %v898_v57 = vmul.f32 %v883_v55, %v862_v53 }
 0x375   : > { %v929_v62 = vmul.f32 %v915_v44, %v897_v56  ;;  %v930_v9 = vmul.f32 %v915_v44, %v898_v57  ;;  %v974_v44 = vld [vmem:[#allocation11 + $0x38] sm:$0xff] }
 0x376   : > { %v878_v63 = vpop.permute.xlu1 %877  ;;  %v893_v3 = vpop.permute.xlu0 %892 }
 0x377   : > { %v895_v5 = vmul.f32 %v878_v63, %v859_v58  ;;  %v896_v8 = vmul.f32 %v878_v63, %v860_v59  ;;  %v901_v6 = vmul.f32 %v893_v3, %v865_v60  ;;  %v902_v7 = vmul.f32 %v893_v3, %v866_v61 }
 0x378   : > { %v961_v13 = vadd.f32 %v947_v48, %v929_v62  ;;  %v962_v21 = vadd.f32 %v947_v48, %v930_v9 }
 0x379   : > { %v927_v12 = vmul.f32 %v910_v43, %v895_v5  ;;  %v928_v2 = vmul.f32 %v910_v43, %v896_v8  ;;  %v933_v16 = vmul.f32 %v925_v54, %v901_v6  ;;  %v934_v18 = vmul.f32 %v925_v54, %v902_v7  ;;  %v973_v43 = vld [vmem:[#allocation11 + $0x30] sm:$0xff] }
 0x37a   : > { %v888_v4 = vpop.permute.xlu1 %887  ;;  %v957_v19 = vpop.permute.xlu0 %956 }
 0x37b   : > { %v959_v0 = vadd.f32 %v942_v45, %v927_v12  ;;  %v899_v17 = vmul.f32 %v888_v4, %v863_v10  ;;  %v900_v1 = vmul.f32 %v888_v4, %v864_v11  ;;  %v960_v20 = vadd.f32 %v942_v45, %v928_v2  ;;  %v1165_v45 = vld [vmem:[#allocation14 + $0x28] sm:$0xff] }
 0x37c   : > { %v965_v14 = vadd.f32 %v957_v19, %v933_v16  ;;  %v966_v27 = vadd.f32 %v957_v19, %v934_v18 }
 0x37d   : > { %v931_v22 = vmul.f32 %v920_v46, %v899_v17  ;;  %v932_v23 = vmul.f32 %v920_v46, %v900_v1  ;;  %v4120_v24 = vpack.c.bf16 %v961_v13, %v959_v0  ;;  %v4118_v26 = vpack.c.bf16 %v962_v21, %v960_v20  ;;  %v1166_v46 = vld [vmem:[#allocation14 + $0x30] sm:$0xff] }
 0x37e   : > { %v952_v25 = vpop.permute.xlu1 %951  ;;  %v991_v49 = vpop.permute.xlu0 %990 }
 0x37f   : > { %v963_v15 = vadd.f32 %v952_v25, %v931_v22  ;;  %v964_v28 = vadd.f32 %v952_v25, %v932_v23  ;;  %4119 = vmatprep.subr.bf16.mxu0 %v4118_v26  ;;  %4127 = vmatprep.subr.bf16.mxu1 %v4118_v26 }
 0x380   : > { %4121 = vmatpush1.bf16.msra.mxu0 %v4120_v24  ;;  %4129 = vmatpush1.bf16.msra.mxu1 %v4120_v24 }
 0x381   : > { %v4124_v29 = vpack.c.bf16 %v965_v14, %v963_v15  ;;  %v4122_v30 = vpack.c.bf16 %v966_v27, %v964_v28 }
 0x382   : > { %v986_v48 = vpop.permute.xlu1 %985  ;;  %v1001_v51 = vpop.permute.xlu0 %1000 }
 0x383   : > { %4123 = vmatprep.subr.bf16.mxu0 %v4122_v30  ;;  %4131 = vmatprep.subr.bf16.mxu1 %v4122_v30 }
 0x384   : > { %4125 = vmatpush1.bf16.msra.mxu0 %v4124_v29  ;;  %4133 = vmatpush1.bf16.msra.mxu1 %v4124_v29 }
 0x385   : > { %4135 = vmatprep.subr.bf16.mxu0 %v4118_v26 }
 0x386   : > { %v996_v50 = vpop.permute.xlu1 %995  ;;  %v1184_v60 = vpop.permute.xlu0 %1183 }
 0x387   : > { %3959 = vmatmul.mubr.msk.f32.vlgmr.msra.gmra.mrb[4].mxu0 %vm636_vm0, %v967_v31  ;;  %3967 = vmatmul.mubr.msk.f32.vlgmr.msra.gmra.mrb[4].mxu1 %vm636_vm0, %v1160_v32 }
 0x388   : > { %4137 = vmatpush1.bf16.msra.mxu0 %v4120_v24  ;;  %1117 = vmatprep.mubr.f32.mxu0 %v7253_v36 }
 0x389   : > { %4139 = vmatprep.subr.bf16.mxu0 %v4122_v30  ;;  %1310 = vmatprep.mubr.f32.mxu1 %v7253_v36 }
 0x38a   : > { %v1179_v52 = vpop.permute.xlu1 %1178  ;;  %v1194_v26 = vpop.permute.xlu0 %1193 }
 0x38b   : > { %3960 = vmatmul.mubr.msk.f32.gmra.mrb[6].mxu0 %vm636_vm0, %v968_v33  ;;  %3968 = vmatmul.mubr.msk.f32.gmra.mrb[6].mxu1 %vm636_vm0, %v1161_v34 }
 0x38c   : > { %4141 = vmatpush1.bf16.msra.mxu0 %v4124_v29  ;;  %1123 = vmatprep.mubr.f32.mxu0 %v7253_v36 }
 0x38d   : > { %1316 = vmatprep.mubr.f32.mxu1 %v7253_v36 }
 0x38e   : > { %v1189_v2 = vpop.permute.xlu1 %1188 }
 0x38f   : > { %3961 = vmatmul.mubr.msk.f32.gmra.mrb[8].mxu0 %vm636_vm0, %v969_v35  ;;  %3969 = vmatmul.mubr.msk.f32.gmra.mrb[8].mxu1 %vm636_vm0, %v1162_v37 }
 0x390   : > { %1129 = vmatprep.mubr.f32.mxu0 %v7253_v36  ;;  %1322 = vmatprep.mubr.f32.mxu1 %v7253_v36 }
 0x393   : > { %3962 = vmatmul.mubr.msk.f32.gmra.mrb[10].mxu0 %vm636_vm0, %v970_v38  ;;  %3970 = vmatmul.mubr.msk.f32.gmra.mrb[10].mxu1 %vm636_vm0, %v1163_v39 }
 0x394   : > { %1135 = vmatprep.mubr.f32.mxu0 %v7253_v36  ;;  %1328 = vmatprep.mubr.f32.mxu1 %v7253_v36 }
 0x397   : > { %3963 = vmatmul.mubr.msk.f32.gmra.mrb[12].mxu0 %vm636_vm0, %v971_v40  ;;  %3971 = vmatmul.mubr.msk.f32.gmra.mrb[12].mxu1 %vm636_vm0, %v1164_v41 }
 0x398   : > { %1141 = vmatprep.mubr.f32.mxu0 %v7253_v36  ;;  %1334 = vmatprep.mubr.f32.mxu1 %v7253_v36 }
 0x39b   : > { %3964 = vmatmul.mubr.msk.f32.gmra.mrb[14].mxu0 %vm636_vm0, %v972_v42  ;;  %3972 = vmatmul.mubr.msk.f32.gmra.mrb[14].mxu1 %vm636_vm0, %v1165_v45 }
 0x39c   : > { %1147 = vmatprep.mubr.f32.mxu0 %v7253_v36  ;;  %1340 = vmatprep.mubr.f32.mxu1 %v7253_v36 }
 0x39f   : > { %3965 = vmatmul.mubr.msk.f32.gmra.mrb[16].mxu0 %vm636_vm0, %v973_v43  ;;  %3973 = vmatmul.mubr.msk.f32.gmra.mrb[16].mxu1 %vm636_vm0, %v1166_v46 }
 0x3a0   : > { %1153 = vmatprep.mubr.f32.mxu0 %v7253_v36  ;;  %1346 = vmatprep.mubr.f32.mxu1 %v7253_v36 }
 0x3a3   : > { %3966 = vmatmul.mubr.msk.f32.gmra.mrb[18].mxu0 %vm636_vm0, %v974_v44  ;;  %3974 = vmatmul.mubr.msk.f32.gmra.mrb[18].mxu1 %vm636_vm0, %v1167_v47 }
 0x3a4   : > { %1497 = vmatprep.mubr.f32.mxu0 %v7253_v36  ;;  %1802 = vmatprep.mubr.f32.mxu1 %v7253_v36 }
 0x45a   : > { %v1113_v53 = vpop.f32.mrb[4].mxu0  ;;  %v1306_v54 = vpop.f32.mrb[4].mxu1 }
 0x45b   : > { %v1114_v55 = vadd.f32 %v1113_v53, %v986_v48  ;;  %v1115_v56 = vpop.f32.mrb[5].mxu0  ;;  %v1308_v57 = vpop.f32.mrb[5].mxu1  ;;  %v1307_v58 = vadd.f32 %v1306_v54, %v1179_v52 }
 0x45c   : > { %v1116_v59 = vadd.f32 %v1115_v56, %v986_v48  ;;  %v1309_v62 = vadd.f32 %v1308_v57, %v1179_v52  ;;  %v1174_v57 = vld [vmem:[#allocation15 + $0x30] sm:$0xff] }
 0x45d   : > { %v1546_v61 = vmul.f32 0.4204482, %v1114_v55  ;;  %v1562_v10 = vmul.f32 0.4204482, %v1307_v58 }
 0x45e   : > { %v1547_v63 = vmul.f32 0.4204482, %v1116_v59  ;;  %v1119_v3 = vpop.f32.mrb[6].mxu0  ;;  %v1312_v5 = vpop.f32.mrb[6].mxu1  ;;  %v1563_v13 = vmul.f32 0.4204482, %v1309_v62 }
 0x45f   : > { %v1120_v8 = vadd.f32 %v1119_v3, %v991_v49  ;;  %v1313_v6 = vadd.f32 %v1312_v5, %v1184_v60  ;;  %v1121_v9 = vpop.f32.mrb[7].mxu0  ;;  %v1314_v7 = vpop.f32.mrb[7].mxu1  ;;  %1578 = vxpose.xlu1.b32.start [1/4] (short) %v1546_v61, 128 }
 0x460   : > { %v1122_v11 = vadd.f32 %v1121_v9, %v991_v49  ;;  %v1315_v12 = vadd.f32 %v1314_v7, %v1184_v60  ;;  %1610 = vxpose.xlu0.b32.start [1/4] (short) %v1547_v63, 128  ;;  %v1175_v60 = vld [vmem:[#allocation15 + $0x38] sm:$0xff]  ;;  %v1173_v63 = vld [vmem:[#allocation15 + $0x28] sm:$0xff]  ;;  %v1006_v3 = vpop.permute.xlu0 %1005 }
 0x461   : > { %v1548_v4 = vmul.f32 0.4204482, %v1120_v8  ;;  %v1564_v16 = vmul.f32 0.4204482, %v1313_v6  ;;  %v5907_v6 = vpop.permute.xlu1 %1198 }
 0x462   : > { %v1549_v0 = vmul.f32 0.4204482, %v1122_v11  ;;  %v1565_v17 = vmul.f32 0.4204482, %v1315_v12  ;;  %v1125_v1 = vpop.f32.mrb[8].mxu0  ;;  %v1318_v18 = vpop.f32.mrb[8].mxu1 }
 0x463   : > { %v4144_v19 = vpack.c.bf16 %v1564_v16, %v1562_v10  ;;  %v1126_v20 = vadd.f32 %v1125_v1, %v996_v50  ;;  %v1127_v21 = vpop.f32.mrb[9].mxu0  ;;  %v1320_v22 = vpop.f32.mrb[9].mxu1  ;;  %1579 = vxpose.xlu1.b32.cont [2/4] (short) %v1548_v4, 128  ;;  %v1319_v24 = vadd.f32 %v1318_v18, %v1189_v2 }
 0x464   : > { %v4142_v23 = vpack.c.bf16 %v1565_v17, %v1563_v13  ;;  %v1128_v25 = vadd.f32 %v1127_v21, %v996_v50  ;;  %1611 = vxpose.xlu0.b32.cont [2/4] (short) %v1549_v0, 128  ;;  %v1321_v27 = vadd.f32 %v1320_v22, %v1189_v2  ;;  %v1011_v5 = vpop.permute.xlu0 %1010 }
 0x465   : > { %v1550_v14 = vmul.f32 0.4204482, %v1126_v20  ;;  %v1566_v34 = vmul.f32 0.4204482, %v1319_v24 }
 0x466   : > { %v1551_v15 = vmul.f32 0.4204482, %v1128_v25  ;;  %v1131_v28 = vpop.f32.mrb[10].mxu0  ;;  %v1324_v29 = vpop.f32.mrb[10].mxu1  ;;  %4143 = vmatprep.subr.bf16.mxu1 %v4142_v23  ;;  %v1567_v38 = vmul.f32 0.4204482, %v1321_v27 }
 0x467   : > { %v1132_v30 = vadd.f32 %v1131_v28, %v1001_v51  ;;  %v1325_v31 = vadd.f32 %v1324_v29, %v1194_v26  ;;  %v1133_v32 = vpop.f32.mrb[11].mxu0  ;;  %v1326_v33 = vpop.f32.mrb[11].mxu1  ;;  %1580 = vxpose.xlu1.b32.cont [3/4] (short) %v1550_v14, 128  ;;  %4145 = vmatpush1.bf16.msra.mxu1 %v4144_v19 }
 0x468   : > { %v1134_v35 = vadd.f32 %v1133_v32, %v1001_v51  ;;  %v1327_v37 = vadd.f32 %v1326_v33, %v1194_v26  ;;  %1612 = vxpose.xlu0.b32.cont [3/4] (short) %v1551_v15, 128  ;;  %v1016_v8 = vpop.permute.xlu0 %1015 }
 0x469   : > { %v1552_v39 = vmul.f32 0.4204482, %v1132_v30  ;;  %v1568_v40 = vmul.f32 0.4204482, %v1325_v31 }
 0x46a   : > { %v1553_v41 = vmul.f32 0.4204482, %v1134_v35  ;;  %v1569_v42 = vmul.f32 0.4204482, %v1327_v37  ;;  %v1137_v43 = vpop.f32.mrb[12].mxu0  ;;  %v5891_v44 = vpop.f32.mrb[12].mxu1 }
 0x46b   : > { %v4148_v45 = vpack.c.bf16 %v1568_v40, %v1566_v34  ;;  %v1139_v46 = vpop.f32.mrb[13].mxu0  ;;  %v5893_v47 = vpop.f32.mrb[13].mxu1  ;;  %1581 = vxpose.xlu1.b32.end [4/4] (short) %v1552_v39, 128  ;;  %v1138_v11 = vadd.f32 %v1137_v43, %v1006_v3 }
 0x46c   : > { %v4146_v48 = vpack.c.bf16 %v1569_v42, %v1567_v38  ;;  %1613 = vxpose.xlu0.b32.end [4/4] (short) %v1553_v41, 128  ;;  %v1140_v9 = vadd.f32 %v1139_v46, %v1006_v3  ;;  %v1021_v10 = vpop.permute.xlu0 %1020 }
 0x46d   : > { %v1554_v4 = vmul.f32 0.4204482, %v1138_v11 }
 0x46e   : > { %v1143_v49 = vpop.f32.mrb[14].mxu0  ;;  %4147 = vmatprep.subr.bf16.mxu1 %v4146_v48  ;;  %v5895_v55 = vpop.f32.mrb[14].mxu1  ;;  %v1555_v12 = vmul.f32 0.4204482, %v1140_v9 }
 0x46f   : > { %v1145_v50 = vpop.f32.mrb[15].mxu0  ;;  %4149 = vmatpush1.bf16.msra.mxu1 %v4148_v45  ;;  %v5897_v56 = vpop.f32.mrb[15].mxu1  ;;  %v1144_v16 = vadd.f32 %v1143_v49, %v1011_v5 }
 0x470   : > { %v1146_v2 = vadd.f32 %v1145_v50, %v1011_v5 }
 0x471   : > { %v1556_v19 = vmul.f32 0.4204482, %v1144_v16 }
 0x472   : > { %v1149_v51 = vpop.f32.mrb[16].mxu0  ;;  %v5899_v58 = vpop.f32.mrb[16].mxu1  ;;  %v1557_v17 = vmul.f32 0.4204482, %v1146_v2 }
 0x473   : > { %v1151_v52 = vpop.f32.mrb[17].mxu0  ;;  %v5901_v59 = vpop.f32.mrb[17].mxu1  ;;  %v1150_v20 = vadd.f32 %v1149_v51, %v1016_v8 }
 0x474   : > { %v1152_v1 = vadd.f32 %v1151_v52, %v1016_v8 }
 0x475   : > { %v1558_v25 = vmul.f32 0.4204482, %v1150_v20 }
 0x476   : > { %v1155_v53 = vpop.f32.mrb[18].mxu0  ;;  %v5903_v61 = vpop.f32.mrb[18].mxu1  ;;  %v1559_v21 = vmul.f32 0.4204482, %v1152_v1 }
 0x477   : > { %v1157_v54 = vpop.f32.mrb[19].mxu0  ;;  %v5905_v62 = vpop.f32.mrb[19].mxu1  ;;  %v1156_v26 = vadd.f32 %v1155_v53, %v1021_v10 }
 0x478   : > { %v1158_v22 = vadd.f32 %v1157_v54, %v1021_v10 }
 0x479   : > { %v1560_v15 = vmul.f32 0.4204482, %v1156_v26 }
 0x47a   : > { %v1561_v14 = vmul.f32 0.4204482, %v1158_v22 }
 0x4b9   : > { %1208 = vperm.xlu1 %4467, %v1174_v57  }
 0x4bd   : > { %1213 = vperm.xlu1 %4467, %v1175_v60  }
 0x4c5   : > { %1203 = vperm.xlu0 %4468, %v1173_v63  }
 0x4df   : > { %v1594_v7 = vpop.trf.xlu1 }
 0x4e0   : > { %3983 = vmatmul.mubr.msk.f32.vlgmr.msra.gmra.mrb[20].mxu1 %vm636_vm0, %v1594_v7  ;;  %v5912_v0 = vpop.trf.xlu0 }
 0x4e1   : > { %1808 = vmatprep.mubr.f32.mxu1 %v7253_v36 }
 0x4e3   : > { %v1595_v13 = vpop.trf.xlu1  ;;  %2604 = vxpose.xlu0.b32.start [1/4] (short) %v1555_v12, 128 }
 0x4e4   : > { %3984 = vmatmul.mubr.msk.f32.gmra.mrb[22].mxu1 %vm636_vm0, %v1595_v13  ;;  %v1627_v23 = vpop.trf.xlu0 }
 0x4e5   : > { %1814 = vmatprep.mubr.f32.mxu1 %v7253_v36 }
 0x4e6   : > { %2572 = vxpose.xlu1.b32.start [1/4] (short) %v1554_v4, 128 }
 0x4e7   : > { %v1596_v18 = vpop.trf.xlu1  ;;  %2605 = vxpose.xlu0.b32.cont [2/4] (short) %v1557_v17, 128 }
 0x4e8   : > { %3985 = vmatmul.mubr.msk.f32.gmra.mrb[24].mxu1 %vm636_vm0, %v1596_v18  ;;  %v1628_v28 = vpop.trf.xlu0 }
 0x4e9   : > { %1820 = vmatprep.mubr.f32.mxu1 %v7253_v36 }
 0x4ea   : > { %2573 = vxpose.xlu1.b32.cont [2/4] (short) %v1556_v19, 128 }
 0x4eb   : > { %v1597_v24 = vpop.trf.xlu1  ;;  %2606 = vxpose.xlu0.b32.cont [3/4] (short) %v1559_v21, 128 }
 0x4ec   : > { %3986 = vmatmul.mubr.msk.f32.gmra.mrb[26].mxu1 %vm636_vm0, %v1597_v24  ;;  %v1629_v30 = vpop.trf.xlu0 }
 0x4ed   : > { %1826 = vmatprep.mubr.f32.mxu1 %v7253_v36 }
 0x4ee   : > { %2574 = vxpose.xlu1.b32.cont [3/4] (short) %v1558_v25, 128 }
 0x4ef   : > { %v1598_v27 = vpop.trf.xlu1  ;;  %2607 = vxpose.xlu0.b32.end [4/4] (short) %v1561_v14, 128 }
 0x4f0   : > { %3987 = vmatmul.mubr.msk.f32.gmra.mrb[28].mxu1 %vm636_vm0, %v1598_v27  ;;  %v1630_v33 = vpop.trf.xlu0 }
 0x4f1   : > { %1832 = vmatprep.mubr.f32.mxu1 %v7253_v36 }
 0x4f2   : > { %2575 = vxpose.xlu1.b32.end [4/4] (short) %v1560_v15, 128 }
 0x4f3   : > { %v1599_v29 = vpop.trf.xlu1 }
 0x4f4   : > { %3988 = vmatmul.mubr.msk.f32.gmra.mrb[30].mxu1 %vm636_vm0, %v1599_v29  ;;  %v1631_v35 = vpop.trf.xlu0 }
 0x4f5   : > { %1838 = vmatprep.mubr.f32.mxu1 %v7253_v36 }
 0x4f7   : > { %v1600_v31 = vpop.trf.xlu1 }
 0x4f8   : > { %3989 = vmatmul.mubr.msk.f32.gmra.mrb[32].mxu1 %vm636_vm0, %v1600_v31  ;;  %v1632_v39 = vpop.trf.xlu0 }
 0x4f9   : > { %1844 = vmatprep.mubr.f32.mxu1 %v7253_v36 }
 0x4fb   : > { %v1601_v32 = vpop.trf.xlu1 }
 0x4fc   : > { %3990 = vmatmul.mubr.msk.f32.gmra.mrb[34].mxu1 %vm636_vm0, %v1601_v32  ;;  %v1633_v41 = vpop.trf.xlu0 }
 0x4fd   : > { %1850 = vmatprep.mubr.f32.mxu1 %v7253_v36 }
 0x4ff   : > { %v1602_v34 = vpop.trf.xlu1 }
 0x500   : > { %3991 = vmatmul.mubr.msk.f32.gmra.mrb[36].mxu1 %vm636_vm0, %v1602_v34  ;;  %v1634_v45 = vpop.trf.xlu0 }
 0x501   : > { %1856 = vmatprep.mubr.f32.mxu1 %v7253_v36 }
 0x503   : > { %v1603_v37 = vpop.trf.xlu1 }
 0x504   : > { %3992 = vmatmul.mubr.msk.f32.gmra.mrb[38].mxu1 %vm636_vm0, %v1603_v37  ;;  %v1635_v48 = vpop.trf.xlu0 }
 0x505   : > { %1862 = vmatprep.mubr.f32.mxu1 %v7253_v36 }
 0x507   : > { %v1604_v38 = vpop.trf.xlu1 }
 0x508   : > { %3993 = vmatmul.mubr.msk.f32.gmra.mrb[40].mxu1 %vm636_vm0, %v1604_v38  ;;  %v1636_v50 = vpop.trf.xlu0 }
 0x509   : > { %1868 = vmatprep.mubr.f32.mxu1 %v7253_v36 }
 0x50b   : > { %v1605_v40 = vpop.trf.xlu1 }
 0x50c   : > { %3994 = vmatmul.mubr.msk.f32.gmra.mrb[42].mxu1 %vm636_vm0, %v1605_v40  ;;  %v1637_v51 = vpop.trf.xlu0 }
 0x50d   : > { %1874 = vmatprep.mubr.f32.mxu1 %v7253_v36 }
 0x50f   : > { %v1606_v42 = vpop.trf.xlu1 }
 0x510   : > { %3995 = vmatmul.mubr.msk.f32.gmra.mrb[44].mxu1 %vm636_vm0, %v1606_v42  ;;  %v1638_v52 = vpop.trf.xlu0 }
 0x511   : > { %1880 = vmatprep.mubr.f32.mxu1 %v7253_v36 }
 0x513   : > { %v1607_v43 = vpop.trf.xlu1 }
 0x514   : > { %3996 = vmatmul.mubr.msk.f32.gmra.mrb[46].mxu1 %vm636_vm0, %v1607_v43  ;;  %v1639_v53 = vpop.trf.xlu0 }
 0x515   : > { %1886 = vmatprep.mubr.f32.mxu1 %v7253_v36 }
 0x517   : > { %v1608_v46 = vpop.trf.xlu1 }
 0x518   : > { %3997 = vmatmul.mubr.msk.f32.gmra.mrb[48].mxu1 %vm636_vm0, %v1608_v46  ;;  %v1640_v57 = vpop.trf.xlu0 }
 0x519   : > { %1892 = vmatprep.mubr.f32.mxu1 %v7253_v36 }
 0x51b   : > { %v1609_v49 = vpop.trf.xlu1 }
 0x51c   : > { %3998 = vmatmul.mubr.msk.f32.gmra.mrb[50].mxu1 %vm636_vm0, %v1609_v49  ;;  %v1641_v7 = vpop.trf.xlu0 }
 0x51d   : > { %1898 = vmatprep.mubr.f32.mxu1 %v7253_v36 }
 0x520   : > { %3999 = vmatmul.mubr.msk.f32.gmra.mrb[52].mxu1 %vm636_vm0, %v5912_v0 }
 0x521   : > { %1904 = vmatprep.mubr.f32.mxu1 %v7253_v36 }
 0x524   : > { %4000 = vmatmul.mubr.msk.f32.gmra.mrb[54].mxu1 %vm636_vm0, %v1627_v23 }
 0x525   : > { %1910 = vmatprep.mubr.f32.mxu1 %v7253_v36 }
 0x528   : > { %4001 = vmatmul.mubr.msk.f32.gmra.mrb[56].mxu1 %vm636_vm0, %v1628_v28 }
 0x529   : > { %1916 = vmatprep.mubr.f32.mxu1 %v7253_v36 }
 0x52c   : > { %4002 = vmatmul.mubr.msk.f32.gmra.mrb[58].mxu1 %vm636_vm0, %v1629_v30 }
 0x52d   : > { %1922 = vmatprep.mubr.f32.mxu1 %v7253_v36 }
 0x530   : > { %4003 = vmatmul.mubr.msk.f32.gmra.mrb[60].mxu1 %vm636_vm0, %v1630_v33 }
 0x531   : > { %1928 = vmatprep.mubr.f32.mxu1 %v7253_v36 }
 0x534   : > { %4004 = vmatmul.mubr.msk.f32.gmra.mrb[62].mxu1 %vm636_vm0, %v1631_v35 }
 0x535   : > { %1934 = vmatprep.mubr.f32.mxu1 %v7253_v36 }
 0x538   : > { %v1209_v54 = vpop.permute.xlu1 %1208  ;;  %4005 = vmatmul.mubr.msk.f32.gmra.mrb[64].mxu1 %vm636_vm0, %v1632_v39 }
 0x539   : > { %1940 = vmatprep.mubr.f32.mxu1 %v7253_v36  ;;  %v1343_v60 = vadd.f32 %v5899_v58, %v1209_v54  ;;  %v1345_v63 = vadd.f32 %v5901_v59, %v1209_v54  ;;  %v1331_v59 = vadd.f32 %v5891_v44, %v5907_v6 }
 0x53b   : > { %v1574_v9 = vmul.f32 0.4204482, %v1343_v60  ;;  %v1575_v10 = vmul.f32 0.4204482, %v1345_v63  ;;  %v1570_v16 = vmul.f32 0.4204482, %v1331_v59 }
 0x53c   : > { %v1214_v3 = vpop.permute.xlu1 %1213  ;;  %4006 = vmatmul.mubr.msk.f32.gmra.mrb[66].mxu1 %vm636_vm0, %v1633_v41 }
 0x53d   : > { %v1349_v5 = vadd.f32 %v5903_v61, %v1214_v3  ;;  %v1351_v8 = vadd.f32 %v5905_v62, %v1214_v3  ;;  %1946 = vmatprep.mubr.f32.mxu1 %v7253_v36  ;;  %v1333_v61 = vadd.f32 %v5893_v47, %v5907_v6 }
 0x53f   : > { %v1576_v11 = vmul.f32 0.4204482, %v1349_v5  ;;  %v1577_v12 = vmul.f32 0.4204482, %v1351_v8  ;;  %v1571_v0 = vmul.f32 0.4204482, %v1333_v61 }
 0x540   : > { %4007 = vmatmul.mubr.msk.f32.gmra.mrb[68].mxu1 %vm636_vm0, %v1634_v45 }
 0x541   : > { %v4220_v2 = vpack.c.bf16 %v1576_v11, %v1574_v9  ;;  %1952 = vmatprep.mubr.f32.mxu1 %v7253_v36  ;;  %v4218_v58 = vpack.c.bf16 %v1577_v12, %v1575_v10 }
 0x544   : > { %4008 = vmatmul.mubr.msk.f32.gmra.mrb[70].mxu1 %vm636_vm0, %v1635_v48  ;;  %v1204_v62 = vpop.permute.xlu0 %1203 }
 0x545   : > { %v1337_v13 = vadd.f32 %v5895_v55, %v1204_v62  ;;  %v1339_v4 = vadd.f32 %v5897_v56, %v1204_v62  ;;  %1958 = vmatprep.mubr.f32.mxu1 %v7253_v36 }
 0x547   : > { %v1572_v17 = vmul.f32 0.4204482, %v1337_v13  ;;  %v1573_v1 = vmul.f32 0.4204482, %v1339_v4 }
 0x548   : > { %4009 = vmatmul.mubr.msk.f32.gmra.mrb[72].mxu1 %vm636_vm0, %v1636_v50 }
 0x549   : > { %v4216_v18 = vpack.c.bf16 %v1572_v17, %v1570_v16  ;;  %1964 = vmatprep.mubr.f32.mxu1 %v7253_v36  ;;  %v4214_v44 = vpack.c.bf16 %v1573_v1, %v1571_v0 }
 0x54b   : > { %4215 = vmatprep.subr.bf16.mxu1 %v4214_v44 }
 0x54c   : > { %4010 = vmatmul.mubr.msk.f32.gmra.mrb[74].mxu1 %vm636_vm0, %v1637_v51 }
 0x54d   : > { %4217 = vmatpush1.bf16.msra.mxu1 %v4216_v18  ;;  %1970 = vmatprep.mubr.f32.mxu1 %v7253_v36 }
 0x54e   : > { %4219 = vmatprep.subr.bf16.mxu1 %v4218_v58 }
 0x550   : > { %4011 = vmatmul.mubr.msk.f32.gmra.mrb[76].mxu1 %vm636_vm0, %v1638_v52 }
 0x551   : > { %4221 = vmatpush1.bf16.msra.mxu1 %v4220_v2  ;;  %1976 = vmatprep.mubr.f32.mxu1 %v7253_v36 }
 0x554   : > { %4012 = vmatmul.mubr.msk.f32.gmra.mrb[78].mxu1 %vm636_vm0, %v1639_v53 }
 0x555   : > { %1982 = vmatprep.mubr.f32.mxu1 %v7253_v36 }
 0x558   : > { %4013 = vmatmul.mubr.msk.f32.gmra.mrb[80].mxu1 %vm636_vm0, %v1640_v57 }
 0x559   : > { %1988 = vmatprep.mubr.f32.mxu1 %v7253_v36 }
 0x55c   : > { %4014 = vmatmul.mubr.msk.f32.gmra.mrb[82].mxu1 %vm636_vm0, %v1641_v7 }
 0x55d   : > { %2796 = vmatprep.mubr.f32.mxu1 %v7253_v36 }
 0x563   : > { %v2620_v25 = vpop.trf.xlu0 }
 0x566   : > { %v2588_v47 = vpop.trf.xlu1 }
 0x567   : > { %4015 = vmatmul.mubr.msk.f32.vlgmr.msra.gmra.mrb[84].mxu1 %vm636_vm0, %v2588_v47  ;;  %v2621_v14 = vpop.trf.xlu0 }
 0x568   : > { %2802 = vmatprep.mubr.f32.mxu1 %v7253_v36 }
 0x56a   : > { %v2589_v55 = vpop.trf.xlu1 }
 0x56b   : > { %4016 = vmatmul.mubr.msk.f32.gmra.mrb[86].mxu1 %vm636_vm0, %v2589_v55  ;;  %v2622_v28 = vpop.trf.xlu0 }
 0x56c   : > { %2808 = vmatprep.mubr.f32.mxu1 %v7253_v36 }
 0x56e   : > { %v2590_v56 = vpop.trf.xlu1 }
 0x56f   : > { %4017 = vmatmul.mubr.msk.f32.gmra.mrb[88].mxu1 %vm636_vm0, %v2590_v56  ;;  %v2623_v30 = vpop.trf.xlu0 }
 0x570   : > { %2814 = vmatprep.mubr.f32.mxu1 %v7253_v36 }
 0x572   : > { %v2591_v6 = vpop.trf.xlu1 }
 0x573   : > { %4018 = vmatmul.mubr.msk.f32.gmra.mrb[90].mxu1 %vm636_vm0, %v2591_v6  ;;  %v2624_v33 = vpop.trf.xlu0 }
 0x574   : > { %2820 = vmatprep.mubr.f32.mxu1 %v7253_v36 }
 0x576   : > { %v2592_v19 = vpop.trf.xlu1 }
 0x577   : > { %4019 = vmatmul.mubr.msk.f32.gmra.mrb[92].mxu1 %vm636_vm0, %v2592_v19  ;;  %v2625_v34 = vpop.trf.xlu0 }
 0x578   : > { %2826 = vmatprep.mubr.f32.mxu1 %v7253_v36 }
 0x57a   : > { %v2593_v20 = vpop.trf.xlu1 }
 0x57b   : > { %4020 = vmatmul.mubr.msk.f32.gmra.mrb[94].mxu1 %vm636_vm0, %v2593_v20  ;;  %v2626_v35 = vpop.trf.xlu0 }
 0x57c   : > { %2832 = vmatprep.mubr.f32.mxu1 %v7253_v36 }
 0x57e   : > { %v2594_v21 = vpop.trf.xlu1 }
 0x57f   : > { %4021 = vmatmul.mubr.msk.f32.gmra.mrb[96].mxu1 %vm636_vm0, %v2594_v21  ;;  %v2627_v39 = vpop.trf.xlu0 }
 0x580   : > { %2838 = vmatprep.mubr.f32.mxu1 %v7253_v36 }
 0x582   : > { %v2595_v22 = vpop.trf.xlu1 }
 0x583   : > { %4022 = vmatmul.mubr.msk.f32.gmra.mrb[98].mxu1 %vm636_vm0, %v2595_v22  ;;  %v2628_v45 = vpop.trf.xlu0 }
 0x584   : > { %2844 = vmatprep.mubr.f32.mxu1 %v7253_v36 }
 0x586   : > { %v2596_v23 = vpop.trf.xlu1 }
 0x587   : > { %4023 = vmatmul.mubr.msk.f32.gmra.mrb[100].mxu1 %vm636_vm0, %v2596_v23  ;;  %v2629_v52 = vpop.trf.xlu0 }
 0x588   : > { %2850 = vmatprep.mubr.f32.mxu1 %v7253_v36 }
 0x58a   : > { %v2597_v24 = vpop.trf.xlu1 }
 0x58b   : > { %4024 = vmatmul.mubr.msk.f32.gmra.mrb[102].mxu1 %vm636_vm0, %v2597_v24  ;;  %v2630_v63 = vpop.trf.xlu0 }
 0x58c   : > { %2856 = vmatprep.mubr.f32.mxu1 %v7253_v36 }
 0x58e   : > { %v2598_v26 = vpop.trf.xlu1 }
 0x58f   : > { %4025 = vmatmul.mubr.msk.f32.gmra.mrb[104].mxu1 %vm636_vm0, %v2598_v26  ;;  %v2631_v10 = vpop.trf.xlu0 }
 0x590   : > { %2862 = vmatprep.mubr.f32.mxu1 %v7253_v36 }
 0x592   : > { %v2599_v27 = vpop.trf.xlu1 }
 0x593   : > { %4026 = vmatmul.mubr.msk.f32.gmra.mrb[106].mxu1 %vm636_vm0, %v2599_v27  ;;  %v2632_v58 = vpop.trf.xlu0 }
 0x594   : > { %2868 = vmatprep.mubr.f32.mxu1 %v7253_v36 }
 0x596   : > { %v2600_v15 = vpop.trf.xlu1 }
 0x597   : > { %4027 = vmatmul.mubr.msk.f32.gmra.mrb[108].mxu1 %vm636_vm0, %v2600_v15  ;;  %v2633_v4 = vpop.trf.xlu0 }
 0x598   : > { %2874 = vmatprep.mubr.f32.mxu1 %v7253_v36 }
 0x59a   : > { %v2601_v29 = vpop.trf.xlu1 }
 0x59b   : > { %4028 = vmatmul.mubr.msk.f32.gmra.mrb[110].mxu1 %vm636_vm0, %v2601_v29  ;;  %v2634_v44 = vpop.trf.xlu0 }
 0x59c   : > { %2880 = vmatprep.mubr.f32.mxu1 %v7253_v36 }
 0x59e   : > { %v2602_v31 = vpop.trf.xlu1 }
 0x59f   : > { %4029 = vmatmul.mubr.msk.f32.gmra.mrb[112].mxu1 %vm636_vm0, %v2602_v31  ;;  %v2635_v19 = vpop.trf.xlu0 }
 0x5a0   : > { %2886 = vmatprep.mubr.f32.mxu1 %v7253_v36 }
 0x5a2   : > { %v2603_v32 = vpop.trf.xlu1 }
 0x5a3   : > { %4030 = vmatmul.mubr.msk.f32.gmra.mrb[114].mxu1 %vm636_vm0, %v2603_v32 }
 0x5a4   : > { %2892 = vmatprep.mubr.f32.mxu1 %v7253_v36 }
 0x5a7   : > { %4031 = vmatmul.mubr.msk.f32.gmra.mrb[116].mxu1 %vm636_vm0, %v2620_v25 }
 0x5a8   : > { %2898 = vmatprep.mubr.f32.mxu1 %v7253_v36 }
 0x5ab   : > { %4032 = vmatmul.mubr.msk.f32.gmra.mrb[118].mxu1 %vm636_vm0, %v2621_v14 }
 0x5ac   : > { %2904 = vmatprep.mubr.f32.mxu1 %v7253_v36 }
 0x5af   : > { %4033 = vmatmul.mubr.msk.f32.gmra.mrb[120].mxu1 %vm636_vm0, %v2622_v28 }
 0x5b0   : > { %2910 = vmatprep.mubr.f32.mxu1 %v7253_v36 }
 0x5b3   : > { %v6024_v37 = vpop.f32.mrb[20].mxu1  ;;  %4034 = vmatmul.mubr.msk.f32.gmra.mrb[122].mxu1 %vm636_vm0, %v2623_v30 }
 0x5b4   : > { %v6027_v38 = vpop.f32.mrb[21].mxu1  ;;  %2916 = vmatprep.mubr.f32.mxu1 %v7253_v36 }
 0x5b5   : > { %v1995_v40 = vmax.f32 %v6024_v37, %v6027_v38 }
 0x5b7   : > { %v6032_v41 = vpop.f32.mrb[22].mxu1  ;;  %1996 = vmax.xlane.f32.xlu0 %v1995_v40  ;;  %4035 = vmatmul.mubr.msk.f32.gmra.mrb[124].mxu1 %vm636_vm0, %v2624_v33 }
 0x5b8   : > { %v6035_v42 = vpop.f32.mrb[23].mxu1  ;;  %2922 = vmatprep.mubr.f32.mxu1 %v7253_v36 }
 0x5b9   : > { %v1998_v43 = vmax.f32 %v6032_v41, %v6035_v42 }
 0x5bb   : > { %v6040_v46 = vpop.f32.mrb[24].mxu1  ;;  %1999 = vmax.xlane.f32.xlu1 %v1998_v43  ;;  %4036 = vmatmul.mubr.msk.f32.gmra.mrb[126].mxu1 %vm636_vm0, %v2625_v34 }
 0x5bc   : > { %v6043_v48 = vpop.f32.mrb[25].mxu1  ;;  %2928 = vmatprep.mubr.f32.mxu1 %v7253_v36 }
 0x5bd   : > { %v2001_v49 = vmax.f32 %v6040_v46, %v6043_v48 }
 0x5bf   : > { %v6048_v50 = vpop.f32.mrb[26].mxu1  ;;  %2002 = vmax.xlane.f32.xlu1 %v2001_v49  ;;  %4037 = vmatmul.mubr.msk.f32.gmra.mrb[128].mxu1 %vm636_vm0, %v2626_v35 }
 0x5c0   : > { %v6051_v51 = vpop.f32.mrb[27].mxu1  ;;  %2934 = vmatprep.mubr.f32.mxu1 %v7253_v36 }
 0x5c1   : > { %v2004_v53 = vmax.f32 %v6048_v50, %v6051_v51 }
 0x5c3   : > { %v6056_v54 = vpop.f32.mrb[28].mxu1  ;;  %2005 = vmax.xlane.f32.xlu1 %v2004_v53  ;;  %4038 = vmatmul.mubr.msk.f32.gmra.mrb[130].mxu1 %vm636_vm0, %v2627_v39 }
 0x5c4   : > { %v6059_v57 = vpop.f32.mrb[29].mxu1  ;;  %2940 = vmatprep.mubr.f32.mxu1 %v7253_v36 }
 0x5c5   : > { %v2007_v60 = vmax.f32 %v6056_v54, %v6059_v57 }
 0x5c7   : > { %v6064_v3 = vpop.f32.mrb[30].mxu1  ;;  %2008 = vmax.xlane.f32.xlu0 %v2007_v60  ;;  %4039 = vmatmul.mubr.msk.f32.gmra.mrb[132].mxu1 %vm636_vm0, %v2628_v45 }
 0x5c8   : > { %v6067_v5 = vpop.f32.mrb[31].mxu1  ;;  %2946 = vmatprep.mubr.f32.mxu1 %v7253_v36 }
 0x5c9   : > { %v2010_v8 = vmax.f32 %v6064_v3, %v6067_v5 }
 0x5cb   : > { %v6072_v9 = vpop.f32.mrb[32].mxu1  ;;  %2011 = vmax.xlane.f32.xlu1 %v2010_v8  ;;  %4040 = vmatmul.mubr.msk.f32.gmra.mrb[134].mxu1 %vm636_vm0, %v2629_v52 }
 0x5cc   : > { %v6075_v7 = vpop.f32.mrb[33].mxu1  ;;  %2952 = vmatprep.mubr.f32.mxu1 %v7253_v36 }
 0x5cd   : > { %v2013_v11 = vmax.f32 %v6072_v9, %v6075_v7 }
 0x5cf   : > { %v6080_v12 = vpop.f32.mrb[34].mxu1  ;;  %2014 = vmax.xlane.f32.xlu0 %v2013_v11  ;;  %4041 = vmatmul.mubr.msk.f32.gmra.mrb[136].mxu1 %vm636_vm0, %v2630_v63 }
 0x5d0   : > { %v6083_v2 = vpop.f32.mrb[35].mxu1  ;;  %2958 = vmatprep.mubr.f32.mxu1 %v7253_v36 }
 0x5d1   : > { %v2016_v59 = vmax.f32 %v6080_v12, %v6083_v2 }
 0x5d3   : > { %v6088_v61 = vpop.f32.mrb[36].mxu1  ;;  %2017 = vmax.xlane.f32.xlu1 %v2016_v59  ;;  %4042 = vmatmul.mubr.msk.f32.gmra.mrb[138].mxu1 %vm636_vm0, %v2631_v10 }
 0x5d4   : > { %v6091_v62 = vpop.f32.mrb[37].mxu1  ;;  %2964 = vmatprep.mubr.f32.mxu1 %v7253_v36 }
 0x5d5   : > { %v2019_v13 = vmax.f32 %v6088_v61, %v6091_v62 }
 0x5d7   : > { %v6096_v16 = vpop.f32.mrb[38].mxu1  ;;  %2020 = vmax.xlane.f32.xlu0 %v2019_v13  ;;  %4043 = vmatmul.mubr.msk.f32.gmra.mrb[140].mxu1 %vm636_vm0, %v2632_v58 }
 0x5d8   : > { %v6099_v0 = vpop.f32.mrb[39].mxu1  ;;  %2970 = vmatprep.mubr.f32.mxu1 %v7253_v36 }
 0x5d9   : > { %v2022_v17 = vmax.f32 %v6096_v16, %v6099_v0 }
 0x5db   : > { %v6104_v1 = vpop.f32.mrb[40].mxu1  ;;  %2023 = vmax.xlane.f32.xlu1 %v2022_v17  ;;  %4044 = vmatmul.mubr.msk.f32.gmra.mrb[142].mxu1 %vm636_vm0, %v2633_v4 }
 0x5dc   : > { %v6107_v18 = vpop.f32.mrb[41].mxu1  ;;  %2976 = vmatprep.mubr.f32.mxu1 %v7253_v36 }
 0x5dd   : > { %v2025_v47 = vmax.f32 %v6104_v1, %v6107_v18 }
 0x5df   : > { %v6112_v55 = vpop.f32.mrb[42].mxu1  ;;  %2026 = vmax.xlane.f32.xlu0 %v2025_v47  ;;  %4045 = vmatmul.mubr.msk.f32.gmra.mrb[144].mxu1 %vm636_vm0, %v2634_v44 }
 0x5e0   : > { %v6115_v56 = vpop.f32.mrb[43].mxu1  ;;  %2982 = vmatprep.mubr.f32.mxu1 %v7253_v36 }
 0x5e1   : > { %v2028_v6 = vmax.f32 %v6112_v55, %v6115_v56 }
 0x5e3   : > { %v6120_v20 = vpop.f32.mrb[44].mxu1  ;;  %2029 = vmax.xlane.f32.xlu1 %v2028_v6  ;;  %4046 = vmatmul.mubr.msk.f32.gmra.mrb[146].mxu1 %vm636_vm0, %v2635_v19 }
 0x5e4   : > { %v6123_v21 = vpop.f32.mrb[45].mxu1  ;;  %3687 = vmatprep.mubr.f32.mxu1 %v7253_v36 }
 0x5e5   : > { %v2031_v22 = vmax.f32 %v6120_v20, %v6123_v21 }
 0x5e7   : > { %v6128_v23 = vpop.f32.mrb[46].mxu1  ;;  %2032 = vmax.xlane.f32.xlu0 %v2031_v22 }
 0x5e8   : > { %v6130_v24 = vpop.f32.mrb[47].mxu1 }
 0x5e9   : > { %v2034_v25 = vmax.f32 %v6128_v23, %v6130_v24 }
 0x5eb   : > { %v6134_v26 = vpop.f32.mrb[48].mxu1  ;;  %2035 = vmax.xlane.f32.xlu1 %v2034_v25 }
 0x5ec   : > { %v6136_v14 = vpop.f32.mrb[49].mxu1 }
 0x5ed   : > { %v2037_v27 = vmax.f32 %v6134_v26, %v6136_v14 }
 0x5ef   : > { %v6140_v15 = vpop.f32.mrb[50].mxu1  ;;  %2038 = vmax.xlane.f32.xlu0 %v2037_v27 }
 0x5f0   : > { %v6142_v28 = vpop.f32.mrb[51].mxu1 }
 0x5f1   : > { %v2040_v29 = vmax.f32 %v6140_v15, %v6142_v28 }
 0x5f3   : > { %2041 = vmax.xlane.f32.xlu1 %v2040_v29  ;;  %v6146_v30 = vpop.f32.mrb[52].mxu1 }
 0x5f4   : > { %v6148_v31 = vpop.f32.mrb[53].mxu1 }
 0x5f5   : > { %v2043_v32 = vmax.f32 %v6146_v30, %v6148_v31 }
 0x5f7   : > { %2044 = vmax.xlane.f32.xlu0 %v2043_v32  ;;  %v6152_v33 = vpop.f32.mrb[54].mxu1 }
 0x5f8   : > { %v6154_v34 = vpop.f32.mrb[55].mxu1 }
 0x5f9   : > { %v2046_v35 = vmax.f32 %v6152_v33, %v6154_v34 }
 0x5fb   : > { %2047 = vmax.xlane.f32.xlu1 %v2046_v35  ;;  %v6158_v39 = vpop.f32.mrb[56].mxu1 }
 0x5fc   : > { %v6160_v40 = vpop.f32.mrb[57].mxu1 }
 0x5fd   : > { %v2049_v43 = vmax.f32 %v6158_v39, %v6160_v40 }
 0x5ff   : > { %2050 = vmax.xlane.f32.xlu0 %v2049_v43  ;;  %v6164_v45 = vpop.f32.mrb[58].mxu1 }
 0x600   : > { %v6166_v49 = vpop.f32.mrb[59].mxu1 }
 0x601   : > { %v2052_v52 = vmax.f32 %v6164_v45, %v6166_v49 }
 0x603   : > { %2053 = vmax.xlane.f32.xlu1 %v2052_v52  ;;  %v6170_v53 = vpop.f32.mrb[60].mxu1 }
 0x604   : > { %v6172_v60 = vpop.f32.mrb[61].mxu1 }
 0x605   : > { %v2055_v63 = vmax.f32 %v6170_v53, %v6172_v60 }
 0x607   : > { %2056 = vmax.xlane.f32.xlu0 %v2055_v63  ;;  %v6176_v8 = vpop.f32.mrb[62].mxu1 }
 0x608   : > { %v6178_v10 = vpop.f32.mrb[63].mxu1 }
 0x609   : > { %v2058_v11 = vmax.f32 %v6176_v8, %v6178_v10 }
 0x60b   : > { %2059 = vmax.xlane.f32.xlu1 %v2058_v11  ;;  %v6182_v58 = vpop.f32.mrb[64].mxu1 }
 0x60c   : > { %v6184_v59 = vpop.f32.mrb[65].mxu1 }
 0x60d   : > { %v2061_v13 = vmax.f32 %v6182_v58, %v6184_v59 }
 0x60f   : > { %2062 = vmax.xlane.f32.xlu0 %v2061_v13  ;;  %v6188_v4 = vpop.f32.mrb[66].mxu1 }
 0x610   : > { %v6190_v17 = vpop.f32.mrb[67].mxu1 }
 0x611   : > { %v2064_v44 = vmax.f32 %v6188_v4, %v6190_v17 }
 0x613   : > { %2065 = vmax.xlane.f32.xlu1 %v2064_v44  ;;  %v6194_v47 = vpop.f32.mrb[68].mxu1 }
 0x614   : > { %v6196_v6 = vpop.f32.mrb[69].mxu1 }
 0x615   : > { %v2067_v19 = vmax.f32 %v6194_v47, %v6196_v6 }
 0x617   : > { %2068 = vmax.xlane.f32.xlu0 %v2067_v19  ;;  %v6200_v22 = vpop.f32.mrb[70].mxu1 }
 0x618   : > { %7410 = vst [vmem:[#allocation34_spill] sm:$0xff] %v6200_v22  ;;  %v6202_v25 = vpop.f32.mrb[71].mxu1 }
 0x619   : > { %7411 = vst [vmem:[#allocation35_spill] sm:$0xff] %v6202_v25  ;;  %v2070_v27 = vmax.f32 %v6200_v22, %v6202_v25 }
 0x61b   : > { %2071 = vmax.xlane.f32.xlu1 %v2070_v27  ;;  %v6206_v29 = vpop.f32.mrb[72].mxu1 }
 0x61c   : > { %7412 = vst [vmem:[#allocation36_spill] sm:$0xff] %v6206_v29  ;;  %v6208_v32 = vpop.f32.mrb[73].mxu1 }
 0x61d   : > { %7413 = vst [vmem:[#allocation37_spill] sm:$0xff] %v6208_v32  ;;  %v2073_v35 = vmax.f32 %v6206_v29, %v6208_v32 }
 0x61f   : > { %2074 = vmax.xlane.f32.xlu0 %v2073_v35  ;;  %v6212_v43 = vpop.f32.mrb[74].mxu1 }
 0x620   : > { %7414 = vst [vmem:[#allocation38_spill] sm:$0xff] %v6212_v43  ;;  %v6214_v52 = vpop.f32.mrb[75].mxu1 }
 0x621   : > { %7415 = vst [vmem:[#allocation39_spill] sm:$0xff] %v6214_v52  ;;  %v2076_v63 = vmax.f32 %v6212_v43, %v6214_v52  ;;  %v1353_v43 = vld [vmem:[#allocation17] sm:$0xff] }
 0x622   : > { %3975 = vmatmul.mubr.msk.f32.vlgmr.msra.gmra.mrb[20].mxu0 %vm636_vm0, %v1353_v43 }
 0x623   : > { %2077 = vmax.xlane.f32.xlu1 %v2076_v63  ;;  %v6218_v11 = vpop.f32.mrb[76].mxu1 }
 0x624   : > { %7416 = vst [vmem:[#allocation40_spill] sm:$0xff] %v6218_v11  ;;  %v6220_v13 = vpop.f32.mrb[77].mxu1 }
 0x625   : > { %7417 = vst [vmem:[#allocation41_spill] sm:$0xff] %v6220_v13  ;;  %v2079_v44 = vmax.f32 %v6218_v11, %v6220_v13  ;;  %v7424_v13 = vmov 0.0  }
 0x626   : > { %1503 = vmatprep.mubr.f32.mxu0 %v7424_v13 }
 0x627   : > { %2080 = vmax.xlane.f32.xlu0 %v2079_v44  ;;  %v6224_v19 = vpop.f32.mrb[78].mxu1 }
 0x628   : > { %7418 = vst [vmem:[#allocation42_spill] sm:$0xff] %v6224_v19  ;;  %v6226_v27 = vpop.f32.mrb[79].mxu1 }
 0x629   : > { %7419 = vst [vmem:[#allocation43_spill] sm:$0xff] %v6226_v27  ;;  %v2082_v35 = vmax.f32 %v6224_v19, %v6226_v27 }
 0x62b   : > { %2083 = vmax.xlane.f32.xlu1 %v2082_v35  ;;  %v6230_v36 = vpop.f32.mrb[80].mxu1 }
 0x62c   : > { %7420 = vst [vmem:[#allocation44_spill] sm:$0xff] %v6230_v36  ;;  %v6232_v52 = vpop.f32.mrb[81].mxu1 }
 0x62d   : > { %7421 = vst [vmem:[#allocation45_spill] sm:$0xff] %v6232_v52  ;;  %v2085_v63 = vmax.f32 %v6230_v36, %v6232_v52 }
 0x62f   : > { %2086 = vmax.xlane.f32.xlu0 %v2085_v63  ;;  %v6236_v32 = vpop.f32.mrb[82].mxu1 }
 0x630   : > { %7422 = vst [vmem:[#allocation46_spill] sm:$0xff] %v6236_v32  ;;  %v6239_v44 = vpop.f32.mrb[83].mxu1 }
 0x631   : > { %7423 = vst [vmem:[#allocation47_spill] sm:$0xff] %v6239_v44  ;;  %v2088_v35 = vmax.f32 %v6236_v32, %v6239_v44 }
 0x633   : > { %2089 = vmax.xlane.f32.xlu1 %v2088_v35 }
 0x63a   : > { %v6244_v27 = vpop.f32.mrb[84].mxu1 }
 0x63b   : > { %7425 = vst [vmem:[#allocation48_spill] sm:$0xff] %v6244_v27  ;;  %v6246_v19 = vpop.f32.mrb[85].mxu1 }
 0x63c   : > { %7426 = vst [vmem:[#allocation49_spill] sm:$0xff] %v6246_v19  ;;  %v2989_v52 = vmax.f32 %v6244_v27, %v6246_v19 }
 0x63e   : > { %2990 = vmax.xlane.f32.xlu0 %v2989_v52  ;;  %v6250_v63 = vpop.f32.mrb[86].mxu1 }
 0x63f   : > { %7427 = vst [vmem:[#allocation50_spill] sm:$0xff] %v6250_v63  ;;  %v6252_v36 = vpop.f32.mrb[87].mxu1 }
 0x640   : > { %7428 = vst [vmem:[#allocation51_spill] sm:$0xff] %v6252_v36  ;;  %v2992_v43 = vmax.f32 %v6250_v63, %v6252_v36 }
 0x642   : > { %2993 = vmax.xlane.f32.xlu1 %v2992_v43  ;;  %v6256_v11 = vpop.f32.mrb[88].mxu1 }
 0x643   : > { %v6258_v44 = vpop.f32.mrb[89].mxu1 }
 0x644   : > { %7429 = vst [vmem:[#allocation52_spill] sm:$0xff] %v6258_v44  ;;  %v2995_v35 = vmax.f32 %v6256_v11, %v6258_v44  ;;  %v1997_v32 = vpop.xlane.xlu0 %1996 }
 0x645   : > { %v2091_v29 = vsub.f32 %v6024_v37, %v1997_v32  ;;  %v2092_v52 = vsub.f32 %v6027_v38, %v1997_v32 }
 0x646   : > { %2996 = vmax.xlane.f32.xlu0 %v2995_v35  ;;  %v6264_v19 = vpop.f32.mrb[90].mxu1 }
 0x647   : > { %7430 = vst [vmem:[#allocation53_spill] sm:$0xff] %v6264_v19  ;;  %v2155_v27 = vmul.f32 1.442695, %v2091_v29  ;;  %v2157_v25 = vmul.f32 1.442695, %v2092_v52  ;;  %v6266_v22 = vpop.f32.mrb[91].mxu1 }
 0x648   : > { %7431 = vst [vmem:[#allocation54_spill] sm:$0xff] %v6266_v22  ;;  %v2998_v43 = vmax.f32 %v6264_v19, %v6266_v22  ;;  %v2000_v36 = vpop.xlane.xlu1 %1999 }
 0x649   : > { %v2093_v63 = vsub.f32 %v6032_v41, %v2000_v36  ;;  %v2094_v44 = vsub.f32 %v6035_v42, %v2000_v36  ;;  %4477 = vpow2.f32 %v2155_v27 }
 0x64a   : > { %2999 = vmax.xlane.f32.xlu1 %v2998_v43  ;;  %v6272_v37 = vpop.f32.mrb[92].mxu1  ;;  %4479 = vpow2.f32 %v2157_v25 }
 0x64b   : > { %v2159_v38 = vmul.f32 1.442695, %v2093_v63  ;;  %v2161_v32 = vmul.f32 1.442695, %v2094_v44  ;;  %v6274_v35 = vpop.f32.mrb[93].mxu1 }
 0x64c   : > { %v3001_v29 = vmax.f32 %v6272_v37, %v6274_v35  ;;  %v2003_v52 = vpop.xlane.xlu1 %2002 }
 0x64d   : > { %v2095_v22 = vsub.f32 %v6040_v46, %v2003_v52  ;;  %v2096_v19 = vsub.f32 %v6043_v48, %v2003_v52  ;;  %4481 = vpow2.f32 %v2159_v38 }
 0x64e   : > { %3002 = vmax.xlane.f32.xlu0 %v3001_v29  ;;  %v6280_v36 = vpop.f32.mrb[94].mxu1  ;;  %4483 = vpow2.f32 %v2161_v32 }
 0x64f   : > { %v2163_v41 = vmul.f32 1.442695, %v2095_v22  ;;  %v2165_v42 = vmul.f32 1.442695, %v2096_v19  ;;  %v6282_v25 = vpop.f32.mrb[95].mxu1 }
 0x650   : > { %v3004_v27 = vmax.f32 %v6280_v36, %v6282_v25  ;;  %v2006_v44 = vpop.xlane.xlu1 %2005 }
 0x651   : > { %v2097_v63 = vsub.f32 %v6048_v50, %v2006_v44  ;;  %v2098_v43 = vsub.f32 %v6051_v51, %v2006_v44  ;;  %4485 = vpow2.f32 %v2163_v41 }
 0x652   : > { %3005 = vmax.xlane.f32.xlu1 %v3004_v27  ;;  %v6288_v46 = vpop.f32.mrb[96].mxu1  ;;  %4487 = vpow2.f32 %v2165_v42 }
 0x653   : > { %7432 = vst [vmem:[#allocation55_spill] sm:$0xff] %v6288_v46  ;;  %v2167_v48 = vmul.f32 1.442695, %v2097_v63  ;;  %v2169_v38 = vmul.f32 1.442695, %v2098_v43  ;;  %v6290_v32 = vpop.f32.mrb[97].mxu1  ;;  %v6292_v22 = vpop.eup %4477 }
 0x654   : > { %7433 = vst [vmem:[#allocation56_spill] sm:$0xff] %v6290_v32  ;;  %7434 = vst [vmem:[#allocation57_spill] sm:$0xff] %v6292_v22  ;;  %v3007_v19 = vmax.f32 %v6288_v46, %v6290_v32  ;;  %v2009_v29 = vpop.xlane.xlu0 %2008  ;;  %v6296_v52 = vpop.eup %4479 }
 0x655   : > { %7435 = vst [vmem:[#allocation58_spill] sm:$0xff] %v6296_v52  ;;  %v2099_v50 = vsub.f32 %v6056_v54, %v2009_v29  ;;  %v2100_v51 = vsub.f32 %v6059_v57, %v2009_v29  ;;  %4489 = vpow2.f32 %v2167_v48  ;;  %v2283_v54 = vadd.f32 %v6296_v52, %v6292_v22 }
 0x656   : > { %3008 = vmax.xlane.f32.xlu0 %v3007_v19  ;;  %v6300_v41 = vpop.f32.mrb[98].mxu1  ;;  %4491 = vpow2.f32 %v2169_v38 }
 0x657   : > { %v2171_v42 = vmul.f32 1.442695, %v2099_v50  ;;  %v2173_v27 = vmul.f32 1.442695, %v2100_v51  ;;  %v6302_v44 = vpop.f32.mrb[99].mxu1  ;;  %v6304_v63 = vpop.eup %4481 }
 0x658   : > { %7436 = vst [vmem:[#allocation59_spill] sm:$0xff] %v6304_v63  ;;  %v3010_v43 = vmax.f32 %v6300_v41, %v6302_v44  ;;  %v2012_v32 = vpop.xlane.xlu1 %2011  ;;  %v6310_v46 = vpop.eup %4483 }
 0x659   : > { %7437 = vst [vmem:[#allocation60_spill] sm:$0xff] %v6310_v46  ;;  %v2101_v57 = vsub.f32 %v6064_v3, %v2012_v32  ;;  %v2102_v48 = vsub.f32 %v6067_v5, %v2012_v32  ;;  %4493 = vpow2.f32 %v2171_v42  ;;  %v2286_v3 = vadd.f32 %v6310_v46, %v6304_v63 }
 0x65a   : > { %3011 = vmax.xlane.f32.xlu1 %v3010_v43  ;;  %v6314_v38 = vpop.f32.mrb[100].mxu1  ;;  %2284 = vadd.xlane.f32.xlu0 %v2283_v54  ;;  %4495 = vpow2.f32 %v2173_v27 }
 0x65b   : > { %v2175_v19 = vmul.f32 1.442695, %v2101_v57  ;;  %v2177_v29 = vmul.f32 1.442695, %v2102_v48  ;;  %v6316_v50 = vpop.f32.mrb[101].mxu1  ;;  %v6318_v51 = vpop.eup %4485 }
 0x65c   : > { %7438 = vst [vmem:[#allocation61_spill] sm:$0xff] %v6318_v51  ;;  %v3013_v22 = vmax.f32 %v6314_v38, %v6316_v50  ;;  %v2015_v52 = vpop.xlane.xlu0 %2014  ;;  %v6324_v5 = vpop.eup %4487 }
 0x65d   : > { %7439 = vst [vmem:[#allocation62_spill] sm:$0xff] %v6324_v5  ;;  %v2103_v32 = vsub.f32 %v6072_v9, %v2015_v52  ;;  %v2104_v42 = vsub.f32 %v6075_v7, %v2015_v52  ;;  %4497 = vpow2.f32 %v2175_v19  ;;  %v2289_v9 = vadd.f32 %v6324_v5, %v6318_v51 }
 0x65e   : > { %2287 = vadd.xlane.f32.xlu1 %v2286_v3  ;;  %v6328_v27 = vpop.f32.mrb[102].mxu1  ;;  %3014 = vmax.xlane.f32.xlu0 %v3013_v22  ;;  %4499 = vpow2.f32 %v2177_v29 }
 0x65f   : > { %v2179_v43 = vmul.f32 1.442695, %v2103_v32  ;;  %v2181_v54 = vmul.f32 1.442695, %v2104_v42  ;;  %v6330_v57 = vpop.f32.mrb[103].mxu1  ;;  %v6332_v48 = vpop.eup %4489 }
 0x660   : > { %7440 = vst [vmem:[#allocation63_spill] sm:$0xff] %v6332_v48  ;;  %v3016_v63 = vmax.f32 %v6328_v27, %v6330_v57  ;;  %v2018_v46 = vpop.xlane.xlu1 %2017  ;;  %v6338_v7 = vpop.eup %4491 }
 0x661   : > { %7441 = vst [vmem:[#allocation64_spill] sm:$0xff] %v6338_v7  ;;  %v2105_v52 = vsub.f32 %v6080_v12, %v2018_v46  ;;  %v2106_v22 = vsub.f32 %v6083_v2, %v2018_v46  ;;  %4501 = vpow2.f32 %v2179_v43  ;;  %v2292_v12 = vadd.f32 %v6338_v7, %v6332_v48 }
 0x662   : > { %3017 = vmax.xlane.f32.xlu1 %v3016_v63  ;;  %v6342_v19 = vpop.f32.mrb[104].mxu1  ;;  %2290 = vadd.xlane.f32.xlu0 %v2289_v9  ;;  %4503 = vpow2.f32 %v2181_v54 }
 0x663   : > { %v2183_v29 = vmul.f32 1.442695, %v2105_v52  ;;  %v2185_v3 = vmul.f32 1.442695, %v2106_v22  ;;  %v6344_v32 = vpop.f32.mrb[105].mxu1  ;;  %v6346_v42 = vpop.eup %4493 }
 0x664   : > { %7442 = vst [vmem:[#allocation65_spill] sm:$0xff] %v6346_v42  ;;  %v3019_v51 = vmax.f32 %v6342_v19, %v6344_v32  ;;  %v2021_v5 = vpop.xlane.xlu0 %2020  ;;  %v6352_v2 = vpop.eup %4495 }
 0x665   : > { %7443 = vst [vmem:[#allocation66_spill] sm:$0xff] %v6352_v2  ;;  %v2107_v46 = vsub.f32 %v6088_v61, %v2021_v5  ;;  %v2108_v63 = vsub.f32 %v6091_v62, %v2021_v5  ;;  %4505 = vpow2.f32 %v2183_v29  ;;  %v2295_v61 = vadd.f32 %v6352_v2, %v6346_v42 }
 0x666   : > { %2293 = vadd.xlane.f32.xlu1 %v2292_v12  ;;  %v6356_v43 = vpop.f32.mrb[106].mxu1  ;;  %3020 = vmax.xlane.f32.xlu0 %v3019_v51  ;;  %4507 = vpow2.f32 %v2185_v3 }
 0x667   : > { %v2187_v54 = vmul.f32 1.442695, %v2107_v46  ;;  %v2189_v9 = vmul.f32 1.442695, %v2108_v63  ;;  %v6358_v52 = vpop.f32.mrb[107].mxu1  ;;  %v6360_v22 = vpop.eup %4497 }
 0x668   : > { %7444 = vst [vmem:[#allocation67_spill] sm:$0xff] %v6360_v22  ;;  %v3022_v48 = vmax.f32 %v6356_v43, %v6358_v52  ;;  %v2024_v7 = vpop.xlane.xlu1 %2023  ;;  %v6366_v62 = vpop.eup %4499 }
 0x669   : > { %7445 = vst [vmem:[#allocation68_spill] sm:$0xff] %v6366_v62  ;;  %v2109_v5 = vsub.f32 %v6096_v16, %v2024_v7  ;;  %v2110_v51 = vsub.f32 %v6099_v0, %v2024_v7  ;;  %4509 = vpow2.f32 %v2187_v54  ;;  %v2298_v16 = vadd.f32 %v6366_v62, %v6360_v22 }
 0x66a   : > { %3023 = vmax.xlane.f32.xlu1 %v3022_v48  ;;  %v6370_v29 = vpop.f32.mrb[108].mxu1  ;;  %2296 = vadd.xlane.f32.xlu0 %v2295_v61  ;;  %4511 = vpow2.f32 %v2189_v9 }
 0x66b   : > { %v2191_v3 = vmul.f32 1.442695, %v2109_v5  ;;  %v2193_v12 = vmul.f32 1.442695, %v2110_v51  ;;  %v6372_v46 = vpop.f32.mrb[109].mxu1  ;;  %v6374_v63 = vpop.eup %4501 }
 0x66c   : > { %7446 = vst [vmem:[#allocation69_spill] sm:$0xff] %v6374_v63  ;;  %v3025_v42 = vmax.f32 %v6370_v29, %v6372_v46  ;;  %v2027_v2 = vpop.xlane.xlu0 %2026  ;;  %v6380_v0 = vpop.eup %4503 }
 0x66d   : > { %7447 = vst [vmem:[#allocation70_spill] sm:$0xff] %v6380_v0  ;;  %v2111_v48 = vsub.f32 %v6104_v1, %v2027_v2  ;;  %v2112_v7 = vsub.f32 %v6107_v18, %v2027_v2  ;;  %4513 = vpow2.f32 %v2191_v3  ;;  %v2301_v1 = vadd.f32 %v6380_v0, %v6374_v63 }
 0x66e   : > { %2299 = vadd.xlane.f32.xlu1 %v2298_v16  ;;  %v6384_v54 = vpop.f32.mrb[110].mxu1  ;;  %3026 = vmax.xlane.f32.xlu0 %v3025_v42  ;;  %4515 = vpow2.f32 %v2193_v12 }
 0x66f   : > { %v2195_v9 = vmul.f32 1.442695, %v2111_v48  ;;  %v2197_v61 = vmul.f32 1.442695, %v2112_v7  ;;  %v6386_v5 = vpop.f32.mrb[111].mxu1  ;;  %v6388_v51 = vpop.eup %4505 }
 0x670   : > { %7448 = vst [vmem:[#allocation71_spill] sm:$0xff] %v6388_v51  ;;  %v3028_v22 = vmax.f32 %v6384_v54, %v6386_v5  ;;  %v2030_v62 = vpop.xlane.xlu1 %2029  ;;  %v6394_v18 = vpop.eup %4507 }
 0x671   : > { %7449 = vst [vmem:[#allocation72_spill] sm:$0xff] %v6394_v18  ;;  %v2113_v2 = vsub.f32 %v6112_v55, %v2030_v62  ;;  %v2114_v42 = vsub.f32 %v6115_v56, %v2030_v62  ;;  %4517 = vpow2.f32 %v2195_v9  ;;  %v2304_v55 = vadd.f32 %v6394_v18, %v6388_v51 }
 0x672   : > { %3029 = vmax.xlane.f32.xlu1 %v3028_v22  ;;  %v6398_v3 = vpop.f32.mrb[112].mxu1  ;;  %2302 = vadd.xlane.f32.xlu0 %v2301_v1  ;;  %4519 = vpow2.f32 %v2197_v61 }
 0x673   : > { %v2199_v12 = vmul.f32 1.442695, %v2113_v2  ;;  %v2201_v16 = vmul.f32 1.442695, %v2114_v42  ;;  %v6400_v48 = vpop.f32.mrb[113].mxu1  ;;  %v6402_v7 = vpop.eup %4509 }
 0x674   : > { %7450 = vst [vmem:[#allocation73_spill] sm:$0xff] %v6402_v7  ;;  %v3031_v63 = vmax.f32 %v6398_v3, %v6400_v48  ;;  %v2033_v0 = vpop.xlane.xlu0 %2032  ;;  %v6408_v56 = vpop.eup %4511 }
 0x675   : > { %7451 = vst [vmem:[#allocation74_spill] sm:$0xff] %v6408_v56  ;;  %v2115_v22 = vsub.f32 %v6120_v20, %v2033_v0  ;;  %v2116_v62 = vsub.f32 %v6123_v21, %v2033_v0  ;;  %4521 = vpow2.f32 %v2199_v12  ;;  %v2307_v20 = vadd.f32 %v6408_v56, %v6402_v7 }
 0x676   : > { %2305 = vadd.xlane.f32.xlu1 %v2304_v55  ;;  %v6412_v9 = vpop.f32.mrb[114].mxu1  ;;  %3032 = vmax.xlane.f32.xlu0 %v3031_v63  ;;  %4523 = vpow2.f32 %v2201_v16 }
 0x677   : > { %v2203_v61 = vmul.f32 1.442695, %v2115_v22  ;;  %v2205_v1 = vmul.f32 1.442695, %v2116_v62  ;;  %v6414_v2 = vpop.f32.mrb[115].mxu1  ;;  %v6416_v42 = vpop.eup %4513  ;;  %v1354_v62 = vld [vmem:[#allocation17 + $0x8] sm:$0xff] }
 0x678   : > { %7452 = vst [vmem:[#allocation75_spill] sm:$0xff] %v6414_v2  ;;  %7453 = vst [vmem:[#allocation76_spill] sm:$0xff] %v6416_v42  ;;  %v3034_v51 = vmax.f32 %v6412_v9, %v6414_v2  ;;  %v2036_v18 = vpop.xlane.xlu1 %2035  ;;  %v6422_v21 = vpop.eup %4515  ;;  %3976 = vmatmul.mubr.msk.f32.gmra.mrb[22].mxu0 %vm636_vm0, %v1354_v62 }
 0x679   : > { %v2117_v0 = vsub.f32 %v6128_v23, %v2036_v18  ;;  %v2118_v63 = vsub.f32 %v6130_v24, %v2036_v18  ;;  %4525 = vpow2.f32 %v2203_v61  ;;  %v2310_v23 = vadd.f32 %v6422_v21, %v6416_v42  ;;  %1509 = vmatprep.mubr.f32.mxu0 %v7424_v13 }
 0x67a   : > { %3035 = vmax.xlane.f32.xlu1 %v3034_v51  ;;  %v6426_v12 = vpop.f32.mrb[116].mxu1  ;;  %2308 = vadd.xlane.f32.xlu0 %v2307_v20  ;;  %4527 = vpow2.f32 %v2205_v1 }
 0x67b   : > { %v2207_v16 = vmul.f32 1.442695, %v2117_v0  ;;  %v2209_v55 = vmul.f32 1.442695, %v2118_v63  ;;  %v6428_v22 = vpop.f32.mrb[117].mxu1  ;;  %v6430_v2 = vpop.eup %4517  ;;  %v1355_v63 = vld [vmem:[#allocation17 + $0x10] sm:$0xff] }
 0x67c   : > { %7454 = vst [vmem:[#allocation77_spill] sm:$0xff] %v6430_v2  ;;  %v3037_v7 = vmax.f32 %v6426_v12, %v6428_v22  ;;  %v2039_v56 = vpop.xlane.xlu0 %2038  ;;  %v6437_v24 = vpop.eup %4519  ;;  %3977 = vmatmul.mubr.msk.f32.gmra.mrb[24].mxu0 %vm636_vm0, %v1355_v63 }
 0x67d   : > { %7455 = vst [vmem:[#allocation78_spill] sm:$0xff] %v6437_v24  ;;  %v2119_v51 = vsub.f32 %v6134_v26, %v2039_v56  ;;  %v2120_v18 = vsub.f32 %v6136_v14, %v2039_v56  ;;  %4529 = vpow2.f32 %v2207_v16  ;;  %v2313_v14 = vadd.f32 %v6437_v24, %v6430_v2  ;;  %1515 = vmatprep.mubr.f32.mxu0 %v7424_v13 }
 0x67e   : > { %2311 = vadd.xlane.f32.xlu1 %v2310_v23  ;;  %v6442_v61 = vpop.f32.mrb[118].mxu1  ;;  %3038 = vmax.xlane.f32.xlu0 %v3037_v7  ;;  %4531 = vpow2.f32 %v2209_v55 }
 0x67f   : > { %v2211_v1 = vmul.f32 1.442695, %v2119_v51  ;;  %v2213_v20 = vmul.f32 1.442695, %v2120_v18  ;;  %v6444_v0 = vpop.f32.mrb[119].mxu1  ;;  %v6446_v62 = vpop.eup %4521 }
 0x680   : > { %7456 = vst [vmem:[#allocation79_spill] sm:$0xff] %v6446_v62  ;;  %v3040_v26 = vmax.f32 %v6442_v61, %v6444_v0  ;;  %v2042_v42 = vpop.xlane.xlu1 %2041  ;;  %v6453_v56 = vpop.eup %4523 }
 0x681   : > { %7457 = vst [vmem:[#allocation80_spill] sm:$0xff] %v6453_v56  ;;  %v2121_v7 = vsub.f32 %v6140_v15, %v2042_v42  ;;  %v2122_v16 = vsub.f32 %v6142_v28, %v2042_v42  ;;  %4533 = vpow2.f32 %v2211_v1  ;;  %v2316_v28 = vadd.f32 %v6453_v56, %v6446_v62 }
 0x682   : > { %3041 = vmax.xlane.f32.xlu1 %v3040_v26  ;;  %v6458_v55 = vpop.f32.mrb[120].mxu1  ;;  %2314 = vadd.xlane.f32.xlu0 %v2313_v14  ;;  %4535 = vpow2.f32 %v2213_v20 }
 0x683   : > { %v2215_v23 = vmul.f32 1.442695, %v2121_v7  ;;  %v2217_v51 = vmul.f32 1.442695, %v2122_v16  ;;  %v6460_v18 = vpop.f32.mrb[121].mxu1  ;;  %v6462_v2 = vpop.eup %4525 }
 0x684   : > { %7458 = vst [vmem:[#allocation81_spill] sm:$0xff] %v6462_v2  ;;  %v3043_v63 = vmax.f32 %v6458_v55, %v6460_v18  ;;  %v2045_v15 = vpop.xlane.xlu0 %2044  ;;  %v6468_v42 = vpop.eup %4527 }
 0x685   : > { %7459 = vst [vmem:[#allocation82_spill] sm:$0xff] %v6468_v42  ;;  %v2123_v1 = vsub.f32 %v6146_v30, %v2045_v15  ;;  %v2124_v26 = vsub.f32 %v6148_v31, %v2045_v15  ;;  %4537 = vpow2.f32 %v2215_v23  ;;  %v2319_v30 = vadd.f32 %v6468_v42, %v6462_v2 }
 0x686   : > { %2317 = vadd.xlane.f32.xlu1 %v2316_v28  ;;  %v6472_v20 = vpop.f32.mrb[122].mxu1  ;;  %3044 = vmax.xlane.f32.xlu0 %v3043_v63  ;;  %4539 = vpow2.f32 %v2217_v51 }
 0x687   : > { %v2219_v14 = vmul.f32 1.442695, %v2123_v1  ;;  %v2221_v7 = vmul.f32 1.442695, %v2124_v26  ;;  %v6474_v16 = vpop.f32.mrb[123].mxu1  ;;  %v6476_v24 = vpop.eup %4529 }
 0x688   : > { %7460 = vst [vmem:[#allocation83_spill] sm:$0xff] %v6476_v24  ;;  %v3046_v62 = vmax.f32 %v6472_v20, %v6474_v16  ;;  %v2048_v56 = vpop.xlane.xlu1 %2047  ;;  %v6482_v31 = vpop.eup %4531 }
 0x689   : > { %7461 = vst [vmem:[#allocation84_spill] sm:$0xff] %v6482_v31  ;;  %v2125_v23 = vsub.f32 %v6152_v33, %v2048_v56  ;;  %v2126_v63 = vsub.f32 %v6154_v34, %v2048_v56  ;;  %4541 = vpow2.f32 %v2219_v14  ;;  %v2322_v33 = vadd.f32 %v6482_v31, %v6476_v24 }
 0x68a   : > { %3047 = vmax.xlane.f32.xlu1 %v3046_v62  ;;  %v6486_v51 = vpop.f32.mrb[124].mxu1  ;;  %2320 = vadd.xlane.f32.xlu0 %v2319_v30  ;;  %4543 = vpow2.f32 %v2221_v7 }
 0x68b   : > { %v2223_v15 = vmul.f32 1.442695, %v2125_v23  ;;  %v2225_v28 = vmul.f32 1.442695, %v2126_v63  ;;  %v6488_v1 = vpop.f32.mrb[125].mxu1  ;;  %v6490_v26 = vpop.eup %4533 }
 0x68c   : > { %7462 = vst [vmem:[#allocation85_spill] sm:$0xff] %v6490_v26  ;;  %v3049_v2 = vmax.f32 %v6486_v51, %v6488_v1  ;;  %v2051_v42 = vpop.xlane.xlu0 %2050  ;;  %v6496_v34 = vpop.eup %4535 }
 0x68d   : > { %7463 = vst [vmem:[#allocation86_spill] sm:$0xff] %v6496_v34  ;;  %v2127_v62 = vsub.f32 %v6158_v39, %v2051_v42  ;;  %v2128_v56 = vsub.f32 %v6160_v40, %v2051_v42  ;;  %4545 = vpow2.f32 %v2223_v15  ;;  %v2325_v39 = vadd.f32 %v6496_v34, %v6490_v26 }
 0x68e   : > { %2323 = vadd.xlane.f32.xlu1 %v2322_v33  ;;  %v6500_v14 = vpop.f32.mrb[126].mxu1  ;;  %3050 = vmax.xlane.f32.xlu0 %v3049_v2  ;;  %4547 = vpow2.f32 %v2225_v28 }
 0x68f   : > { %v2227_v7 = vmul.f32 1.442695, %v2127_v62  ;;  %v2229_v30 = vmul.f32 1.442695, %v2128_v56  ;;  %v6502_v23 = vpop.f32.mrb[127].mxu1  ;;  %v6504_v63 = vpop.eup %4537 }
 0x690   : > { %7464 = vst [vmem:[#allocation87_spill] sm:$0xff] %v6504_v63  ;;  %v3052_v24 = vmax.f32 %v6500_v14, %v6502_v23  ;;  %v2054_v31 = vpop.xlane.xlu1 %2053  ;;  %v6510_v40 = vpop.eup %4539 }
 0x691   : > { %7465 = vst [vmem:[#allocation88_spill] sm:$0xff] %v6510_v40  ;;  %v2129_v42 = vsub.f32 %v6164_v45, %v2054_v31  ;;  %v2130_v2 = vsub.f32 %v6166_v49, %v2054_v31  ;;  %4549 = vpow2.f32 %v2227_v7  ;;  %v2328_v45 = vadd.f32 %v6510_v40, %v6504_v63 }
 0x692   : > { %3053 = vmax.xlane.f32.xlu1 %v3052_v24  ;;  %v6514_v15 = vpop.f32.mrb[128].mxu1  ;;  %2326 = vadd.xlane.f32.xlu0 %v2325_v39  ;;  %4551 = vpow2.f32 %v2229_v30 }
 0x693   : > { %v2231_v28 = vmul.f32 1.442695, %v2129_v42  ;;  %v2233_v33 = vmul.f32 1.442695, %v2130_v2  ;;  %v6516_v62 = vpop.f32.mrb[129].mxu1  ;;  %v6518_v56 = vpop.eup %4541 }
 0x694   : > { %7466 = vst [vmem:[#allocation89_spill] sm:$0xff] %v6518_v56  ;;  %v3055_v26 = vmax.f32 %v6514_v15, %v6516_v62  ;;  %v2057_v34 = vpop.xlane.xlu0 %2056  ;;  %v6524_v49 = vpop.eup %4543 }
 0x695   : > { %7467 = vst [vmem:[#allocation90_spill] sm:$0xff] %v6524_v49  ;;  %v2131_v24 = vsub.f32 %v6170_v53, %v2057_v34  ;;  %v2132_v31 = vsub.f32 %v6172_v60, %v2057_v34  ;;  %4553 = vpow2.f32 %v2231_v28  ;;  %v2331_v53 = vadd.f32 %v6524_v49, %v6518_v56 }
 0x696   : > { %2329 = vadd.xlane.f32.xlu1 %v2328_v45  ;;  %v6528_v7 = vpop.f32.mrb[130].mxu1  ;;  %3056 = vmax.xlane.f32.xlu0 %v3055_v26  ;;  %4555 = vpow2.f32 %v2233_v33 }
 0x697   : > { %7468 = vst [vmem:[#allocation91_spill] sm:$0xff] %v6528_v7  ;;  %v2235_v30 = vmul.f32 1.442695, %v2131_v24  ;;  %v2237_v39 = vmul.f32 1.442695, %v2132_v31  ;;  %v6530_v42 = vpop.f32.mrb[131].mxu1  ;;  %v6532_v2 = vpop.eup %4545 }
 0x698   : > { %7469 = vst [vmem:[#allocation92_spill] sm:$0xff] %v6530_v42  ;;  %7470 = vst [vmem:[#allocation93_spill] sm:$0xff] %v6532_v2  ;;  %v3058_v63 = vmax.f32 %v6528_v7, %v6530_v42  ;;  %v2060_v40 = vpop.xlane.xlu1 %2059  ;;  %v6538_v60 = vpop.eup %4547  ;;  %v7508_v42 = vld [vmem:[#allocation44_spill] sm:$0xff] }
 0x699   : > { %7471 = vst [vmem:[#allocation94_spill] sm:$0xff] %v6538_v60  ;;  %v2133_v34 = vsub.f32 %v6176_v8, %v2060_v40  ;;  %v2134_v26 = vsub.f32 %v6178_v10, %v2060_v40  ;;  %4557 = vpow2.f32 %v2235_v30  ;;  %v2334_v8 = vadd.f32 %v6538_v60, %v6532_v2 }
 0x69a   : > { %3059 = vmax.xlane.f32.xlu1 %v3058_v63  ;;  %v6542_v28 = vpop.f32.mrb[132].mxu1  ;;  %2332 = vadd.xlane.f32.xlu0 %v2331_v53  ;;  %4559 = vpow2.f32 %v2237_v39 }
 0x69b   : > { %7472 = vst [vmem:[#allocation95_spill] sm:$0xff] %v6542_v28  ;;  %v2239_v33 = vmul.f32 1.442695, %v2133_v34  ;;  %v2241_v45 = vmul.f32 1.442695, %v2134_v26  ;;  %v6544_v24 = vpop.f32.mrb[133].mxu1  ;;  %v6546_v31 = vpop.eup %4549 }
 0x69c   : > { %7473 = vst [vmem:[#allocation96_spill] sm:$0xff] %v6544_v24  ;;  %7474 = vst [vmem:[#allocation97_spill] sm:$0xff] %v6546_v31  ;;  %v3061_v56 = vmax.f32 %v6542_v28, %v6544_v24  ;;  %v2063_v49 = vpop.xlane.xlu0 %2062  ;;  %v6552_v10 = vpop.eup %4551 }
 0x69d   : > { %7475 = vst [vmem:[#allocation98_spill] sm:$0xff] %v6552_v10  ;;  %v2135_v63 = vsub.f32 %v6182_v58, %v2063_v49  ;;  %v2136_v40 = vsub.f32 %v6184_v59, %v2063_v49  ;;  %4561 = vpow2.f32 %v2239_v33  ;;  %v2337_v58 = vadd.f32 %v6552_v10, %v6546_v31 }
 0x69e   : > { %2335 = vadd.xlane.f32.xlu1 %v2334_v8  ;;  %v6556_v30 = vpop.f32.mrb[134].mxu1  ;;  %3062 = vmax.xlane.f32.xlu0 %v3061_v56  ;;  %4563 = vpow2.f32 %v2241_v45 }
 0x69f   : > { %7476 = vst [vmem:[#allocation99_spill] sm:$0xff] %v6556_v30  ;;  %v2243_v39 = vmul.f32 1.442695, %v2135_v63  ;;  %v2245_v53 = vmul.f32 1.442695, %v2136_v40  ;;  %v6558_v34 = vpop.f32.mrb[135].mxu1  ;;  %v6560_v26 = vpop.eup %4553 }
 0x6a0   : > { %7477 = vst [vmem:[#allocation100_spill] sm:$0xff] %v6558_v34  ;;  %7478 = vst [vmem:[#allocation101_spill] sm:$0xff] %v6560_v26  ;;  %v3064_v2 = vmax.f32 %v6556_v30, %v6558_v34  ;;  %v2066_v60 = vpop.xlane.xlu1 %2065  ;;  %v6566_v59 = vpop.eup %4555 }
 0x6a1   : > { %7479 = vst [vmem:[#allocation102_spill] sm:$0xff] %v6566_v59  ;;  %4565 = vpow2.f32 %v2243_v39  ;;  %v2137_v49 = vsub.f32 %v6188_v4, %v2066_v60  ;;  %v2138_v56 = vsub.f32 %v6190_v17, %v2066_v60  ;;  %v2340_v4 = vadd.f32 %v6566_v59, %v6560_v26 }
 0x6a2   : > { %4567 = vpow2.f32 %v2245_v53  ;;  %3065 = vmax.xlane.f32.xlu1 %v3064_v2  ;;  %v6570_v33 = vpop.f32.mrb[136].mxu1  ;;  %2338 = vadd.xlane.f32.xlu0 %v2337_v58 }
 0x6a3   : > { %7480 = vst [vmem:[#allocation103_spill] sm:$0xff] %v6570_v33  ;;  %v2247_v45 = vmul.f32 1.442695, %v2137_v49  ;;  %v2249_v8 = vmul.f32 1.442695, %v2138_v56  ;;  %v6572_v63 = vpop.f32.mrb[137].mxu1  ;;  %v6574_v40 = vpop.eup %4557 }
 0x6a4   : > { %7481 = vst [vmem:[#allocation104_spill] sm:$0xff] %v6572_v63  ;;  %7482 = vst [vmem:[#allocation105_spill] sm:$0xff] %v6574_v40  ;;  %v3067_v31 = vmax.f32 %v6570_v33, %v6572_v63  ;;  %v2069_v10 = vpop.xlane.xlu0 %2068  ;;  %v6580_v39 = vpop.eup %4559 }
 0x6a5   : > { %7483 = vst [vmem:[#allocation106_spill] sm:$0xff] %v6580_v39  ;;  %4569 = vpow2.f32 %v2247_v45  ;;  %v2139_v17 = vsub.f32 %v6194_v47, %v2069_v10  ;;  %v2140_v2 = vsub.f32 %v6196_v6, %v2069_v10  ;;  %v2343_v47 = vadd.f32 %v6580_v39, %v6574_v40  ;;  %v7488_v6 = vld [vmem:[#allocation34_spill] sm:$0xff] }
 0x6a6   : > { %4571 = vpow2.f32 %v2249_v8  ;;  %2341 = vadd.xlane.f32.xlu1 %v2340_v4  ;;  %v6584_v60 = vpop.f32.mrb[138].mxu1  ;;  %3068 = vmax.xlane.f32.xlu0 %v3067_v31  ;;  %v7489_v8 = vld [vmem:[#allocation35_spill] sm:$0xff] }
 0x6a7   : > { %7484 = vst [vmem:[#allocation107_spill] sm:$0xff] %v6584_v60  ;;  %v2251_v53 = vmul.f32 1.442695, %v2139_v17  ;;  %v2253_v58 = vmul.f32 1.442695, %v2140_v2  ;;  %v6586_v49 = vpop.f32.mrb[139].mxu1  ;;  %v6588_v56 = vpop.eup %4561 }
 0x6a8   : > { %7485 = vst [vmem:[#allocation108_spill] sm:$0xff] %v6586_v49  ;;  %7486 = vst [vmem:[#allocation109_spill] sm:$0xff] %v6588_v56  ;;  %v3070_v26 = vmax.f32 %v6584_v60, %v6586_v49  ;;  %v2072_v59 = vpop.xlane.xlu1 %2071  ;;  %v6594_v45 = vpop.eup %4563 }
 0x6a9   : > { %7487 = vst [vmem:[#allocation110_spill] sm:$0xff] %v6594_v45  ;;  %4573 = vpow2.f32 %v2251_v53  ;;  %v2141_v10 = vsub.f32 %v7488_v6, %v2072_v59  ;;  %v2142_v31 = vsub.f32 %v7489_v8, %v2072_v59  ;;  %v2346_v53 = vadd.f32 %v6594_v45, %v6588_v56 }
 0x6aa   : > { %4575 = vpow2.f32 %v2253_v58  ;;  %3071 = vmax.xlane.f32.xlu1 %v3070_v26  ;;  %2344 = vadd.xlane.f32.xlu0 %v2343_v47  ;;  %v6598_v4 = vpop.f32.mrb[140].mxu1  ;;  %v7492_v26 = vld [vmem:[#allocation36_spill] sm:$0xff]  ;;  %v7493_v47 = vld [vmem:[#allocation37_spill] sm:$0xff] }
 0x6ab   : > { %v6600_v17 = vpop.eup %4565  ;;  %v2255_v2 = vmul.f32 1.442695, %v2141_v10  ;;  %v2257_v49 = vmul.f32 1.442695, %v2142_v31  ;;  %v6602_v60 = vpop.f32.mrb[141].mxu1 }
 0x6ac   : > { %7490 = vst [vmem:[#allocation34_spill] sm:$0xff] %v6600_v17  ;;  %v6604_v63 = vpop.eup %4567  ;;  %v2075_v40 = vpop.xlane.xlu0 %2074 }
 0x6ad   : > { %7491 = vst [vmem:[#allocation35_spill] sm:$0xff] %v6604_v63  ;;  %4577 = vpow2.f32 %v2255_v2  ;;  %v2143_v58 = vsub.f32 %v7492_v26, %v2075_v40  ;;  %v2144_v6 = vsub.f32 %v7493_v47, %v2075_v40  ;;  %v2349_v10 = vadd.f32 %v6604_v63, %v6600_v17  ;;  %v7497_v26 = vld [vmem:[#allocation38_spill] sm:$0xff] }
 0x6ae   : > { %4579 = vpow2.f32 %v2257_v49  ;;  %2347 = vadd.xlane.f32.xlu1 %v2346_v53  ;;  %v6614_v8 = vpop.f32.mrb[142].mxu1  ;;  %v7498_v49 = vld [vmem:[#allocation39_spill] sm:$0xff] }
 0x6af   : > { %v6616_v31 = vpop.eup %4569  ;;  %v2259_v39 = vmul.f32 1.442695, %v2143_v58  ;;  %v2261_v33 = vmul.f32 1.442695, %v2144_v6  ;;  %2350 = vadd.xlane.f32.xlu0 %v2349_v10  ;;  %v6618_v56 = vpop.f32.mrb[143].mxu1 }
 0x6b0   : > { %7494 = vst [vmem:[#allocation36_spill] sm:$0xff] %v6616_v31  ;;  %7495 = vst [vmem:[#allocation37_spill] sm:$0xff] %v6618_v56  ;;  %v6620_v59 = vpop.eup %4571  ;;  %v2078_v2 = vpop.xlane.xlu1 %2077 }
 0x6b1   : > { %7496 = vst [vmem:[#allocation111_spill] sm:$0xff] %v6620_v59  ;;  %4581 = vpow2.f32 %v2259_v39  ;;  %v2145_v47 = vsub.f32 %v7497_v26, %v2078_v2  ;;  %v2146_v53 = vsub.f32 %v7498_v49, %v2078_v2  ;;  %v2352_v17 = vadd.f32 %v6620_v59, %v6616_v31  ;;  %v1356_v2 = vld [vmem:[#allocation17 + $0x18] sm:$0xff]  ;;  %v7501_v49 = vld [vmem:[#allocation40_spill] sm:$0xff] }
 0x6b2   : > { %4583 = vpow2.f32 %v2261_v33  ;;  %v6628_v58 = vpop.f32.mrb[144].mxu1  ;;  %v7502_v33 = vld [vmem:[#allocation41_spill] sm:$0xff]  ;;  %3978 = vmatmul.mubr.msk.f32.gmra.mrb[26].mxu0 %vm636_vm0, %v1356_v2  ;;  %v7505_v2 = vld [vmem:[#allocation42_spill] sm:$0xff] }
 0x6b3   : > { %v6630_v6 = vpop.eup %4573  ;;  %v2263_v10 = vmul.f32 1.442695, %v2145_v47  ;;  %v2265_v63 = vmul.f32 1.442695, %v2146_v53  ;;  %2353 = vadd.xlane.f32.xlu1 %v2352_v17  ;;  %v6632_v45 = vpop.f32.mrb[145].mxu1  ;;  %1521 = vmatprep.mubr.f32.mxu0 %v7424_v13 }
 0x6b4   : > { %7499 = vst [vmem:[#allocation38_spill] sm:$0xff] %v6630_v6  ;;  %v6634_v34 = vpop.eup %4575  ;;  %v2081_v39 = vpop.xlane.xlu0 %2080 }
 0x6b5   : > { %7500 = vst [vmem:[#allocation39_spill] sm:$0xff] %v6634_v34  ;;  %4585 = vpow2.f32 %v2263_v10  ;;  %v2147_v40 = vsub.f32 %v7501_v49, %v2081_v39  ;;  %v2148_v31 = vsub.f32 %v7502_v33, %v2081_v39  ;;  %v2355_v59 = vadd.f32 %v6634_v34, %v6630_v6  ;;  %v7506_v6 = vld [vmem:[#allocation43_spill] sm:$0xff] }
 0x6b6   : > { %4587 = vpow2.f32 %v2265_v63  ;;  %v6643_v17 = vpop.f32.mrb[146].mxu1 }
 0x6b7   : > { %v6646_v47 = vpop.eup %4577  ;;  %v2267_v53 = vmul.f32 1.442695, %v2147_v40  ;;  %v2269_v26 = vmul.f32 1.442695, %v2148_v31  ;;  %2356 = vadd.xlane.f32.xlu0 %v2355_v59  ;;  %v6648_v10 = vpop.f32.mrb[147].mxu1 }
 0x6b8   : > { %7503 = vst [vmem:[#allocation40_spill] sm:$0xff] %v6646_v47  ;;  %v6650_v49 = vpop.eup %4579  ;;  %v2084_v39 = vpop.xlane.xlu1 %2083 }
 0x6b9   : > { %7504 = vst [vmem:[#allocation41_spill] sm:$0xff] %v6650_v49  ;;  %4589 = vpow2.f32 %v2267_v53  ;;  %v2149_v63 = vsub.f32 %v7505_v2, %v2084_v39  ;;  %v2150_v34 = vsub.f32 %v7506_v6, %v2084_v39  ;;  %v2358_v30 = vadd.f32 %v6650_v49, %v6646_v47  ;;  %v7509_v53 = vld [vmem:[#allocation45_spill] sm:$0xff] }
 0x6ba   : > { %4591 = vpow2.f32 %v2269_v26 }
 0x6bb   : > { %v6658_v40 = vpop.eup %4581  ;;  %v2271_v59 = vmul.f32 1.442695, %v2149_v63  ;;  %v2273_v31 = vmul.f32 1.442695, %v2150_v34  ;;  %2359 = vadd.xlane.f32.xlu1 %v2358_v30  ;;  %v7512_v34 = vld [vmem:[#allocation46_spill] sm:$0xff] }
 0x6bc   : > { %7507 = vst [vmem:[#allocation42_spill] sm:$0xff] %v6658_v40  ;;  %v6660_v24 = vpop.eup %4583  ;;  %v2087_v28 = vpop.xlane.xlu0 %2086 }
 0x6bd   : > { %4593 = vpow2.f32 %v2271_v59  ;;  %v2151_v33 = vsub.f32 %v7508_v42, %v2087_v28  ;;  %v2152_v7 = vsub.f32 %v7509_v53, %v2087_v28  ;;  %v2361_v6 = vadd.f32 %v6660_v24, %v6658_v40  ;;  %v7513_v59 = vld [vmem:[#allocation47_spill] sm:$0xff] }
 0x6be   : > { %4595 = vpow2.f32 %v2273_v31 }
 0x6bf   : > { %v6666_v39 = vpop.eup %4585  ;;  %v2275_v26 = vmul.f32 1.442695, %v2151_v33  ;;  %v2277_v2 = vmul.f32 1.442695, %v2152_v7  ;;  %2362 = vadd.xlane.f32.xlu0 %v2361_v6 }
 0x6c0   : > { %7510 = vst [vmem:[#allocation43_spill] sm:$0xff] %v6666_v39  ;;  %v6668_v63 = vpop.eup %4587  ;;  %v2090_v30 = vpop.xlane.xlu1 %2089 }
 0x6c1   : > { %7511 = vst [vmem:[#allocation44_spill] sm:$0xff] %v6668_v63  ;;  %4597 = vpow2.f32 %v2275_v26  ;;  %v2153_v47 = vsub.f32 %v7512_v34, %v2090_v30  ;;  %v2154_v49 = vsub.f32 %v7513_v59, %v2090_v30  ;;  %v2364_v42 = vadd.f32 %v6668_v63, %v6666_v39  ;;  %v7519_v34 = vld [vmem:[#allocation48_spill] sm:$0xff]  ;;  %v7523_v39 = vld [vmem:[#allocation51_spill] sm:$0xff] }
 0x6c2   : > { %4599 = vpow2.f32 %v2277_v2 }
 0x6c3   : > { %v6674_v28 = vpop.eup %4589  ;;  %v2279_v31 = vmul.f32 1.442695, %v2153_v47  ;;  %v2281_v53 = vmul.f32 1.442695, %v2154_v49  ;;  %2365 = vadd.xlane.f32.xlu1 %v2364_v42  ;;  %v7520_v42 = vld [vmem:[#allocation49_spill] sm:$0xff] }
 0x6c4   : > { %7514 = vst [vmem:[#allocation45_spill] sm:$0xff] %v6674_v28  ;;  %v6676_v33 = vpop.eup %4591 }
 0x6c5   : > { %7515 = vst [vmem:[#allocation46_spill] sm:$0xff] %v6676_v33  ;;  %4601 = vpow2.f32 %v2279_v31  ;;  %v2367_v7 = vadd.f32 %v6676_v33, %v6674_v28 }
 0x6c6   : > { %4603 = vpow2.f32 %v2281_v53 }
 0x6c7   : > { %v6680_v6 = vpop.eup %4593  ;;  %2368 = vadd.xlane.f32.xlu0 %v2367_v7 }
 0x6c8   : > { %7516 = vst [vmem:[#allocation47_spill] sm:$0xff] %v6680_v6  ;;  %v6682_v26 = vpop.eup %4595 }
 0x6c9   : > { %7517 = vst [vmem:[#allocation112_spill] sm:$0xff] %v6682_v26  ;;  %v2370_v2 = vadd.f32 %v6682_v26, %v6680_v6 }
 0x6cb   : > { %v6686_v30 = vpop.eup %4597  ;;  %2371 = vadd.xlane.f32.xlu1 %v2370_v2  ;;  %v2991_v47 = vpop.xlane.xlu0 %2990  ;;  %v7522_v2 = vld [vmem:[#allocation50_spill] sm:$0xff] }
 0x6cc   : > { %7518 = vst [vmem:[#allocation113_spill] sm:$0xff] %v6686_v30  ;;  %v6688_v49 = vpop.eup %4599  ;;  %v3085_v59 = vsub.f32 %v7519_v34, %v2991_v47  ;;  %v3086_v31 = vsub.f32 %v7520_v42, %v2991_v47  ;;  %v1357_v34 = vld [vmem:[#allocation17 + $0x20] sm:$0xff] }
 0x6cd   : > { %v2373_v53 = vadd.f32 %v6688_v49, %v6686_v30  ;;  %3979 = vmatmul.mubr.msk.f32.gmra.mrb[28].mxu0 %vm636_vm0, %v1357_v34  ;;  %v7526_v34 = vld [vmem:[#allocation54_spill] sm:$0xff] }
 0x6ce   : > { %v3149_v28 = vmul.f32 1.442695, %v3085_v59  ;;  %v3151_v7 = vmul.f32 1.442695, %v3086_v31  ;;  %1527 = vmatprep.mubr.f32.mxu0 %v7424_v13  ;;  %v7524_v31 = vld [vmem:[#allocation52_spill] sm:$0xff] }
 0x6cf   : > { %v6694_v33 = vpop.eup %4601  ;;  %2374 = vadd.xlane.f32.xlu0 %v2373_v53  ;;  %v2994_v40 = vpop.xlane.xlu1 %2993 }
 0x6d0   : > { %7521 = vst [vmem:[#allocation48_spill] sm:$0xff] %v6694_v33  ;;  %v6696_v6 = vpop.eup %4603  ;;  %4605 = vpow2.f32 %v3149_v28  ;;  %v3087_v26 = vsub.f32 %v7522_v2, %v2994_v40  ;;  %v3088_v63 = vsub.f32 %v7523_v39, %v2994_v40 }
 0x6d1   : > { %4607 = vpow2.f32 %v3151_v7  ;;  %v2376_v47 = vadd.f32 %v6696_v6, %v6694_v33  ;;  %v1358_v7 = vld [vmem:[#allocation17 + $0x28] sm:$0xff] }
 0x6d2   : > { %v3153_v42 = vmul.f32 1.442695, %v3087_v26  ;;  %v3155_v30 = vmul.f32 1.442695, %v3088_v63  ;;  %3980 = vmatmul.mubr.msk.f32.gmra.mrb[30].mxu0 %vm636_vm0, %v1358_v7  ;;  %v7525_v63 = vld [vmem:[#allocation53_spill] sm:$0xff] }
 0x6d3   : > { %2377 = vadd.xlane.f32.xlu1 %v2376_v47  ;;  %v2997_v59 = vpop.xlane.xlu0 %2996  ;;  %1533 = vmatprep.mubr.f32.mxu0 %v7424_v13 }
 0x6d4   : > { %4609 = vpow2.f32 %v3153_v42  ;;  %v3089_v28 = vsub.f32 %v6256_v11, %v2997_v59  ;;  %v3090_v53 = vsub.f32 %v7524_v31, %v2997_v59  ;;  %v1359_v42 = vld [vmem:[#allocation17 + $0x30] sm:$0xff] }
 0x6d5   : > { %4611 = vpow2.f32 %v3155_v30 }
 0x6d6   : > { %v3157_v40 = vmul.f32 1.442695, %v3089_v28  ;;  %v3159_v39 = vmul.f32 1.442695, %v3090_v53  ;;  %3981 = vmatmul.mubr.msk.f32.gmra.mrb[32].mxu0 %vm636_vm0, %v1359_v42 }
 0x6d7   : > { %v3000_v2 = vpop.xlane.xlu1 %2999  ;;  %1539 = vmatprep.mubr.f32.mxu0 %v7424_v13 }
 0x6d8   : > { %4613 = vpow2.f32 %v3157_v40  ;;  %v3091_v26 = vsub.f32 %v7525_v63, %v3000_v2  ;;  %v3092_v47 = vsub.f32 %v7526_v34, %v3000_v2 }
 0x6d9   : > { %4615 = vpow2.f32 %v3159_v39 }
 0x6da   : > { %v6710_v33 = vpop.eup %4605  ;;  %v3161_v11 = vmul.f32 1.442695, %v3091_v26  ;;  %v3163_v59 = vmul.f32 1.442695, %v3092_v47 }
 0x6db   : > { %7527 = vst [vmem:[#allocation49_spill] sm:$0xff] %v6710_v33  ;;  %v6712_v30 = vpop.eup %4607  ;;  %v3003_v28 = vpop.xlane.xlu0 %3002 }
 0x6dc   : > { %4617 = vpow2.f32 %v3161_v11  ;;  %v3093_v31 = vsub.f32 %v6272_v37, %v3003_v28  ;;  %v3094_v53 = vsub.f32 %v6274_v35, %v3003_v28  ;;  %v3277_v40 = vadd.f32 %v6712_v30, %v6710_v33 }
 0x6dd   : > { %4619 = vpow2.f32 %v3163_v59 }
 0x6de   : > { %v6720_v39 = vpop.eup %4609  ;;  %v3165_v7 = vmul.f32 1.442695, %v3093_v31  ;;  %v3167_v2 = vmul.f32 1.442695, %v3094_v53  ;;  %3278 = vadd.xlane.f32.xlu0 %v3277_v40  ;;  %v7530_v31 = vld [vmem:[#allocation55_spill] sm:$0xff] }
 0x6df   : > { %v6722_v63 = vpop.eup %4611  ;;  %v3006_v26 = vpop.xlane.xlu1 %3005 }
 0x6e0   : > { %4621 = vpow2.f32 %v3165_v7  ;;  %v3280_v37 = vadd.f32 %v6722_v63, %v6720_v39  ;;  %v3095_v35 = vsub.f32 %v6280_v36, %v3006_v26  ;;  %v3096_v47 = vsub.f32 %v6282_v25, %v3006_v26  ;;  %v7531_v36 = vld [vmem:[#allocation56_spill] sm:$0xff] }
 0x6e1   : > { %4623 = vpow2.f32 %v3167_v2 }
 0x6e2   : > { %v6727_v34 = vpop.eup %4613  ;;  %3281 = vadd.xlane.f32.xlu1 %v3280_v37  ;;  %v3169_v28 = vmul.f32 1.442695, %v3095_v35  ;;  %v3171_v7 = vmul.f32 1.442695, %v3096_v47 }
 0x6e3   : > { %7528 = vst [vmem:[#allocation50_spill] sm:$0xff] %v6727_v34  ;;  %v6730_v42 = vpop.eup %4615  ;;  %v3009_v11 = vpop.xlane.xlu0 %3008 }
 0x6e4   : > { %7529 = vst [vmem:[#allocation51_spill] sm:$0xff] %v6730_v42  ;;  %v3283_v59 = vadd.f32 %v6730_v42, %v6727_v34  ;;  %v3097_v53 = vsub.f32 %v7530_v31, %v3009_v11  ;;  %v3098_v13 = vsub.f32 %v7531_v36, %v3009_v11  ;;  %4625 = vpow2.f32 %v3169_v28 }
 0x6e5   : > { %4627 = vpow2.f32 %v3171_v7  ;;  %v7534_v7 = vmax.f32 %v6598_v4, %v6602_v60 }
 0x6e6   : > { %v6735_v40 = vpop.eup %4617  ;;  %3284 = vadd.xlane.f32.xlu0 %v3283_v59  ;;  %v3173_v37 = vmul.f32 1.442695, %v3097_v53  ;;  %v3175_v59 = vmul.f32 1.442695, %v3098_v13 }
 0x6e7   : > { %v6737_v2 = vpop.eup %4619  ;;  %v3012_v33 = vpop.xlane.xlu1 %3011 }
 0x6e8   : > { %v2285_v25 = vpop.xlane.xlu0 %2284  ;;  %v3286_v26 = vadd.f32 %v6737_v2, %v6735_v40  ;;  %v3099_v34 = vsub.f32 %v6300_v41, %v3012_v33  ;;  %v3100_v31 = vsub.f32 %v6302_v44, %v3012_v33 }
 0x6e9   : > { %4629 = vrcp.f32 %v2285_v25 }
 0x6ea   : > { %v6743_v35 = vpop.eup %4621  ;;  %3287 = vadd.xlane.f32.xlu1 %v3286_v26  ;;  %4631 = vpow2.f32 %v3173_v37  ;;  %v3177_v28 = vmul.f32 1.442695, %v3099_v34  ;;  %v3179_v41 = vmul.f32 1.442695, %v3100_v31 }
 0x6eb   : > { %7532 = vst [vmem:[#allocation52_spill] sm:$0xff] %v6743_v35  ;;  %v6746_v47 = vpop.eup %4623  ;;  %v2288_v11 = vpop.xlane.xlu1 %2287 }
 0x6ec   : > { %7533 = vst [vmem:[#allocation53_spill] sm:$0xff] %v6746_v47  ;;  %v3015_v36 = vpop.xlane.xlu0 %3014  ;;  %v3289_v42 = vadd.f32 %v6746_v47, %v6743_v35  ;;  %4633 = vrcp.f32 %v2288_v11 }
 0x6ed   : > { %v3101_v53 = vsub.f32 %v6314_v38, %v3015_v36  ;;  %4635 = vpow2.f32 %v3175_v59  ;;  %v3102_v13 = vsub.f32 %v6316_v50, %v3015_v36  ;;  %v7535_v38 = vmax.f32 %v6614_v8, %v6618_v56 }
 0x6ee   : > { %3074 = vmax.xlane.f32.xlu1 %v7534_v7  ;;  %3290 = vadd.xlane.f32.xlu0 %v3289_v42  ;;  %4637 = vpow2.f32 %v3177_v28  ;;  %v6760_v37 = vpop.eup %4625 }
 0x6ef   : > { %v3018_v44 = vpop.xlane.xlu1 %3017  ;;  %v3181_v26 = vmul.f32 1.442695, %v3101_v53  ;;  %4639 = vpow2.f32 %v3179_v41  ;;  %7536 = vst [vmem:[#allocation54_spill] sm:$0xff] %v6760_v37  ;;  %v3183_v31 = vmul.f32 1.442695, %v3102_v13  ;;  %v6762_v50 = vpop.eup %4627  ;;  %v7538_v53 = vmax.f32 %v6628_v58, %v6632_v45 }
 0x6f0   : > { %v2291_v33 = vpop.xlane.xlu0 %2290  ;;  %v3103_v25 = vsub.f32 %v6328_v27, %v3018_v44  ;;  %v3104_v34 = vsub.f32 %v6330_v57, %v3018_v44  ;;  %7537 = vst [vmem:[#allocation55_spill] sm:$0xff] %v6762_v50  ;;  %v3292_v44 = vadd.f32 %v6762_v50, %v6760_v37 }
 0x6f1   : > { %4641 = vrcp.f32 %v2291_v33 }
 0x6f2   : > { %3077 = vmax.xlane.f32.xlu1 %v7535_v38  ;;  %v3185_v11 = vmul.f32 1.442695, %v3103_v25  ;;  %4643 = vpow2.f32 %v3181_v26  ;;  %v3187_v57 = vmul.f32 1.442695, %v3104_v34 }
 0x6f3   : > { %v2294_v42 = vpop.xlane.xlu1 %2293  ;;  %v4630_v36 = vpop.eup %4629 }
 0x6f4   : > { %v3021_v59 = vpop.xlane.xlu0 %3020  ;;  %4645 = vrcp.f32 %v2294_v42  ;;  %v6769_v41 = vpop.eup %4631  ;;  %v7541_v42 = vld [vmem:[#allocation60_spill] sm:$0xff] }
 0x6f5   : > { %v3105_v27 = vsub.f32 %v6342_v19, %v3021_v59  ;;  %v3106_v28 = vsub.f32 %v6344_v32, %v3021_v59  ;;  %7539 = vst [vmem:[#allocation56_spill] sm:$0xff] %v6769_v41  ;;  %4647 = vpow2.f32 %v3183_v31  ;;  %v7540_v32 = vld [vmem:[#allocation58_spill] sm:$0xff]  ;;  %v7543_v31 = vld [vmem:[#allocation59_spill] sm:$0xff] }
 0x6f6   : > { %3080 = vmax.xlane.f32.xlu1 %v7538_v53  ;;  %v4634_v33 = vpop.eup %4633  ;;  %4649 = vpow2.f32 %v3185_v11  ;;  %v2412_v26 = vmul.f32 %v4630_v36, %v7540_v32  ;;  %v7542_v53 = vld [vmem:[#allocation57_spill] sm:$0xff] }
 0x6f7   : > { %v3024_v7 = vpop.xlane.xlu1 %3023  ;;  %v3189_v19 = vmul.f32 1.442695, %v3105_v27  ;;  %v6775_v34 = vpop.eup %4635  ;;  %v3191_v38 = vmul.f32 1.442695, %v3106_v28  ;;  %v2414_v59 = vmul.f32 %v4634_v33, %v7541_v42  ;;  %v2411_v35 = vmul.f32 %v4630_v36, %v7542_v53 }
 0x6f8   : > { %v2297_v13 = vpop.xlane.xlu0 %2296  ;;  %v3107_v25 = vsub.f32 %v6356_v43, %v3024_v7  ;;  %v2413_v47 = vmul.f32 %v4634_v33, %v7543_v31  ;;  %4651 = vpow2.f32 %v3187_v57  ;;  %v3108_v56 = vsub.f32 %v6358_v52, %v3024_v7  ;;  %v6781_v37 = vpop.eup %4637  ;;  %v7547_v31 = vld [vmem:[#allocation61_spill] sm:$0xff] }
 0x6f9   : > { %4653 = vrcp.f32 %v2297_v13  ;;  %v4150_v43 = vpack.c.bf16 %v2414_v59, %v2412_v26  ;;  %v6783_v50 = vpop.eup %4639  ;;  %v3295_v36 = vadd.f32 %v6775_v34, %v6769_v41  ;;  %v7546_v59 = vld [vmem:[#allocation64_spill] sm:$0xff] }
 0x6fa   : > { %3293 = vadd.xlane.f32.xlu1 %v3292_v44  ;;  %v4152_v32 = vpack.c.bf16 %v2413_v47, %v2411_v35  ;;  %4655 = vpow2.f32 %v3189_v19  ;;  %v3193_v28 = vmul.f32 1.442695, %v3107_v25  ;;  %v3195_v7 = vmul.f32 1.442695, %v3108_v56  ;;  %v7545_v25 = vld [vmem:[#allocation62_spill] sm:$0xff] }
 0x6fb   : > { %v2300_v11 = vpop.xlane.xlu1 %2299  ;;  %v4642_v57 = vpop.eup %4641  ;;  %4657 = vpow2.f32 %v3191_v38  ;;  %4151 = vmatprep.subr.bf16.mxu0 %v4150_v43  ;;  %v3298_v19 = vadd.f32 %v6783_v50, %v6781_v37  ;;  %v1361_v56 = vld [vmem:[#allocation18] sm:$0xff]  ;;  %v7548_v43 = vld [vmem:[#allocation63_spill] sm:$0xff] }
 0x6fc   : > { %v3027_v27 = vpop.xlane.xlu0 %3026  ;;  %4659 = vrcp.f32 %v2300_v11  ;;  %4153 = vmatpush1.bf16.xpose.msra.mxu0 %v4152_v32  ;;  %v6789_v13 = vpop.eup %4643  ;;  %v2416_v26 = vmul.f32 %v4642_v57, %v7545_v25  ;;  %v2415_v11 = vmul.f32 %v4642_v57, %v7547_v31  ;;  %v7550_v31 = vld [vmem:[#allocation75_spill] sm:$0xff] }
 0x6fd   : > { %v3109_v42 = vsub.f32 %v6370_v29, %v3027_v27  ;;  %v3110_v52 = vsub.f32 %v6372_v46, %v3027_v27  ;;  %7544 = vst [vmem:[#allocation58_spill] sm:$0xff] %v6789_v13  ;;  %4661 = vpow2.f32 %v3193_v28 }
 0x6fe   : > { %3296 = vadd.xlane.f32.xlu1 %v3295_v36  ;;  %v4646_v33 = vpop.eup %4645  ;;  %4663 = vpow2.f32 %v3195_v7  ;;  %v1360_v7 = vld [vmem:[#allocation17 + $0x38] sm:$0xff] }
 0x6ff   : > { %v3197_v35 = vmul.f32 1.442695, %v3109_v42  ;;  %v3030_v47 = vpop.xlane.xlu1 %3029  ;;  %v6795_v38 = vpop.eup %4647  ;;  %v3199_v46 = vmul.f32 1.442695, %v3110_v52  ;;  %v2418_v53 = vmul.f32 %v4646_v33, %v7546_v59  ;;  %v2417_v27 = vmul.f32 %v4646_v33, %v7548_v43  ;;  %3982 = vmatmul.mubr.msk.f32.gmra.mrb[34].mxu0 %vm636_vm0, %v1360_v7  ;;  %v7551_v43 = vld [vmem:[#allocation66_spill] sm:$0xff] }
 0x700   : > { %v2303_v44 = vpop.xlane.xlu0 %2302  ;;  %v3111_v29 = vsub.f32 %v6384_v54, %v3030_v47  ;;  %v6800_v32 = vpop.eup %4649  ;;  %v3112_v54 = vsub.f32 %v6386_v5, %v3030_v47  ;;  %v3301_v33 = vadd.f32 %v6795_v38, %v6789_v13 }
 0x701   : > { %4665 = vpow2.f32 %v3197_v35  ;;  %v4154_v36 = vpack.c.bf16 %v2418_v53, %v2416_v26  ;;  %v4156_v41 = vpack.c.bf16 %v2417_v27, %v2415_v11  ;;  %v6808_v59 = vpop.f32.mrb[20].mxu0 }
 0x702   : > { %3299 = vadd.xlane.f32.xlu1 %v3298_v19  ;;  %v3201_v28 = vmul.f32 1.442695, %v3111_v29  ;;  %v6803_v52 = vpop.eup %4651  ;;  %4667 = vrcp.f32 %v2303_v44  ;;  %v6811_v47 = vpop.f32.mrb[21].mxu0  ;;  %v3203_v44 = vmul.f32 1.442695, %v3112_v54 }
 0x703   : > { %v2306_v42 = vpop.xlane.xlu1 %2305  ;;  %v4654_v5 = vpop.eup %4653  ;;  %4669 = vpow2.f32 %v3199_v46  ;;  %4155 = vmatprep.subr.bf16.mxu0 %v4154_v36  ;;  %v3304_v46 = vadd.f32 %v6803_v52, %v6800_v32  ;;  %v7553_v36 = vld [vmem:[#allocation65_spill] sm:$0xff] }
 0x704   : > { %v3033_v25 = vpop.xlane.xlu0 %3032  ;;  %1371 = vperm.xlu0 %4468, %v1361_v56   ;;  %v6814_v29 = vpop.eup %4655  ;;  %4671 = vrcp.f32 %v2306_v42  ;;  %4157 = vmatpush1.bf16.xpose.msra.mxu0 %v4156_v41  ;;  %v2420_v27 = vmul.f32 %v4654_v5, %v7551_v43  ;;  %v7552_v42 = vld [vmem:[#allocation68_spill] sm:$0xff] }
 0x705   : > { %v3113_v57 = vsub.f32 %v6398_v3, %v3033_v25  ;;  %v3114_v35 = vsub.f32 %v6400_v48, %v3033_v25  ;;  %7549 = vst [vmem:[#allocation60_spill] sm:$0xff] %v6814_v29  ;;  %v6816_v3 = vpop.eup %4657  ;;  %4673 = vpow2.f32 %v3201_v28  ;;  %v2419_v25 = vmul.f32 %v4654_v5, %v7553_v36 }
 0x706   : > { %3302 = vadd.xlane.f32.xlu1 %v3301_v33  ;;  %v4660_v56 = vpop.eup %4659  ;;  %v7554_v33 = vld [vmem:[#allocation67_spill] sm:$0xff]  ;;  %4675 = vpow2.f32 %v3203_v44 }
 0x707   : > { %v3036_v19 = vpop.xlane.xlu1 %3035  ;;  %v3205_v48 = vmul.f32 1.442695, %v3113_v57  ;;  %v3207_v54 = vmul.f32 1.442695, %v3114_v35  ;;  %v2422_v41 = vmul.f32 %v4660_v56, %v7552_v42  ;;  %v2421_v28 = vmul.f32 %v4660_v56, %v7554_v33  ;;  %v6826_v7 = vpop.eup %4661 }
 0x708   : > { %v2309_v26 = vpop.xlane.xlu0 %2308  ;;  %v3115_v53 = vsub.f32 %v6412_v9, %v3036_v19  ;;  %v3116_v11 = vsub.f32 %v7550_v31, %v3036_v19  ;;  %v3307_v57 = vadd.f32 %v6816_v3, %v6814_v29  ;;  %v6830_v35 = vpop.eup %4663 }
 0x709   : > { %4677 = vrcp.f32 %v2309_v26  ;;  %v4158_v19 = vpack.c.bf16 %v2422_v41, %v2420_v27  ;;  %v4160_v43 = vpack.c.bf16 %v2421_v28, %v2419_v25  ;;  %v7555_v25 = vld [vmem:[#allocation70_spill] sm:$0xff]  ;;  %v7556_v28 = vld [vmem:[#allocation72_spill] sm:$0xff] }
 0x70a   : > { %3305 = vadd.xlane.f32.xlu1 %v3304_v46  ;;  %v3209_v13 = vmul.f32 1.442695, %v3115_v53  ;;  %4679 = vpow2.f32 %v3205_v48  ;;  %v3211_v42 = vmul.f32 1.442695, %v3116_v11  ;;  %v3310_v48 = vadd.f32 %v6830_v35, %v6826_v7 }
 0x70b   : > { %v2312_v9 = vpop.xlane.xlu1 %2311  ;;  %v6834_v36 = vpop.eup %4665  ;;  %4681 = vpow2.f32 %v3207_v54  ;;  %4159 = vmatprep.subr.bf16.mxu0 %v4158_v19  ;;  %v7558_v19 = vld [vmem:[#allocation71_spill] sm:$0xff] }
 0x70c   : > { %v3039_v31 = vpop.xlane.xlu0 %3038  ;;  %v4668_v44 = vpop.eup %4667  ;;  %4683 = vrcp.f32 %v2312_v9  ;;  %4161 = vmatpush1.bf16.xpose.msra.mxu0 %v4160_v43  ;;  %v7557_v9 = vld [vmem:[#allocation69_spill] sm:$0xff] }
 0x70d   : > { %v3117_v5 = vsub.f32 %v6426_v12, %v3039_v31  ;;  %v3118_v56 = vsub.f32 %v6428_v22, %v3039_v31  ;;  %v6836_v26 = vpop.eup %4669  ;;  %4685 = vpow2.f32 %v3209_v13  ;;  %v2424_v33 = vmul.f32 %v4668_v44, %v7555_v25 }
 0x70e   : > { %3308 = vadd.xlane.f32.xlu1 %v3307_v57  ;;  %v4672_v12 = vpop.eup %4671  ;;  %4687 = vpow2.f32 %v3211_v42  ;;  %v2423_v13 = vmul.f32 %v4668_v44, %v7557_v9  ;;  %v3313_v44 = vadd.f32 %v6836_v26, %v6834_v36 }
 0x70f   : > { %v3213_v46 = vmul.f32 1.442695, %v3117_v5  ;;  %v3042_v53 = vpop.xlane.xlu1 %3041  ;;  %v3215_v22 = vmul.f32 1.442695, %v3118_v56  ;;  %v6842_v41 = vpop.eup %4673  ;;  %v2426_v57 = vmul.f32 %v4672_v12, %v7556_v28  ;;  %v2425_v31 = vmul.f32 %v4672_v12, %v7558_v19  ;;  %v7560_v19 = vld [vmem:[#allocation73_spill] sm:$0xff] }
 0x710   : > { %v2315_v27 = vpop.xlane.xlu0 %2314  ;;  %v3119_v11 = vsub.f32 %v6442_v61, %v3042_v53  ;;  %v3120_v54 = vsub.f32 %v6444_v0, %v3042_v53  ;;  %v6848_v0 = vpop.eup %4675 }
 0x711   : > { %4689 = vpow2.f32 %v3213_v46  ;;  %v4162_v56 = vpack.c.bf16 %v2426_v57, %v2424_v33  ;;  %v4164_v29 = vpack.c.bf16 %v2425_v31, %v2423_v13  ;;  %v7559_v57 = vld [vmem:[#allocation74_spill] sm:$0xff] }
 0x712   : > { %v3217_v43 = vmul.f32 1.442695, %v3119_v11  ;;  %3311 = vadd.xlane.f32.xlu1 %v3310_v48  ;;  %v3219_v5 = vmul.f32 1.442695, %v3120_v54  ;;  %4691 = vrcp.f32 %v2315_v27 }
 0x713   : > { %v2318_v42 = vpop.xlane.xlu1 %2317  ;;  %4693 = vpow2.f32 %v3215_v22  ;;  %v4678_v12 = vpop.eup %4677  ;;  %4163 = vmatprep.subr.bf16.mxu0 %v4162_v56 }
 0x714   : > { %v3045_v61 = vpop.xlane.xlu0 %3044  ;;  %4695 = vpow2.f32 %v3217_v43  ;;  %v6854_v46 = vpop.eup %4679  ;;  %4165 = vmatpush1.bf16.xpose.msra.mxu0 %v4164_v29  ;;  %v2428_v9 = vmul.f32 %v4678_v12, %v7559_v57  ;;  %v2427_v31 = vmul.f32 %v4678_v12, %v7560_v19  ;;  %v7561_v43 = vld [vmem:[#allocation76_spill] sm:$0xff] }
 0x715   : > { %v3121_v53 = vsub.f32 %v6458_v55, %v3045_v61  ;;  %v3122_v25 = vsub.f32 %v6460_v18, %v3045_v61  ;;  %4697 = vrcp.f32 %v2318_v42  ;;  %v6856_v11 = vpop.eup %4681  ;;  %v3316_v18 = vadd.f32 %v6848_v0, %v6842_v41 }
 0x716   : > { %3314 = vadd.xlane.f32.xlu1 %v3313_v44  ;;  %4699 = vpow2.f32 %v3219_v5  ;;  %v4684_v54 = vpop.eup %4683  ;;  %v3319_v12 = vadd.f32 %v6856_v11, %v6854_v46 }
 0x717   : > { %v3221_v27 = vmul.f32 1.442695, %v3121_v53  ;;  %v3223_v48 = vmul.f32 1.442695, %v3122_v25  ;;  %v3048_v22 = vpop.xlane.xlu1 %3047  ;;  %v6863_v13 = vpop.eup %4685  ;;  %v2430_v29 = vmul.f32 %v4684_v54, %v6422_v21  ;;  %v2429_v5 = vmul.f32 %v4684_v54, %v7561_v43  ;;  %v7563_v43 = vld [vmem:[#allocation80_spill] sm:$0xff] }
 0x718   : > { %v2321_v55 = vpop.xlane.xlu0 %2320  ;;  %v3123_v33 = vsub.f32 %v6472_v20, %v3048_v22  ;;  %v3124_v28 = vsub.f32 %v6474_v16, %v3048_v22  ;;  %v6868_v42 = vpop.eup %4687 }
 0x719   : > { %4701 = vpow2.f32 %v3221_v27  ;;  %v4166_v53 = vpack.c.bf16 %v2430_v29, %v2428_v9  ;;  %v4168_v25 = vpack.c.bf16 %v2429_v5, %v2427_v31  ;;  %v7562_v29 = vld [vmem:[#allocation78_spill] sm:$0xff] }
 0x71a   : > { %4703 = vpow2.f32 %v3223_v48  ;;  %v3225_v56 = vmul.f32 1.442695, %v3123_v33  ;;  %v3227_v61 = vmul.f32 1.442695, %v3124_v28  ;;  %3317 = vadd.xlane.f32.xlu1 %v3316_v18 }
 0x71b   : > { %4705 = vrcp.f32 %v2321_v55  ;;  %v2324_v20 = vpop.xlane.xlu1 %2323  ;;  %v6870_v44 = vpop.eup %4689  ;;  %4167 = vmatprep.subr.bf16.mxu0 %v4166_v53 }
 0x71c   : > { %v3051_v16 = vpop.xlane.xlu0 %3050  ;;  %4707 = vpow2.f32 %v3225_v56  ;;  %v4692_v48 = vpop.eup %4691  ;;  %4169 = vmatpush1.bf16.xpose.msra.mxu0 %v4168_v25  ;;  %v7564_v56 = vld [vmem:[#allocation77_spill] sm:$0xff] }
 0x71d   : > { %v3125_v27 = vsub.f32 %v6486_v51, %v3051_v16  ;;  %v3126_v21 = vsub.f32 %v6488_v1, %v3051_v16  ;;  %4709 = vpow2.f32 %v3227_v61  ;;  %v6876_v22 = vpop.eup %4693  ;;  %v3322_v51 = vadd.f32 %v6868_v42, %v6863_v13 }
 0x71e   : > { %4711 = vrcp.f32 %v2324_v20  ;;  %3320 = vadd.xlane.f32.xlu1 %v3319_v12  ;;  %v6878_v54 = vpop.eup %4695  ;;  %v2432_v19 = vmul.f32 %v4692_v48, %v7562_v29  ;;  %v2431_v61 = vmul.f32 %v4692_v48, %v7564_v56  ;;  %v7565_v20 = vld [vmem:[#allocation79_spill] sm:$0xff] }
 0x71f   : > { %v3229_v55 = vmul.f32 1.442695, %v3125_v27  ;;  %v3231_v18 = vmul.f32 1.442695, %v3126_v21  ;;  %v3054_v33 = vpop.xlane.xlu1 %3053  ;;  %v4698_v1 = vpop.eup %4697 }
 0x720   : > { %v2327_v28 = vpop.xlane.xlu0 %2326  ;;  %v3127_v57 = vsub.f32 %v6500_v14, %v3054_v33  ;;  %v3128_v9 = vsub.f32 %v6502_v23, %v3054_v33  ;;  %v6885_v31 = vpop.eup %4699  ;;  %v2434_v5 = vmul.f32 %v4698_v1, %v7563_v43  ;;  %v2433_v53 = vmul.f32 %v4698_v1, %v7565_v20  ;;  %v7570_v20 = vld [vmem:[#allocation91_spill] sm:$0xff] }
 0x721   : > { %4713 = vpow2.f32 %v3229_v55  ;;  %v7567_v23 = vmax.f32 %v6643_v17, %v6648_v10 }
 0x722   : > { %4715 = vpow2.f32 %v3231_v18  ;;  %v3233_v25 = vmul.f32 1.442695, %v3127_v57  ;;  %v3235_v27 = vmul.f32 1.442695, %v3128_v9  ;;  %3323 = vadd.xlane.f32.xlu1 %v3322_v51  ;;  %v4170_v12 = vpack.c.bf16 %v2434_v5, %v2432_v19  ;;  %v7569_v5 = vld [vmem:[#allocation82_spill] sm:$0xff] }
 0x723   : > { %v6890_v16 = vpop.eup %4701  ;;  %4717 = vrcp.f32 %v2327_v28  ;;  %3083 = vmax.xlane.f32.xlu0 %v7567_v23  ;;  %v2330_v21 = vpop.xlane.xlu1 %2329  ;;  %v4172_v18 = vpack.c.bf16 %v2433_v53, %v2431_v61  ;;  %v3328_v28 = vadd.f32 %v6885_v31, %v6878_v54  ;;  %v3325_v51 = vadd.f32 %v6876_v22, %v6870_v44 }
 0x724   : > { %7566 = vst [vmem:[#allocation57_spill] sm:$0xff] %v6890_v16  ;;  %v6892_v14 = vpop.eup %4703  ;;  %v3057_v55 = vpop.xlane.xlu0 %3056  ;;  %4719 = vpow2.f32 %v3233_v25  ;;  %4171 = vmatprep.subr.bf16.mxu0 %v4170_v12  ;;  %v7571_v25 = vld [vmem:[#allocation92_spill] sm:$0xff] }
 0x725   : > { %v4706_v33 = vpop.eup %4705  ;;  %v3129_v48 = vsub.f32 %v6514_v15, %v3057_v55  ;;  %v3130_v1 = vsub.f32 %v6516_v62, %v3057_v55  ;;  %4721 = vpow2.f32 %v3235_v27  ;;  %4173 = vmatpush1.bf16.xpose.msra.mxu0 %v4172_v18  ;;  %v3331_v43 = vadd.f32 %v6892_v14, %v6890_v16  ;;  %v7573_v55 = vld [vmem:[#allocation81_spill] sm:$0xff] }
 0x726   : > { %v6903_v57 = vpop.eup %4707  ;;  %4723 = vrcp.f32 %v2330_v21  ;;  %3329 = vadd.xlane.f32.xlu1 %v3328_v28  ;;  %v2436_v56 = vmul.f32 %v4706_v33, %v7569_v5  ;;  %v7572_v21 = vld [vmem:[#allocation84_spill] sm:$0xff]  ;;  %v2435_v18 = vmul.f32 %v4706_v33, %v7573_v55 }
 0x727   : > { %7568 = vst [vmem:[#allocation59_spill] sm:$0xff] %v6903_v57  ;;  %v3237_v9 = vmul.f32 1.442695, %v3129_v48  ;;  %v3239_v29 = vmul.f32 1.442695, %v3130_v1  ;;  %v6905_v19 = vpop.eup %4709  ;;  %3326 = vadd.xlane.f32.xlu0 %v3325_v51  ;;  %v3060_v15 = vpop.xlane.xlu1 %3059  ;;  %v7574_v48 = vld [vmem:[#allocation83_spill] sm:$0xff] }
 0x728   : > { %v2333_v62 = vpop.xlane.xlu0 %2332  ;;  %v4712_v61 = vpop.eup %4711  ;;  %v3131_v53 = vsub.f32 %v7570_v20, %v3060_v15  ;;  %v3132_v27 = vsub.f32 %v7571_v25, %v3060_v15  ;;  %v3334_v23 = vadd.f32 %v6905_v19, %v6903_v57  ;;  %v7578_v33 = vld [vmem:[#allocation96_spill] sm:$0xff] }
 0x729   : > { %4725 = vpow2.f32 %v3237_v9  ;;  %v2438_v12 = vmul.f32 %v4712_v61, %v7572_v21  ;;  %v2437_v1 = vmul.f32 %v4712_v61, %v7574_v48  ;;  %v7577_v21 = vld [vmem:[#allocation95_spill] sm:$0xff] }
 0x72a   : > { %4727 = vpow2.f32 %v3239_v29  ;;  %v3241_v51 = vmul.f32 1.442695, %v3131_v53  ;;  %v3243_v5 = vmul.f32 1.442695, %v3132_v27  ;;  %3335 = vadd.xlane.f32.xlu1 %v3334_v23 }
 0x72b   : > { %v6917_v28 = vpop.eup %4713  ;;  %4729 = vrcp.f32 %v2333_v62  ;;  %3332 = vadd.xlane.f32.xlu0 %v3331_v43  ;;  %v2336_v15 = vpop.xlane.xlu1 %2335  ;;  %v4174_v20 = vpack.c.bf16 %v2438_v12, %v2436_v56  ;;  %v4176_v57 = vpack.c.bf16 %v2437_v1, %v2435_v18  ;;  %v7581_v12 = vld [vmem:[#allocation86_spill] sm:$0xff]  ;;  %v7582_v1 = vld [vmem:[#allocation99_spill] sm:$0xff] }
 0x72c   : > { %7575 = vst [vmem:[#allocation62_spill] sm:$0xff] %v6917_v28  ;;  %v6919_v9 = vpop.eup %4715  ;;  %v3063_v25 = vpop.xlane.xlu0 %3062  ;;  %4731 = vpow2.f32 %v3241_v51 }
 0x72d   : > { %7576 = vst [vmem:[#allocation64_spill] sm:$0xff] %v6919_v9  ;;  %v4718_v29 = vpop.eup %4717  ;;  %v3133_v16 = vsub.f32 %v7577_v21, %v3063_v25  ;;  %v3134_v55 = vsub.f32 %v7578_v33, %v3063_v25  ;;  %v3337_v61 = vadd.f32 %v6919_v9, %v6917_v28  ;;  %4733 = vpow2.f32 %v3243_v5  ;;  %4175 = vmatprep.subr.bf16.mxu0 %v4174_v20  ;;  %v7583_v25 = vld [vmem:[#allocation100_spill] sm:$0xff]  ;;  %v7586_v33 = vld [vmem:[#allocation87_spill] sm:$0xff] }
 0x72e   : > { %v6925_v53 = vpop.eup %4719  ;;  %4735 = vrcp.f32 %v2336_v15  ;;  %4177 = vmatpush1.bf16.xpose.msra.mxu0 %v4176_v57  ;;  %v2440_v18 = vmul.f32 %v4718_v29, %v7581_v12  ;;  %v7585_v57 = vld [vmem:[#allocation85_spill] sm:$0xff] }
 0x72f   : > { %7579 = vst [vmem:[#allocation61_spill] sm:$0xff] %v6925_v53  ;;  %v3245_v62 = vmul.f32 1.442695, %v3133_v16  ;;  %v3247_v43 = vmul.f32 1.442695, %v3134_v55  ;;  %v6927_v56 = vpop.eup %4721  ;;  %3338 = vadd.xlane.f32.xlu0 %v3337_v61  ;;  %v3066_v27 = vpop.xlane.xlu1 %3065  ;;  %v7584_v16 = vld [vmem:[#allocation88_spill] sm:$0xff]  ;;  %v2439_v21 = vmul.f32 %v4718_v29, %v7585_v57 }
 0x730   : > { %7580 = vst [vmem:[#allocation63_spill] sm:$0xff] %v6927_v56  ;;  %v2339_v23 = vpop.xlane.xlu0 %2338  ;;  %v4724_v48 = vpop.eup %4723  ;;  %v3135_v51 = vsub.f32 %v7582_v1, %v3066_v27  ;;  %v3136_v5 = vsub.f32 %v7583_v25, %v3066_v27  ;;  %v3340_v20 = vadd.f32 %v6927_v56, %v6925_v53 }
 0x731   : > { %4737 = vpow2.f32 %v3245_v62  ;;  %v2442_v15 = vmul.f32 %v4724_v48, %v7584_v16  ;;  %v2441_v55 = vmul.f32 %v4724_v48, %v7586_v33  ;;  %v7590_v16 = vld [vmem:[#allocation104_spill] sm:$0xff] }
 0x732   : > { %4739 = vpow2.f32 %v3247_v43  ;;  %v3249_v28 = vmul.f32 1.442695, %v3135_v51  ;;  %v3251_v12 = vmul.f32 1.442695, %v3136_v5  ;;  %3341 = vadd.xlane.f32.xlu1 %v3340_v20  ;;  %v7589_v43 = vld [vmem:[#allocation103_spill] sm:$0xff] }
 0x733   : > { %v6937_v61 = vpop.eup %4725  ;;  %4741 = vrcp.f32 %v2339_v23  ;;  %v2342_v1 = vpop.xlane.xlu1 %2341  ;;  %v4178_v27 = vpack.c.bf16 %v2442_v15, %v2440_v18  ;;  %v4180_v9 = vpack.c.bf16 %v2441_v55, %v2439_v21  ;;  %v7592_v21 = vld [vmem:[#allocation90_spill] sm:$0xff] }
 0x734   : > { %7587 = vst [vmem:[#allocation75_spill] sm:$0xff] %v6937_v61  ;;  %v6939_v62 = vpop.eup %4727  ;;  %v3069_v25 = vpop.xlane.xlu0 %3068  ;;  %4743 = vpow2.f32 %v3249_v28  ;;  %v7593_v55 = vld [vmem:[#allocation94_spill] sm:$0xff] }
 0x735   : > { %7588 = vst [vmem:[#allocation66_spill] sm:$0xff] %v6939_v62  ;;  %v3137_v53 = vsub.f32 %v7589_v43, %v3069_v25  ;;  %v3138_v56 = vsub.f32 %v7590_v16, %v3069_v25  ;;  %v3343_v29 = vadd.f32 %v6939_v62, %v6937_v61  ;;  %v4730_v48 = vpop.eup %4729  ;;  %4745 = vpow2.f32 %v3251_v12  ;;  %4179 = vmatprep.subr.bf16.mxu0 %v4178_v27 }
 0x736   : > { %v6945_v51 = vpop.eup %4731  ;;  %4747 = vrcp.f32 %v2342_v1  ;;  %4181 = vmatpush1.bf16.xpose.msra.mxu0 %v4180_v9  ;;  %v2444_v33 = vmul.f32 %v4730_v48, %v7592_v21  ;;  %v7594_v1 = vld [vmem:[#allocation89_spill] sm:$0xff] }
 0x737   : > { %7591 = vst [vmem:[#allocation68_spill] sm:$0xff] %v6945_v51  ;;  %v3253_v5 = vmul.f32 1.442695, %v3137_v53  ;;  %v3255_v23 = vmul.f32 1.442695, %v3138_v56  ;;  %3344 = vadd.xlane.f32.xlu0 %v3343_v29  ;;  %v6947_v18 = vpop.eup %4733  ;;  %v6949_v28 = vpop.xlane.xlu1 %3071  ;;  %v2443_v53 = vmul.f32 %v4730_v48, %v7594_v1  ;;  %v7595_v56 = vld [vmem:[#allocation93_spill] sm:$0xff] }
 0x738   : > { %v2345_v20 = vpop.xlane.xlu0 %2344  ;;  %v4736_v15 = vpop.eup %4735  ;;  %v3346_v57 = vadd.f32 %v6947_v18, %v6945_v51  ;;  %v7601_v1 = vld [vmem:[#allocation102_spill] sm:$0xff] }
 0x739   : > { %4749 = vpow2.f32 %v3253_v5  ;;  %v2446_v12 = vmul.f32 %v4736_v15, %v7593_v55  ;;  %v2445_v9 = vmul.f32 %v4736_v15, %v7595_v56  ;;  %v7602_v56 = vld [vmem:[#allocation97_spill] sm:$0xff] }
 0x73a   : > { %4751 = vpow2.f32 %v3255_v23  ;;  %3347 = vadd.xlane.f32.xlu1 %v3346_v57 }
 0x73b   : > { %v6957_v27 = vpop.eup %4737  ;;  %4753 = vrcp.f32 %v2345_v20  ;;  %v2348_v43 = vpop.xlane.xlu1 %2347  ;;  %v4182_v16 = vpack.c.bf16 %v2446_v12, %v2444_v33  ;;  %v4184_v29 = vpack.c.bf16 %v2445_v9, %v2443_v53  ;;  %v7600_v33 = vld [vmem:[#allocation98_spill] sm:$0xff] }
 0x73c   : > { %7596 = vst [vmem:[#allocation65_spill] sm:$0xff] %v6957_v27  ;;  %v6959_v25 = vpop.eup %4739  ;;  %v2351_v5 = vpop.xlane.xlu0 %2350  ;;  %4755 = vrcp.f32 %v2348_v43 }
 0x73d   : > { %7597 = vst [vmem:[#allocation67_spill] sm:$0xff] %v6959_v25  ;;  %v3349_v21 = vadd.f32 %v6959_v25, %v6957_v27  ;;  %v4742_v23 = vpop.eup %4741  ;;  %4183 = vmatprep.subr.bf16.mxu0 %v4182_v16  ;;  %4757 = vrcp.f32 %v2351_v5  ;;  %v7603_v16 = vld [vmem:[#allocation101_spill] sm:$0xff] }
 0x73e   : > { %v6963_v55 = vpop.eup %4743  ;;  %4185 = vmatpush1.bf16.xpose.msra.mxu0 %v4184_v29  ;;  %v2448_v12 = vmul.f32 %v4742_v23, %v7600_v33  ;;  %v2447_v9 = vmul.f32 %v4742_v23, %v7602_v56  ;;  %v7606_v33 = vld [vmem:[#allocation106_spill] sm:$0xff] }
 0x73f   : > { %7598 = vst [vmem:[#allocation70_spill] sm:$0xff] %v6963_v55  ;;  %3350 = vadd.xlane.f32.xlu0 %v3349_v21  ;;  %v6965_v48 = vpop.eup %4745 }
 0x740   : > { %7599 = vst [vmem:[#allocation72_spill] sm:$0xff] %v6965_v48  ;;  %v4748_v15 = vpop.eup %4747  ;;  %v2354_v57 = vpop.xlane.xlu1 %2353  ;;  %v3352_v20 = vadd.f32 %v6965_v48, %v6963_v55 }
 0x741   : > { %4759 = vrcp.f32 %v2354_v57  ;;  %v2450_v53 = vmul.f32 %v4748_v15, %v7601_v1  ;;  %v2449_v27 = vmul.f32 %v4748_v15, %v7603_v16  ;;  %v7608_v16 = vld [vmem:[#allocation105_spill] sm:$0xff] }
 0x742   : > { %3353 = vadd.xlane.f32.xlu1 %v3352_v20  ;;  %v7607_v20 = vld [vmem:[#allocation110_spill] sm:$0xff] }
 0x743   : > { %v6973_v43 = vpop.eup %4749  ;;  %v4186_v5 = vpack.c.bf16 %v2450_v53, %v2448_v12  ;;  %v4188_v21 = vpack.c.bf16 %v2449_v27, %v2447_v9  ;;  %v7609_v27 = vld [vmem:[#allocation109_spill] sm:$0xff] }
 0x744   : > { %7604 = vst [vmem:[#allocation69_spill] sm:$0xff] %v6973_v43  ;;  %v6975_v29 = vpop.eup %4751  ;;  %v2357_v25 = vpop.xlane.xlu0 %2356 }
 0x745   : > { %7605 = vst [vmem:[#allocation71_spill] sm:$0xff] %v6975_v29  ;;  %v3355_v55 = vadd.f32 %v6975_v29, %v6973_v43  ;;  %v4754_v61 = vpop.eup %4753  ;;  %4187 = vmatprep.subr.bf16.mxu0 %v4186_v5  ;;  %4761 = vrcp.f32 %v2357_v25  ;;  %v7610_v5 = vld [vmem:[#allocation35_spill] sm:$0xff] }
 0x746   : > { %4189 = vmatpush1.bf16.xpose.msra.mxu0 %v4188_v21  ;;  %v4756_v57 = vpop.eup %4755  ;;  %v2452_v15 = vmul.f32 %v4754_v61, %v7606_v33  ;;  %v2451_v12 = vmul.f32 %v4754_v61, %v7608_v16 }
 0x747   : > { %3356 = vadd.xlane.f32.xlu0 %v3355_v55  ;;  %v4758_v1 = vpop.eup %4757  ;;  %v2454_v56 = vmul.f32 %v4756_v57, %v7607_v20  ;;  %v2453_v53 = vmul.f32 %v4756_v57, %v7609_v27  ;;  %v7611_v55 = vld [vmem:[#allocation111_spill] sm:$0xff]  ;;  %v7612_v20 = vld [vmem:[#allocation36_spill] sm:$0xff] }
 0x748   : > { %v2360_v23 = vpop.xlane.xlu1 %2359  ;;  %v2456_v21 = vmul.f32 %v4758_v1, %v7610_v5 }
 0x749   : > { %4763 = vrcp.f32 %v2360_v23  ;;  %v4190_v48 = vpack.c.bf16 %v2454_v56, %v2452_v15  ;;  %v4192_v43 = vpack.c.bf16 %v2453_v53, %v2451_v12  ;;  %v1363_v23 = vld [vmem:[#allocation18 + $0x10] sm:$0xff]  ;;  %v7613_v15 = vld [vmem:[#allocation34_spill] sm:$0xff] }
 0x74a   : > { %v2455_v56 = vmul.f32 %v4758_v1, %v7613_v15  ;;  %v7618_v1 = vld [vmem:[#allocation40_spill] sm:$0xff] }
 0x74b   : > { %v4760_v9 = vpop.eup %4759  ;;  %4191 = vmatprep.subr.bf16.mxu0 %v4190_v48  ;;  %v6986_v61 = vpop.f32.mrb[22].mxu0 }
 0x74c   : > { %v2363_v29 = vpop.xlane.xlu0 %2362  ;;  %v2458_v25 = vmul.f32 %v4760_v9, %v7611_v55  ;;  %v2457_v62 = vmul.f32 %v4760_v9, %v7612_v20  ;;  %v6989_v16 = vpop.f32.mrb[23].mxu0  ;;  %v7619_v20 = vld [vmem:[#allocation38_spill] sm:$0xff] }
 0x74d   : > { %4765 = vrcp.f32 %v2363_v29  ;;  %v7615_v29 = vld [vmem:[#allocation39_spill] sm:$0xff] }
 0x74e   : > { %4193 = vmatpush1.bf16.xpose.msra.mxu0 %v4192_v43  ;;  %v4194_v51 = vpack.c.bf16 %v2458_v25, %v2456_v21  ;;  %v4196_v43 = vpack.c.bf16 %v2457_v62, %v2455_v56 }
 0x74f   : > { %v4762_v57 = vpop.eup %4761  ;;  %v6991_v27 = vpop.f32.mrb[24].mxu0 }
 0x750   : > { %v2366_v33 = vpop.xlane.xlu1 %2365  ;;  %4195 = vmatprep.subr.bf16.mxu0 %v4194_v51  ;;  %7614 = vst [vmem:[#allocation74_spill] sm:$0xff] %v6991_v27  ;;  %v2460_v53 = vmul.f32 %v4762_v57, %v7615_v29  ;;  %v7616_v51 = vld [vmem:[#allocation41_spill] sm:$0xff]  ;;  %v6995_v21 = vpop.f32.mrb[25].mxu0  ;;  %v2459_v15 = vmul.f32 %v4762_v57, %v7619_v20  ;;  %v7623_v57 = vld [vmem:[#allocation43_spill] sm:$0xff] }
 0x751   : > { %4767 = vrcp.f32 %v2366_v33  ;;  %7617 = vst [vmem:[#allocation73_spill] sm:$0xff] %v6995_v21 }
 0x753   : > { %v4764_v12 = vpop.eup %4763  ;;  %1381 = vperm.xlu1 %4467, %v1363_v23   ;;  %v1362_v23 = vld [vmem:[#allocation18 + $0x8] sm:$0xff] }
 0x754   : > { %v2369_v48 = vpop.xlane.xlu0 %2368  ;;  %v2462_v5 = vmul.f32 %v4764_v12, %v7616_v51  ;;  %v2461_v25 = vmul.f32 %v4764_v12, %v7618_v1  ;;  %v7620_v51 = vld [vmem:[#allocation44_spill] sm:$0xff] }
 0x755   : > { %4769 = vrcp.f32 %v2369_v48  ;;  %v7621_v48 = vld [vmem:[#allocation107_spill] sm:$0xff]  ;;  %v7622_v12 = vld [vmem:[#allocation108_spill] sm:$0xff] }
 0x756   : > { %4197 = vmatpush1.bf16.xpose.msra.mxu0 %v4196_v43  ;;  %v4198_v9 = vpack.c.bf16 %v2462_v5, %v2460_v53  ;;  %v4200_v56 = vpack.c.bf16 %v2461_v25, %v2459_v15  ;;  %v3139_v53 = vsub.f32 %v7621_v48, %v6949_v28  ;;  %v3140_v5 = vsub.f32 %v7622_v12, %v6949_v28  ;;  %v7624_v25 = vld [vmem:[#allocation42_spill] sm:$0xff]  ;;  %v7627_v28 = vld [vmem:[#allocation47_spill] sm:$0xff]  ;;  %v7628_v12 = vld [vmem:[#allocation45_spill] sm:$0xff] }
 0x757   : > { %v4766_v33 = vpop.eup %4765 }
 0x758   : > { %v2372_v55 = vpop.xlane.xlu1 %2371  ;;  %4199 = vmatprep.subr.bf16.mxu0 %v4198_v9  ;;  %v2464_v29 = vmul.f32 %v4766_v33, %v6660_v24  ;;  %v3257_v20 = vmul.f32 1.442695, %v3139_v53  ;;  %v3259_v15 = vmul.f32 1.442695, %v3140_v5 }
 0x759   : > { %4771 = vrcp.f32 %v2372_v55 }
 0x75b   : > { %v4768_v27 = vpop.eup %4767 }
 0x75c   : > { %v2375_v62 = vpop.xlane.xlu0 %2374  ;;  %v2466_v21 = vmul.f32 %v4768_v27, %v7620_v51  ;;  %v2465_v55 = vmul.f32 %v4768_v27, %v7623_v57  ;;  %v7626_v51 = vld [vmem:[#allocation112_spill] sm:$0xff] }
 0x75d   : > { %1376 = vperm.xlu0 %4468, %v1362_v23   ;;  %4773 = vrcp.f32 %v2375_v62  ;;  %v2463_v23 = vmul.f32 %v4766_v33, %v7624_v25 }
 0x75e   : > { %4201 = vmatpush1.bf16.xpose.msra.mxu0 %v4200_v56  ;;  %v4202_v43 = vpack.c.bf16 %v2466_v21, %v2464_v29  ;;  %v7625_v21 = vld [vmem:[#allocation46_spill] sm:$0xff] }
 0x75f   : > { %v4770_v1 = vpop.eup %4769  ;;  %v4204_v56 = vpack.c.bf16 %v2465_v55, %v2463_v23 }
 0x760   : > { %v2378_v9 = vpop.xlane.xlu1 %2377  ;;  %4203 = vmatprep.subr.bf16.mxu0 %v4202_v43  ;;  %v2468_v29 = vmul.f32 %v4770_v1, %v7625_v21 }
 0x761   : > { %4775 = vrcp.f32 %v2378_v9  ;;  %v2467_v9 = vmul.f32 %v4770_v1, %v7628_v12  ;;  %v7630_v1 = vld [vmem:[#allocation113_spill] sm:$0xff] }
 0x762   : > { %4777 = vpow2.f32 %v3257_v20  ;;  %v7629_v20 = vld [vmem:[#allocation48_spill] sm:$0xff] }
 0x763   : > { %v4772_v24 = vpop.eup %4771  ;;  %4779 = vpow2.f32 %v3259_v15 }
 0x764   : > { %v2470_v48 = vmul.f32 %v4772_v24, %v7626_v51  ;;  %v2469_v43 = vmul.f32 %v4772_v24, %v7627_v28 }
 0x766   : > { %4205 = vmatpush1.bf16.xpose.msra.mxu0 %v4204_v56  ;;  %v4206_v62 = vpack.c.bf16 %v2470_v48, %v2468_v29  ;;  %v4208_v25 = vpack.c.bf16 %v2469_v43, %v2467_v9 }
 0x767   : > { %v4774_v27 = vpop.eup %4773 }
 0x768   : > { %4207 = vmatprep.subr.bf16.mxu0 %v4206_v62  ;;  %v2472_v53 = vmul.f32 %v4774_v27, %v6688_v49  ;;  %v2471_v21 = vmul.f32 %v4774_v27, %v7630_v1 }
 0x76b   : > { %v4776_v57 = vpop.eup %4775  ;;  %v3279_v33 = vpop.xlane.xlu0 %3278 }
 0x76c   : > { %v2474_v5 = vmul.f32 %v4776_v57, %v6696_v6  ;;  %4781 = vrcp.f32 %v3279_v33  ;;  %v2473_v15 = vmul.f32 %v4776_v57, %v7629_v20  ;;  %v7014_v56 = vpop.eup %4777 }
 0x76d   : > { %v7016_v24 = vpop.eup %4779 }
 0x76e   : > { %4209 = vmatpush1.bf16.xpose.msra.mxu0 %v4208_v25  ;;  %v4210_v55 = vpack.c.bf16 %v2474_v5, %v2472_v53  ;;  %v4212_v51 = vpack.c.bf16 %v2473_v15, %v2471_v21  ;;  %v3358_v49 = vadd.f32 %v7016_v24, %v7014_v56  ;;  %v7631_v21 = vld [vmem:[#allocation51_spill] sm:$0xff] }
 0x76f   : > { %v3282_v23 = vpop.xlane.xlu1 %3281 }
 0x770   : > { %4783 = vrcp.f32 %v3282_v23  ;;  %4211 = vmatprep.subr.bf16.mxu0 %v4210_v55 }
 0x773   : > { %v3285_v29 = vpop.xlane.xlu0 %3284 }
 0x774   : > { %4785 = vrcp.f32 %v3285_v29 }
 0x776   : > { %4213 = vmatpush1.bf16.xpose.msra.mxu0 %v4212_v51  ;;  %v4782_v48 = vpop.eup %4781 }
 0x777   : > { %v3288_v6 = vpop.xlane.xlu1 %3287  ;;  %3359 = vadd.xlane.f32.xlu1 %v3358_v49  ;;  %v3406_v43 = vmul.f32 %v4782_v48, %v6712_v30  ;;  %v7632_v49 = vld [vmem:[#allocation49_spill] sm:$0xff] }
 0x778   : > { %4787 = vrcp.f32 %v3288_v6  ;;  %v3405_v6 = vmul.f32 %v4782_v48, %v7632_v49  ;;  %v7637_v49 = vld [vmem:[#allocation52_spill] sm:$0xff] }
 0x77a   : > { %v4784_v62 = vpop.eup %4783 }
 0x77b   : > { %v3075_v28 = vpop.xlane.xlu1 %3074  ;;  %v3408_v12 = vmul.f32 %v4784_v62, %v6722_v63  ;;  %v3291_v53 = vpop.xlane.xlu0 %3290  ;;  %v3407_v30 = vmul.f32 %v4784_v62, %v6720_v39 }
 0x77c   : > { %v3141_v9 = vsub.f32 %v6598_v4, %v3075_v28  ;;  %v3142_v27 = vsub.f32 %v6602_v60, %v3075_v28  ;;  %v1364_v28 = vld [vmem:[#allocation18 + $0x18] sm:$0xff] }
 0x77d   : > { %v4222_v57 = vpack.c.bf16 %v3408_v12, %v3406_v43 }
 0x77e   : > { %v3261_v33 = vmul.f32 1.442695, %v3141_v9  ;;  %v3263_v25 = vmul.f32 1.442695, %v3142_v27  ;;  %v4786_v55 = vpop.eup %4785 }
 0x77f   : > { %v7025_v5 = vpop.xlane.xlu1 %3077  ;;  %4223 = vmatprep.subr.bf16.mxu0 %v4222_v57  ;;  %v3410_v29 = vmul.f32 %v4786_v55, %v7631_v21  ;;  %v7633_v57 = vld [vmem:[#allocation50_spill] sm:$0xff] }
 0x780   : > { %4789 = vpow2.f32 %v3261_v33  ;;  %v3409_v33 = vmul.f32 %v4786_v55, %v7633_v57 }
 0x781   : > { %4791 = vpow2.f32 %v3263_v25 }
 0x782   : > { %v4788_v23 = vpop.eup %4787  ;;  %4793 = vrcp.f32 %v3291_v53 }
 0x783   : > { %v3081_v20 = vpop.xlane.xlu1 %3080  ;;  %v1372_v15 = vpop.permute.xlu0 %1371  ;;  %v3412_v63 = vmul.f32 %v4788_v23, %v6737_v2  ;;  %v4224_v2 = vpack.c.bf16 %v3407_v30, %v3405_v6  ;;  %v3411_v62 = vmul.f32 %v4788_v23, %v6735_v40  ;;  %v3143_v40 = vsub.f32 %v6614_v8, %v7025_v5  ;;  %v7634_v23 = vld [vmem:[#allocation37_spill] sm:$0xff] }
 0x784   : > { %v3145_v4 = vsub.f32 %v6628_v58, %v3081_v20  ;;  %v3146_v60 = vsub.f32 %v6632_v45, %v3081_v20  ;;  %v1500_v1 = vadd.f32 %v6808_v59, %v1372_v15  ;;  %v1502_v51 = vadd.f32 %v6811_v47, %v1372_v15 }
 0x785   : > { %v4226_v9 = vpack.c.bf16 %v3412_v63, %v3410_v29  ;;  %v7035_v45 = vpop.f32.mrb[26].mxu0  ;;  %v4228_v53 = vpack.c.bf16 %v3411_v62, %v3409_v33  ;;  %v7636_v29 = vld [vmem:[#allocation55_spill] sm:$0xff] }
 0x786   : > { %v3269_v43 = vmul.f32 1.442695, %v3145_v4  ;;  %v3271_v12 = vmul.f32 1.442695, %v3146_v60  ;;  %2539 = vmatprep.mubr.f32.mxu0 %v1502_v51  ;;  %v7037_v58 = vpop.f32.mrb[27].mxu0  ;;  %v3144_v60 = vsub.f32 %v7634_v23, %v7025_v5 }
 0x787   : > { %v3294_v39 = vpop.xlane.xlu1 %3293  ;;  %2540 = vmatmul.mubr.f32.vlgmr.msra.gmra.mrb[36].mxu0 %v1500_v1  ;;  %v7635_v1 = vld [vmem:[#allocation53_spill] sm:$0xff] }
 0x788   : > { %4795 = vpow2.f32 %v3269_v43  ;;  %1386 = vperm.xlu1 %4467, %v1364_v28   ;;  %4225 = vmatpush1.bf16.xpose.msra.mxu0 %v4224_v2  ;;  %v7638_v28 = vld [vmem:[#allocation54_spill] sm:$0xff]  ;;  %v3265_v2 = vmul.f32 1.442695, %v3143_v40  ;;  %v3267_v5 = vmul.f32 1.442695, %v3144_v60 }
 0x789   : > { %4797 = vpow2.f32 %v3271_v12  ;;  %4227 = vmatprep.subr.bf16.mxu0 %v4226_v9 }
 0x78a   : > { %v7039_v59 = vpop.eup %4789  ;;  %4799 = vrcp.f32 %v3294_v39 }
 0x78b   : > { %v7041_v47 = vpop.eup %4791  ;;  %v3297_v48 = vpop.xlane.xlu1 %3296 }
 0x78c   : > { %v3361_v27 = vadd.f32 %v7041_v47, %v7039_v59  ;;  %4801 = vrcp.f32 %v3297_v48  ;;  %v4794_v20 = vpop.eup %4793 }
 0x78d   : > { %v3414_v21 = vmul.f32 %v4794_v20, %v7635_v1  ;;  %v3413_v6 = vmul.f32 %v4794_v20, %v7637_v49 }
 0x78e   : > { %3362 = vadd.xlane.f32.xlu0 %v3361_v27 }
 0x78f   : > { %v3300_v25 = vpop.xlane.xlu1 %3299 }
 0x790   : > { %4803 = vrcp.f32 %v3300_v25  ;;  %4229 = vmatpush1.bf16.xpose.msra.mxu0 %v4228_v53  ;;  %v7639_v25 = vld [vmem:[#allocation56_spill] sm:$0xff] }
 0x792   : > { %v7047_v15 = vpop.eup %4795 }
 0x793   : > { %v7049_v30 = vpop.eup %4797  ;;  %v3303_v63 = vpop.xlane.xlu1 %3302 }
 0x794   : > { %v4800_v4 = vpop.eup %4799  ;;  %v3367_v55 = vadd.f32 %v7049_v30, %v7047_v15  ;;  %4805 = vrcp.f32 %v3303_v63 }
 0x795   : > { %v3416_v51 = vmul.f32 %v4800_v4, %v7636_v29  ;;  %v3415_v43 = vmul.f32 %v4800_v4, %v7638_v28 }
 0x796   : > { %3368 = vadd.xlane.f32.xlu0 %v3367_v55  ;;  %v4802_v8 = vpop.eup %4801  ;;  %v7640_v55 = vld [vmem:[#allocation58_spill] sm:$0xff] }
 0x797   : > { %v3306_v12 = vpop.xlane.xlu1 %3305  ;;  %v4230_v9 = vpack.c.bf16 %v3416_v51, %v3414_v21  ;;  %v4232_v39 = vpack.c.bf16 %v3415_v43, %v3413_v6  ;;  %v3418_v27 = vmul.f32 %v4802_v8, %v6775_v34  ;;  %v3417_v53 = vmul.f32 %v4802_v8, %v7639_v25 }
 0x798   : > { %4807 = vrcp.f32 %v3306_v12 }
 0x799   : > { %4231 = vmatprep.subr.bf16.mxu0 %v4230_v9  ;;  %4809 = vpow2.f32 %v3265_v2 }
 0x79a   : > { %v4804_v48 = vpop.eup %4803  ;;  %4233 = vmatpush1.bf16.xpose.msra.mxu0 %v4232_v39  ;;  %4811 = vpow2.f32 %v3267_v5  ;;  %v7641_v5 = vld [vmem:[#allocation60_spill] sm:$0xff] }
 0x79b   : > { %v3309_v62 = vpop.xlane.xlu1 %3308  ;;  %v3420_v57 = vmul.f32 %v4804_v48, %v6783_v50  ;;  %v3419_v33 = vmul.f32 %v4804_v48, %v6781_v37 }
 0x79c   : > { %4813 = vrcp.f32 %v3309_v62 }
 0x79d   : > { %v4234_v20 = vpack.c.bf16 %v3420_v57, %v3418_v27  ;;  %v4236_v63 = vpack.c.bf16 %v3419_v33, %v3417_v53  ;;  %v1367_v27 = vld [vmem:[#allocation18 + $0x30] sm:$0xff] }
 0x79e   : > { %v4806_v40 = vpop.eup %4805 }
 0x79f   : > { %v3312_v4 = vpop.xlane.xlu1 %3311  ;;  %4235 = vmatprep.subr.bf16.mxu0 %v4234_v20  ;;  %v3422_v34 = vmul.f32 %v4806_v40, %v6795_v38  ;;  %v3421_v1 = vmul.f32 %v4806_v40, %v7640_v55  ;;  %v3586_v40 = vld [vmem:[#allocation21] sm:$0xff] }
 0x7a0   : > { %4815 = vrcp.f32 %v3312_v4  ;;  %v7069_v29 = vpop.f32.mrb[28].mxu0 }
 0x7a1   : > { %v7073_v6 = vpop.f32.mrb[29].mxu0 }
 0x7a2   : > { %v4808_v23 = vpop.eup %4807  ;;  %4237 = vmatpush1.bf16.xpose.msra.mxu0 %v4236_v63 }
 0x7a3   : > { %v3315_v60 = vpop.xlane.xlu1 %3314  ;;  %v3424_v50 = vmul.f32 %v4808_v23, %v6803_v52  ;;  %v3423_v37 = vmul.f32 %v4808_v23, %v6800_v32  ;;  %v7071_v51 = vpop.eup %4809  ;;  %v1365_v52 = vld [vmem:[#allocation18 + $0x20] sm:$0xff] }
 0x7a4   : > { %4817 = vrcp.f32 %v3315_v60  ;;  %v7075_v28 = vpop.eup %4811 }
 0x7a5   : > { %v4238_v21 = vpack.c.bf16 %v3424_v50, %v3422_v34  ;;  %v4240_v49 = vpack.c.bf16 %v3423_v37, %v3421_v1  ;;  %v3364_v32 = vadd.f32 %v7075_v28, %v7071_v51  ;;  %v7083_v62 = vpop.f32.mrb[30].mxu0 }
 0x7a6   : > { %v4814_v38 = vpop.eup %4813  ;;  %v7085_v33 = vpop.f32.mrb[31].mxu0 }
 0x7a7   : > { %v3318_v43 = vpop.xlane.xlu1 %3317  ;;  %4239 = vmatprep.subr.bf16.mxu0 %v4238_v21  ;;  %v3426_v39 = vmul.f32 %v4814_v38, %v6816_v3  ;;  %v3425_v48 = vmul.f32 %v4814_v38, %v7641_v5 }
 0x7a8   : > { %4819 = vrcp.f32 %v3318_v43 }
 0x7a9   : > { %v7087_v53 = vpop.f32.mrb[32].mxu0 }
 0x7aa   : > { %v4816_v12 = vpop.eup %4815  ;;  %4241 = vmatpush1.bf16.xpose.msra.mxu0 %v4240_v49 }
 0x7ab   : > { %v3321_v9 = vpop.xlane.xlu1 %3320  ;;  %v3428_v8 = vmul.f32 %v4816_v12, %v6830_v35  ;;  %v3427_v2 = vmul.f32 %v4816_v12, %v6826_v7  ;;  %v7089_v35 = vpop.f32.mrb[33].mxu0 }
 0x7ac   : > { %1391 = vperm.xlu0 %4468, %v1365_v52   ;;  %3365 = vadd.xlane.f32.xlu1 %v3364_v32  ;;  %4821 = vrcp.f32 %v3321_v9 }
 0x7ad   : > { %v4242_v57 = vpack.c.bf16 %v3428_v8, %v3426_v39  ;;  %v4244_v25 = vpack.c.bf16 %v3427_v2, %v3425_v48 }
 0x7ae   : > { %v4818_v20 = vpop.eup %4817 }
 0x7af   : > { %v3324_v3 = vpop.xlane.xlu1 %3323  ;;  %4243 = vmatprep.subr.bf16.mxu0 %v4242_v57  ;;  %v3430_v60 = vmul.f32 %v4818_v20, %v6836_v26  ;;  %v3429_v49 = vmul.f32 %v4818_v20, %v6834_v36 }
 0x7b0   : > { %4823 = vrcp.f32 %v3324_v3  ;;  %1401 = vperm.xlu0 %4468, %v1367_v27   ;;  %v3084_v7 = vpop.xlane.xlu0 %3083 }
 0x7b1   : > { %v3147_v63 = vsub.f32 %v6643_v17, %v3084_v7  ;;  %v3148_v4 = vsub.f32 %v6648_v10, %v3084_v7  ;;  %v3588_v17 = vld [vmem:[#allocation21 + $0x10] sm:$0xff] }
 0x7b2   : > { %v4820_v23 = vpop.eup %4819  ;;  %4245 = vmatpush1.bf16.xpose.msra.mxu0 %v4244_v25 }
 0x7b3   : > { %v3273_v34 = vmul.f32 1.442695, %v3147_v63  ;;  %v3275_v50 = vmul.f32 1.442695, %v3148_v4  ;;  %v3330_v37 = vpop.xlane.xlu1 %3329  ;;  %v3432_v55 = vmul.f32 %v4820_v23, %v6848_v0  ;;  %v3431_v1 = vmul.f32 %v4820_v23, %v6842_v41 }
 0x7b4   : > { %4825 = vrcp.f32 %v3330_v37  ;;  %3592 = vperm.xlu0 %4468, %v3586_v40   ;;  %v3327_v21 = vpop.xlane.xlu0 %3326  ;;  %v7643_v37 = vld [vmem:[#allocation59_spill] sm:$0xff] }
 0x7b5   : > { %4827 = vpow2.f32 %v3273_v34  ;;  %v4246_v10 = vpack.c.bf16 %v3432_v55, %v3430_v60  ;;  %v4248_v43 = vpack.c.bf16 %v3431_v1, %v3429_v49 }
 0x7b6   : > { %4829 = vpow2.f32 %v3275_v50  ;;  %v4822_v26 = vpop.eup %4821  ;;  %v7642_v50 = vld [vmem:[#allocation57_spill] sm:$0xff] }
 0x7b7   : > { %4831 = vrcp.f32 %v3327_v21  ;;  %v3336_v38 = vpop.xlane.xlu1 %3335  ;;  %4247 = vmatprep.subr.bf16.mxu0 %v4246_v10  ;;  %v3434_v41 = vmul.f32 %v4822_v26, %v6856_v11  ;;  %v3433_v32 = vmul.f32 %v4822_v26, %v6854_v46 }
 0x7b8   : > { %4833 = vrcp.f32 %v3336_v38  ;;  %3602 = vperm.xlu0 %4468, %v3588_v17   ;;  %v3333_v52 = vpop.xlane.xlu0 %3332 }
 0x7b9   : > { %4835 = vrcp.f32 %v3333_v52  ;;  %v7646_v52 = vld [vmem:[#allocation61_spill] sm:$0xff] }
 0x7ba   : > { %v4824_v0 = vpop.eup %4823  ;;  %4249 = vmatpush1.bf16.xpose.msra.mxu0 %v4248_v43  ;;  %v1366_v43 = vld [vmem:[#allocation18 + $0x28] sm:$0xff] }
 0x7bb   : > { %v3436_v12 = vmul.f32 %v4824_v0, %v6868_v42  ;;  %v3435_v36 = vmul.f32 %v4824_v0, %v6863_v13 }
 0x7bc   : > { %v3339_v5 = vpop.xlane.xlu0 %3338 }
 0x7bd   : > { %v4250_v9 = vpack.c.bf16 %v3436_v12, %v3434_v41  ;;  %v4252_v8 = vpack.c.bf16 %v3435_v36, %v3433_v32  ;;  %v1368_v41 = vld [vmem:[#allocation18 + $0x38] sm:$0xff]  ;;  %v7647_v36 = vld [vmem:[#allocation62_spill] sm:$0xff] }
 0x7be   : > { %v4826_v39 = vpop.eup %4825 }
 0x7bf   : > { %v7101_v2 = vpop.eup %4827  ;;  %v3342_v48 = vpop.xlane.xlu1 %3341  ;;  %4251 = vmatprep.subr.bf16.mxu0 %v4250_v9  ;;  %v3440_v57 = vmul.f32 %v4826_v39, %v6885_v31  ;;  %v3439_v63 = vmul.f32 %v4826_v39, %v6878_v54  ;;  %v7648_v39 = vld [vmem:[#allocation66_spill] sm:$0xff] }
 0x7c0   : > { %v7103_v27 = vpop.eup %4829  ;;  %4837 = vrcp.f32 %v3342_v48 }
 0x7c1   : > { %v4832_v11 = vpop.eup %4831  ;;  %v3370_v42 = vadd.f32 %v7103_v27, %v7101_v2  ;;  %4839 = vrcp.f32 %v3339_v5 }
 0x7c2   : > { %v4834_v13 = vpop.eup %4833  ;;  %4253 = vmatpush1.bf16.xpose.msra.mxu0 %v4252_v8  ;;  %v3438_v46 = vmul.f32 %v4832_v11, %v6876_v22  ;;  %v3437_v7 = vmul.f32 %v4832_v11, %v6870_v44  ;;  %v7644_v44 = vld [vmem:[#allocation63_spill] sm:$0xff] }
 0x7c3   : > { %v4836_v25 = vpop.eup %4835  ;;  %3371 = vadd.xlane.f32.xlu1 %v3370_v42  ;;  %v3444_v20 = vmul.f32 %v4834_v13, %v6905_v19  ;;  %v3443_v55 = vmul.f32 %v4834_v13, %v7643_v37  ;;  %v3587_v11 = vld [vmem:[#allocation21 + $0x8] sm:$0xff] }
 0x7c4   : > { %v4254_v3 = vpack.c.bf16 %v3440_v57, %v3438_v46  ;;  %v3442_v31 = vmul.f32 %v4836_v25, %v6892_v14  ;;  %v3345_v4 = vpop.xlane.xlu0 %3344  ;;  %v4256_v60 = vpack.c.bf16 %v3439_v63, %v3437_v7  ;;  %v3441_v19 = vmul.f32 %v4836_v25, %v7642_v50  ;;  %v7645_v14 = vld [vmem:[#allocation64_spill] sm:$0xff]  ;;  %v7653_v50 = vld [vmem:[#allocation67_spill] sm:$0xff] }
 0x7c5   : > { %v7649_v7 = vld [vmem:[#allocation68_spill] sm:$0xff] }
 0x7c6   : > { %4255 = vmatprep.subr.bf16.mxu0 %v4254_v3  ;;  %v4258_v23 = vpack.c.bf16 %v3444_v20, %v3442_v31  ;;  %v4260_v17 = vpack.c.bf16 %v3443_v55, %v3441_v19  ;;  %v3589_v31 = vld [vmem:[#allocation21 + $0x18] sm:$0xff]  ;;  %v7654_v55 = vld [vmem:[#allocation74_spill] sm:$0xff] }
 0x7c7   : > { %v3348_v40 = vpop.xlane.xlu1 %3347 }
 0x7c8   : > { %4841 = vrcp.f32 %v3348_v40 }
 0x7c9   : > { %4843 = vrcp.f32 %v3345_v4  ;;  %v7650_v4 = vld [vmem:[#allocation72_spill] sm:$0xff] }
 0x7ca   : > { %v4838_v34 = vpop.eup %4837  ;;  %4257 = vmatpush1.bf16.xpose.msra.mxu0 %v4256_v60 }
 0x7cb   : > { %4259 = vmatprep.subr.bf16.mxu0 %v4258_v23  ;;  %v4840_v22 = vpop.eup %4839  ;;  %v3448_v1 = vmul.f32 %v4838_v34, %v7644_v44  ;;  %v3447_v0 = vmul.f32 %v4838_v34, %v7646_v52  ;;  %v7651_v23 = vld [vmem:[#allocation73_spill] sm:$0xff]  ;;  %v7652_v34 = vld [vmem:[#allocation75_spill] sm:$0xff] }
 0x7cc   : > { %v3351_v54 = vpop.xlane.xlu0 %3350  ;;  %v3446_v49 = vmul.f32 %v4840_v22, %v7645_v14  ;;  %v3445_v32 = vmul.f32 %v4840_v22, %v7647_v36  ;;  %v7657_v52 = vld [vmem:[#allocation71_spill] sm:$0xff] }
 0x7ce   : > { %v4262_v10 = vpack.c.bf16 %v3448_v1, %v3446_v49  ;;  %v4264_v5 = vpack.c.bf16 %v3447_v0, %v3445_v32 }
 0x7cf   : > { %v3354_v21 = vpop.xlane.xlu1 %3353 }
 0x7d0   : > { %4845 = vrcp.f32 %v3354_v21 }
 0x7d1   : > { %4847 = vrcp.f32 %v3351_v54  ;;  %v7656_v54 = vld [vmem:[#allocation65_spill] sm:$0xff] }
 0x7d2   : > { %v4842_v38 = vpop.eup %4841  ;;  %4261 = vmatpush1.bf16.xpose.msra.mxu0 %v4260_v17  ;;  %v7121_v48 = vpop.f32.mrb[34].mxu0 }
 0x7d3   : > { %4263 = vmatprep.subr.bf16.mxu0 %v4262_v10  ;;  %v4844_v26 = vpop.eup %4843  ;;  %v3452_v12 = vmul.f32 %v4842_v38, %v6947_v18  ;;  %v7123_v42 = vpop.f32.mrb[35].mxu0  ;;  %v3451_v63 = vmul.f32 %v4842_v38, %v7649_v7 }
 0x7d4   : > { %1396 = vperm.xlu1 %4467, %v1366_v43   ;;  %v3357_v9 = vpop.xlane.xlu0 %3356  ;;  %v3450_v8 = vmul.f32 %v4844_v26, %v7648_v39  ;;  %v1382_v46 = vpop.permute.xlu1 %1381  ;;  %v3449_v22 = vmul.f32 %v4844_v26, %v7652_v34 }
 0x7d5   : > { %v1514_v60 = vadd.f32 %v7651_v23, %v1382_v46  ;;  %4849 = vrcp.f32 %v3357_v9 }
 0x7d6   : > { %v4266_v57 = vpack.c.bf16 %v3452_v12, %v3450_v8  ;;  %v4268_v37 = vpack.c.bf16 %v3451_v63, %v3449_v22  ;;  %v7658_v12 = vld [vmem:[#allocation69_spill] sm:$0xff] }
 0x7d8   : > { %1406 = vperm.xlu1 %4467, %v1368_v41  }
 0x7da   : > { %v4846_v13 = vpop.eup %4845  ;;  %4265 = vmatpush1.bf16.xpose.msra.mxu0 %v4264_v5 }
 0x7db   : > { %4267 = vmatprep.subr.bf16.mxu0 %v4266_v57  ;;  %v4848_v20 = vpop.eup %4847  ;;  %v3456_v40 = vmul.f32 %v4846_v13, %v7650_v4 }
 0x7dc   : > { %v1377_v25 = vpop.permute.xlu0 %1376  ;;  %3597 = vperm.xlu1 %4467, %v3587_v11   ;;  %v3454_v19 = vmul.f32 %v4848_v20, %v7653_v50  ;;  %v3453_v21 = vmul.f32 %v4848_v20, %v7656_v54 }
 0x7dd   : > { %v1506_v18 = vadd.f32 %v6986_v61, %v1377_v25  ;;  %v1508_v3 = vadd.f32 %v6989_v16, %v1377_v25  ;;  %v1512_v61 = vadd.f32 %v7654_v55, %v1382_v46  ;;  %v7655_v16 = vld [vmem:[#allocation70_spill] sm:$0xff] }
 0x7de   : > { %v4270_v44 = vpack.c.bf16 %v3456_v40, %v3454_v19  ;;  %v3455_v1 = vmul.f32 %v4846_v13, %v7655_v16 }
 0x7df   : > { %2545 = vmatprep.mubr.f32.mxu0 %v1508_v3  ;;  %v4850_v38 = vpop.eup %4849 }
 0x7e0   : > { %2546 = vmatmul.mubr.f32.gmra.mrb[38].mxu0 %v1506_v18  ;;  %3607 = vperm.xlu1 %4467, %v3589_v31   ;;  %v4272_v14 = vpack.c.bf16 %v3455_v1, %v3453_v21  ;;  %v3458_v0 = vmul.f32 %v4850_v38, %v7657_v52  ;;  %v3457_v36 = vmul.f32 %v4850_v38, %v7658_v12  ;;  %v3566_v52 = vld [vmem:[#allocation20] sm:$0xff]  ;;  %v3568_v12 = vld [vmem:[#allocation20 + $0x10] sm:$0xff] }
 0x7e1   : > { %2551 = vmatprep.mubr.f32.mxu0 %v1514_v60 }
 0x7e2   : > { %4269 = vmatpush1.bf16.xpose.msra.mxu0 %v4268_v37 }
 0x7e3   : > { %4271 = vmatprep.subr.bf16.mxu0 %v4270_v44 }
 0x7e4   : > { %2552 = vmatmul.mubr.f32.gmra.mrb[40].mxu0 %v1512_v61 }
 0x7ea   : > { %4273 = vmatpush1.bf16.xpose.msra.mxu0 %v4272_v14 }
 0x804   : > { %v3360_v49 = vpop.xlane.xlu1 %3359 }
 0x805   : > { %4851 = vrcp.f32 %v3360_v49 }
 0x808   : > { %v1387_v17 = vpop.permute.xlu1 %1386 }
 0x809   : > { %v1518_v10 = vadd.f32 %v7035_v45, %v1387_v17  ;;  %v1520_v43 = vadd.f32 %v7037_v58, %v1387_v17 }
 0x80b   : > { %2557 = vmatprep.mubr.f32.mxu0 %v1520_v43 }
 0x80c   : > { %2558 = vmatmul.mubr.f32.gmra.mrb[42].mxu0 %v1518_v10 }
 0x80f   : > { %v4852_v26 = vpop.eup %4851 }
 0x810   : > { %v3460_v41 = vmul.f32 %v4852_v26, %v7016_v24  ;;  %v3459_v32 = vmul.f32 %v4852_v26, %v7014_v56 }
 0x812   : > { %v4274_v9 = vpack.c.bf16 %v3460_v41, %v3458_v0  ;;  %v4276_v39 = vpack.c.bf16 %v3459_v32, %v3457_v36  ;;  %v7659_v0 = vmov 0.0   ;;  %v3567_v41 = vld [vmem:[#allocation20 + $0x8] sm:$0xff]  ;;  %v3569_v36 = vld [vmem:[#allocation20 + $0x18] sm:$0xff] }
 0x814   : > { %4275 = vmatprep.subr.bf16.mxu0 %v4274_v9 }
 0x815   : > { %4277 = vmatpush1.bf16.xpose.msra.mxu0 %v4276_v39 }
 0x81b   : > { %v3363_v8 = vpop.xlane.xlu0 %3362 }
 0x81c   : > { %4853 = vrcp.f32 %v3363_v8 }
 0x823   : > { %v3369_v45 = vpop.xlane.xlu0 %3368 }
 0x826   : > { %v4854_v11 = vpop.eup %4853 }
 0x827   : > { %v3462_v24 = vmul.f32 %v4854_v11, %v7041_v47  ;;  %v3461_v56 = vmul.f32 %v4854_v11, %v7039_v59  ;;  %v4862_v11 = vld [vmem:[%s5763_s0 + $0x8] sm:$0xff] }
 0x82b   : > { %v1392_v5 = vpop.permute.xlu0 %1391 }
 0x82c   : > { %v1526_v58 = vadd.f32 %v7073_v6, %v1392_v5  ;;  %v1524_v60 = vadd.f32 %v7069_v29, %v1392_v5  ;;  %v4861_v5 = vld [vmem:[%s5763_s0] sm:$0xff] }
 0x82e   : > { %3533 = vmatprep.mubr.f32.mxu0 %v1526_v58 }
 0x82f   : > { %v1402_v22 = vpop.permute.xlu0 %1401 }
 0x833   : > { %v3593_v32 = vpop.permute.xlu0 %3592 }
 0x839   : > { %v3366_v57 = vpop.xlane.xlu1 %3365 }
 0x83a   : > { %4855 = vrcp.f32 %v3366_v57 }
 0x83b   : > { %4857 = vrcp.f32 %v3369_v45 }
 0x844   : > { %v4856_v13 = vpop.eup %4855 }
 0x845   : > { %v3464_v46 = vmul.f32 %v4856_v13, %v7075_v28  ;;  %v3463_v25 = vmul.f32 %v4856_v13, %v7071_v51  ;;  %v4858_v3 = vpop.eup %4857 }
 0x846   : > { %v3466_v4 = vmul.f32 %v4858_v3, %v7049_v30  ;;  %v3465_v28 = vmul.f32 %v4858_v3, %v7047_v15  ;;  %v1536_v15 = vadd.f32 %v7087_v53, %v1402_v22  ;;  %v4864_v3 = vld [vmem:[%s5763_s0 + $0x18] sm:$0xff] }
 0x847   : > { %v4278_v20 = vpack.c.bf16 %v3464_v46, %v3462_v24  ;;  %v4280_v18 = vpack.c.bf16 %v3463_v25, %v3461_v56 }
 0x849   : > { %4279 = vmatprep.subr.bf16.mxu0 %v4278_v20  ;;  %v4863_v20 = vld [vmem:[%s5763_s0 + $0x10] sm:$0xff] }
 0x84a   : > { %4281 = vmatpush1.bf16.xpose.msra.mxu0 %v4280_v18 }
 0x850   : > { %v3372_v6 = vpop.xlane.xlu1 %3371 }
 0x851   : > { %4859 = vrcp.f32 %v3372_v6  ;;  %v3603_v6 = vpop.permute.xlu0 %3602 }
 0x854   : > { %v1397_v23 = vpop.permute.xlu1 %1396 }
 0x855   : > { %v1532_v34 = vadd.f32 %v7085_v33, %v1397_v23  ;;  %v1530_v30 = vadd.f32 %v7083_v62, %v1397_v23 }
 0x858   : > { %v1407_v50 = vpop.permute.xlu1 %1406 }
 0x859   : > { %v1542_v29 = vadd.f32 %v7121_v48, %v1407_v50 }
 0x85a   : > { %v2541_v63 = vpop.f32.mrb[36].mxu0 }
 0x85b   : > { %v4860_v7 = vpop.eup %4859  ;;  %v2543_v31 = vpop.f32.mrb[37].mxu0 }
 0x85c   : > { %v3468_v47 = vmul.f32 %v4860_v7, %v7103_v27  ;;  %v3467_v59 = vmul.f32 %v4860_v7, %v7101_v2  ;;  %v1538_v27 = vadd.f32 %v7089_v35, %v1402_v22  ;;  %v1544_v2 = vadd.f32 %v7123_v42, %v1407_v50  ;;  %v3598_v57 = vpop.permute.xlu1 %3597 }
 0x85e   : > { %v4282_v51 = vpack.c.bf16 %v3468_v47, %v3466_v4  ;;  %v4284_v40 = vpack.c.bf16 %v3467_v59, %v3465_v28  ;;  %v4865_v28 = vld [vmem:[%s5763_s0 + $0x20] sm:$0xff] }
 0x860   : > { %4283 = vmatprep.subr.bf16.mxu0 %v4282_v51  ;;  %v3608_v51 = vpop.permute.xlu1 %3607 }
 0x861   : > { %4285 = vmatpush1.bf16.xpose.msra.mxu0 %v4284_v40  ;;  %v4866_v40 = vld [vmem:[%s5763_s0 + $0x28] sm:$0xff] }
 0x868   : > { %3534 = vmatmul.mubr.f32.vlgmr.msra.gmra.mrb[44].mxu0 %v1524_v60 }
 0x869   : > { %3539 = vmatprep.mubr.f32.mxu0 %v1532_v34 }
 0x86c   : > { %3540 = vmatmul.mubr.f32.gmra.mrb[46].mxu0 %v1530_v30 }
 0x86d   : > { %3545 = vmatprep.mubr.f32.mxu0 %v1538_v27  ;;  %v4867_v27 = vld [vmem:[%s5763_s0 + $0x30] sm:$0xff] }
 0x870   : > { %3546 = vmatmul.mubr.f32.gmra.mrb[48].mxu0 %v1536_v15  ;;  %v4868_v15 = vld [vmem:[%s5763_s0 + $0x38] sm:$0xff] }
 0x871   : > { %3551 = vmatprep.mubr.f32.mxu0 %v1544_v2 }
 0x874   : > { %3552 = vmatmul.mubr.f32.gmra.mrb[50].mxu0 %v1542_v29 }
 0x8b3   : > { %v2547_v33 = vpop.f32.mrb[38].mxu0 }
 0x8b4   : > { %v4288_v19 = vpack.c.bf16 %v2547_v33, %v2541_v63  ;;  %v2549_v37 = vpop.f32.mrb[39].mxu0 }
 0x8b5   : > { %v4286_v55 = vpack.c.bf16 %v2549_v37, %v2543_v31 }
 0x8b7   : > { %v2553_v61 = vpop.f32.mrb[40].mxu0  ;;  %4287 = vmatprep.subr.bf16.mxu1 %v4286_v55 }
 0x8b8   : > { %v2555_v62 = vpop.f32.mrb[41].mxu0  ;;  %4289 = vmatpush1.bf16.msra.mxu1 %v4288_v19 }
 0x8df   : > { %v2559_v35 = vpop.f32.mrb[42].mxu0 }
 0x8e0   : > { %v4292_v44 = vpack.c.bf16 %v2559_v35, %v2553_v61  ;;  %v2561_v16 = vpop.f32.mrb[43].mxu0 }
 0x8e1   : > { %v4290_v1 = vpack.c.bf16 %v2561_v16, %v2555_v62 }
 0x8e3   : > { %4291 = vmatprep.subr.bf16.mxu1 %v4290_v1 }
 0x8e4   : > { %4293 = vmatpush1.bf16.msra.mxu1 %v4292_v44 }
 0x93b   : > { %v3535_v53 = vpop.f32.mrb[44].mxu0 }
 0x93c   : > { %v3537_v42 = vpop.f32.mrb[45].mxu0 }
 0x93f   : > { %v3541_v54 = vpop.f32.mrb[46].mxu0 }
 0x940   : > { %v4296_v21 = vpack.c.bf16 %v3541_v54, %v3535_v53  ;;  %v3543_v48 = vpop.f32.mrb[47].mxu0 }
 0x941   : > { %v4294_v14 = vpack.c.bf16 %v3543_v48, %v3537_v42 }
 0x943   : > { %v3547_v49 = vpop.f32.mrb[48].mxu0  ;;  %4295 = vmatprep.subr.bf16.mxu1 %v4294_v14 }
 0x944   : > { %v3549_v17 = vpop.f32.mrb[49].mxu0  ;;  %4297 = vmatpush1.bf16.msra.mxu1 %v4296_v21 }
 0x947   : > { %v3553_v10 = vpop.f32.mrb[50].mxu0 }
 0x948   : > { %v4300_v43 = vpack.c.bf16 %v3553_v10, %v3547_v49  ;;  %v3555_v38 = vpop.f32.mrb[51].mxu0 }
 0x949   : > { %v4298_v26 = vpack.c.bf16 %v3555_v38, %v3549_v17 }
 0x94b   : > { %4299 = vmatprep.subr.bf16.mxu1 %v4298_v26 }
 0x94c   : > { %4301 = vmatpush1.bf16.msra.mxu1 %v4300_v43 }
 0x94f   : > { %4047 = vmatmul.mubr.msk.f32.vlgmr.msra.gmra.mrb[148].mxu1 %vm3610_vm1, %v3566_v52 }
 0x950   : > { %3693 = vmatprep.mubr.f32.mxu1 %v7659_v0 }
 0x953   : > { %4048 = vmatmul.mubr.msk.f32.gmra.mrb[150].mxu1 %vm3610_vm1, %v3567_v41 }
 0x954   : > { %3699 = vmatprep.mubr.f32.mxu1 %v7659_v0 }
 0x957   : > { %4049 = vmatmul.mubr.msk.f32.gmra.mrb[152].mxu1 %vm3610_vm1, %v3568_v12 }
 0x958   : > { %3705 = vmatprep.mubr.f32.mxu1 %v7659_v0 }
 0x95b   : > { %4050 = vmatmul.mubr.msk.f32.gmra.mrb[154].mxu1 %vm3610_vm1, %v3569_v36 }
 0xa22   : > { %v3689_v9 = vpop.f32.mrb[148].mxu1 }
 0xa23   : > { %v3690_v39 = vadd.f32 %v3689_v9, %v3593_v32  ;;  %v3691_v8 = vpop.f32.mrb[149].mxu1 }
 0xa24   : > { %v3692_v45 = vadd.f32 %v3691_v8, %v3593_v32 }
 0xa25   : > { %v3712_v58 = vadd.f32 %v4861_v5, %v3690_v39 }
 0xa26   : > { %v3713_v13 = vadd.f32 %v4862_v11, %v3692_v45  ;;  %v3695_v24 = vpop.f32.mrb[150].mxu1 }
 0xa27   : > { %3720 = vst [vmem:[%s7164_s16] sm:$0xff] %v3712_v58  ;;  %v3696_v46 = vadd.f32 %v3695_v24, %v3598_v57  ;;  %v3697_v56 = vpop.f32.mrb[151].mxu1 }
 0xa28   : > { %3721 = vst [vmem:[%s7164_s16 + $0x8] sm:$0xff] %v3713_v13  ;;  %v3698_v25 = vadd.f32 %v3697_v56, %v3598_v57 }
 0xa29   : > { %v3714_v18 = vadd.f32 %v4863_v20, %v3696_v46 }
 0xa2a   : > { %v3715_v7 = vadd.f32 %v4864_v3, %v3698_v25  ;;  %v3701_v63 = vpop.f32.mrb[152].mxu1 }
 0xa2b   : > { %3722 = vst [vmem:[%s7164_s16 + $0x10] sm:$0xff] %v3714_v18  ;;  %v3702_v31 = vadd.f32 %v3701_v63, %v3603_v6  ;;  %v3703_v4 = vpop.f32.mrb[153].mxu1 }
 0xa2c   : > { %3723 = vst [vmem:[%s7164_s16 + $0x18] sm:$0xff] %v3715_v7  ;;  %v3704_v47 = vadd.f32 %v3703_v4, %v3603_v6 }
 0xa2d   : > { %v3716_v59 = vadd.f32 %v4865_v28, %v3702_v31 }
 0xa2e   : > { %v3717_v23 = vadd.f32 %v4866_v40, %v3704_v47  ;;  %v3707_v60 = vpop.f32.mrb[154].mxu1 }
 0xa2f   : > { %3724 = vst [vmem:[%s7164_s16 + $0x20] sm:$0xff] %v3716_v59  ;;  %v3708_v34 = vadd.f32 %v3707_v60, %v3608_v51  ;;  %v3709_v22 = vpop.f32.mrb[155].mxu1 }
 0xa30   : > { %3725 = vst [vmem:[%s7164_s16 + $0x28] sm:$0xff] %v3717_v23  ;;  %v3710_v30 = vadd.f32 %v3709_v22, %v3608_v51 }
 0xa31   : > { %v3718_v50 = vadd.f32 %v4867_v27, %v3708_v34 }
 0xa32   : > { %v3719_v2 = vadd.f32 %v4868_v15, %v3710_v30 }
 0xa33   : > { %3726 = vst [vmem:[%s7164_s16 + $0x30] sm:$0xff] %v3718_v50 }
 0xa34   : > { %3727 = vst [vmem:[%s7164_s16 + $0x38] sm:$0xff] %v3719_v2 }
 0xa35   : > { %5220 = shalt.err (!%p5217_p9)
}
 0xa36   : > { %s5221_s0 = scalar_lea.hbm %s7184_s20, 1024  ;;  %s5225_s19 = scalar_lea.hbm %s7660_s27, 2048 }
 0xa37   : > { %p5222_p7 = scmp.ne.s32.totalorder %s7184_s20, %s5221_s0  ;;  %p5226_p1 = scmp.lt.u32.totalorder %s7184_s20, %s7660_s27 }
 0xa38   : > { %p5227_p13 = scmp.lt.u32.totalorder %s5225_s19, %s5221_s0  ;;  %p5229_p2 = scmp.lt.u32.totalorder %s5221_s0, %s7184_s20 }
 0xa39   : > { %p5223_p4 = pnand %p5222_p7, %p7661_p8 }
 0xa3a   : > { %p5228_p0 = por %p5227_p13, %p5226_p1 }
 0xa3b   : > { %p5224_p12 = pneg %p5223_p4 }
 0xa3c   : > { %p5230_p6 = por %p5229_p2, %p5228_p0 }
 0xa3e   : > { %p5231_p10 = pnand %p5230_p6, %p5224_p12 }
 0xa40   : > { %5234 = shalt.err (!%p5231_p10)
}
 0xa41   : > { %s5318_s2 = smov 256   ;;  %s5319_s26 = smov 16  }
 0xa42   : > { %4348 = dma.vmem_to_hbm [thread:$0]  (%p7661_p8), %s7177_s25, 1024, %s7184_s20, %s3729_s18, %s5318_s2, %s5318_s2, %s5319_s26  }
 0xa43 PF: > { %s3757_s15 = sand.u32 1, %s5285_s21   ;;  %p7662_p11 = scmp.ne.s32.totalorder %s7392_s29, 0 }
 0xa44   : > { %p7663_p3 = scmp.ge.s32.totalorder %s5297_s24, 2  ;;  %s3758_s0 = scalar_lea.sflag [#allocation5], %s3757_s15 }
 0xa46   : > { %p4389_p5 = pnand %p7663_p3, %p7662_p11 }
 0xa48   : > { %5280 = dma.done.wait (!%p4389_p5), %s3758_s0, 1024  }
 0xa49   : > { %5282 = vsyncadd (!%p4389_p5), %s3758_s0, 4294966272  ;;  %p31_p9 = scmp.ge.s32.totalorder %s5684_s28, 4   ;;  %s7664_s21 = smov %s5289_s22 }
 0xa4a   : > { %s7665_s22 = smov %s5293_s23  ;;  %s7666_s23 = smov %s5696_s14 }
 0xa4b   : > { %s7667_s24 = smov %s5684_s28  ;;  %33 = sbr.rel (!%p31_p9) target bundleno = 16 (0x10), region = 157 }
 0xa52   :  { %3763 = vsyncpa [#allocation4], 1 }
 0xa53   :  { %3765 = vsyncpa [#allocation4 + $0x1], 1 }
 0xa54   :  { %3766 = vsyncpa [#allocation7], 1 }
 0xa55   :  { %3767 = vsyncpa [#allocation10], 1 }
 0xa56   :  { %3768 = vsyncpa [#allocation13], 1 }
 0xa57   :  { %3769 = vsyncpa [#allocation16], 1 }
 0xa58   :  { %3770 = vsyncpa [#allocation19], 1 }
 0xa59   :  { %3771 = vsyncpa [#allocation22], 1 }
 0xa5a   :  { %3772 = vsyncpa [#allocation5], 1 }
 0xa5b   :  { %3774 = vsyncpa [#allocation5 + $0x1], 1 }

</bundles_post_ra>
